<compile_context>
chip_gen: v7x
topology: tpu7x:2x2x1
jax: 0.10.0
libtpu: 0.0.40
codegen_flags: <defaults>
</compile_context>

<pallas_src>
import math
from functools import partial

import jax
import jax.numpy as jnp
from jax.experimental import pallas as pl
from jax.experimental.pallas import tpu as pltpu


# ----------------------------------------------------------------------------
# Tiling helpers / compiler params
# ----------------------------------------------------------------------------

def _pick_tile(dim, prefs):
    """Largest preferred tile that evenly divides `dim`; otherwise the full dim
    (a full-extent block always satisfies the (8,128) constraint).
    TODO(synk): pad non-divisible large dims to 128 multiples instead of falling
    back to the full dimension (VMEM safety for very large, odd shapes)."""
    for p in prefs:
        if p <= dim and dim % p == 0:
            return p
    return dim


_MOSAIC_LINEAR = pltpu.CompilerParams(
    dimension_semantics=("parallel", "parallel", "arbitrary"),
    vmem_limit_bytes=64 * 1024 * 1024,
)
_MOSAIC_ATTN = pltpu.CompilerParams(
    dimension_semantics=("parallel", "parallel"),
    vmem_limit_bytes=64 * 1024 * 1024,
)


# ----------------------------------------------------------------------------
# Pallas kernels
# ----------------------------------------------------------------------------

def _linear_kernel(x_ref, w_ref, b_ref, o_ref, acc_ref, *, activation):
    # y = x @ w + b, optional ReLU.  bf16 operands, f32 accumulation, bf16 store.
    @pl.when(pl.program_id(2) == 0)
    def _():
        acc_ref[...] = jnp.zeros_like(acc_ref)

    acc_ref[...] += jnp.dot(x_ref[...], w_ref[...],
                            preferred_element_type=jnp.float32)

    @pl.when(pl.program_id(2) == pl.num_programs(2) - 1)
    def _():
        y = acc_ref[...] + b_ref[...]
        if activation == "relu":
            y = jnp.maximum(y, 0.0)
        o_ref[...] = y.astype(o_ref.dtype)


def _linear_ln_kernel(x_ref, w_ref, b_ref, r_ref, g_ref, bt_ref, o_ref, acc_ref):
    # y = LayerNorm(residual + x @ w + b); LN math in f32, residual arrives bf16.
    @pl.when(pl.program_id(2) == 0)
    def _():
        acc_ref[...] = jnp.zeros_like(acc_ref)

    acc_ref[...] += jnp.dot(x_ref[...], w_ref[...],
                            preferred_element_type=jnp.float32)

    @pl.when(pl.program_id(2) == pl.num_programs(2) - 1)
    def _():
        y = r_ref[...].astype(jnp.float32) + acc_ref[...] + b_ref[...]
        mean = jnp.mean(y, axis=-1, keepdims=True)
        var = jnp.mean((y - mean) ** 2, axis=-1, keepdims=True)
        out = (y - mean) * jax.lax.rsqrt(var + 1e-5) * g_ref[...] + bt_ref[...]
        o_ref[...] = out.astype(o_ref.dtype)


def _attention_kernel(*refs, scale, H, dk, q_off, k_off, v_off, has_mask):
    # Inputs are d_model-last packed projections (bf16); heads are split with
    # static lane slices; output is written lane-dense as (TQ, H*dk).
    if has_mask:
        qsrc_ref, kvsrc_ref, m_ref, o_ref = refs
    else:
        qsrc_ref, kvsrc_ref, o_ref = refs
        m_ref = None

    D = H * dk
    qsrc = qsrc_ref[0]                              # (TQ, Dq) bf16
    kvsrc = kvsrc_ref[0]                            # (Sk, Dkv) bf16
    q2d = qsrc[:, q_off:q_off + D]                  # (TQ, D)
    k2d = kvsrc[:, k_off:k_off + D]                 # (Sk, D)
    v2d = kvsrc[:, v_off:v_off + D]                 # (Sk, D)

    ctx = []
    for h in range(H):
        sl = slice(h * dk, (h + 1) * dk)
        # q_h @ k_h^T without a transposed copy.
        s = jax.lax.dot_general(q2d[:, sl], k2d[:, sl],
                                (((1,), (1,)), ((), ())),
                                preferred_element_type=jnp.float32) * scale
        if m_ref is not None:
            # PyTorch reference: scores.masked_fill(mask == 0, 1e-9)
            s = jnp.where(m_ref[0] == 0.0, 1e-9, s)
        # Numerically stable softmax in f32; reciprocal goes to the EUP slot.
        s = s - jnp.max(s, axis=-1, keepdims=True)
        e = jnp.exp(s)
        p = e * pl.reciprocal(jnp.sum(e, axis=-1, keepdims=True), approx=True)
        ctx.append(jnp.dot(p.astype(jnp.bfloat16), v2d[:, sl],
                           preferred_element_type=jnp.float32))

    o_ref[0] = jnp.concatenate(ctx, axis=-1).astype(o_ref.dtype)


# ----------------------------------------------------------------------------
# Kernel wrappers
# ----------------------------------------------------------------------------

def linear(x, w, b, *, activation=None, residual=None, gamma=None, beta=None,
           out_dtype=jnp.bfloat16):
    """Tiled fused linear.

    y = x @ w + b                       (optionally ReLU), or
    y = LayerNorm(residual + x @ w + b) when residual/gamma/beta are given.
    x: (M, K) bf16, w: (K, N) bf16, b: (N,) f32 -> (M, N) out_dtype.
    """
    M, K = x.shape
    N = w.shape[1]
    fuse_ln = residual is not None

    TM = _pick_tile(M, (512, 256, 128))
    TK = _pick_tile(K, (512, 256, 128))
    TN = N if fuse_ln else _pick_tile(N, (512, 256, 128))
    if fuse_ln:
        # LN needs the full row resident; cap TM so acc + residual + output tiles
        # stay well inside v7x's 64 MiB VMEM.
        while TM > 8 and TM % 2 == 0 and TM * N * 4 * 3 > 16 * 1024 * 1024:
            TM //= 2

    gm, gn, gk = M // TM, N // TN, K // TK
    # Megacore occupancy: put the larger parallel axis first.
    if gm >= gn:
        grid = (gm, gn, gk)
        x_map = lambda i, j, k: (i, k)
        w_map = lambda i, j, k: (k, j)
        v_map = lambda i, j, k: (0, j)
        o_map = lambda i, j, k: (i, j)
    else:
        grid = (gn, gm, gk)
        x_map = lambda j, i, k: (i, k)
        w_map = lambda j, i, k: (k, j)
        v_map = lambda j, i, k: (0, j)
        o_map = lambda j, i, k: (i, j)

    x_bf = x.astype(jnp.bfloat16)
    w_bf = w.astype(jnp.bfloat16)
    b2 = b.reshape(1, N).astype(jnp.float32)

    x_spec = pl.BlockSpec((TM, TK), x_map)
    w_spec = pl.BlockSpec((TK, TN), w_map)
    v_spec = pl.BlockSpec((1, TN), v_map)
    o_spec = pl.BlockSpec((TM, TN), o_map)
    scratch = [pltpu.VMEM((TM, TN), jnp.float32)]
    out_shape = jax.ShapeDtypeStruct((M, N), out_dtype)

    if fuse_ln:
        r_spec = pl.BlockSpec((TM, TN), o_map)
        return pl.pallas_call(
            _linear_ln_kernel,
            out_shape=out_shape,
            grid=grid,
            in_specs=[x_spec, w_spec, v_spec, r_spec, v_spec, v_spec],
            out_specs=o_spec,
            scratch_shapes=scratch,
            compiler_params=_MOSAIC_LINEAR,
        )(x_bf, w_bf, b2, residual.astype(jnp.bfloat16),
          gamma.reshape(1, N).astype(jnp.float32),
          beta.reshape(1, N).astype(jnp.float32))

    return pl.pallas_call(
        partial(_linear_kernel, activation=activation),
        out_shape=out_shape,
        grid=grid,
        in_specs=[x_spec, w_spec, v_spec],
        out_specs=o_spec,
        scratch_shapes=scratch,
        compiler_params=_MOSAIC_LINEAR,
    )(x_bf, w_bf, b2)


def attention(qsrc, kvsrc, d_k, nhead, *, q_off, k_off, v_off, mask=None):
    """Multi-head attention on packed d_model-last projections.

    qsrc: (B, Sq, Dq) bf16 — Q lives at lane slice [q_off, q_off+D)
    kvsrc: (B, Sk, Dkv) bf16 — K at [k_off, k_off+D), V at [v_off, v_off+D)
    Returns (B, Sq, D) bf16 with D = nhead*d_k (lane-dense, head-merged).
    """
    B, Sq, Dq = qsrc.shape
    Sk, Dkv = kvsrc.shape[1], kvsrc.shape[2]
    D = nhead * d_k
    scale = 1.0 / math.sqrt(d_k)
    TQ = _pick_tile(Sq, (256, 128))
    grid = (B, Sq // TQ)

    q_spec = pl.BlockSpec((1, TQ, Dq), lambda b, qi: (b, qi, 0))
    kv_spec = pl.BlockSpec((1, Sk, Dkv), lambda b, qi: (b, 0, 0))
    o_spec = pl.BlockSpec((1, TQ, D), lambda b, qi: (b, qi, 0))
    out_shape = jax.ShapeDtypeStruct((B, Sq, D), jnp.bfloat16)

    kern = partial(_attention_kernel, scale=scale, H=nhead, dk=d_k,
                   q_off=q_off, k_off=k_off, v_off=v_off,
                   has_mask=mask is not None)

    if mask is None:
        return pl.pallas_call(
            kern, out_shape=out_shape, grid=grid,
            in_specs=[q_spec, kv_spec], out_specs=o_spec,
            compiler_params=_MOSAIC_ATTN,
        )(qsrc, kvsrc)

    # Broadcast only over Sq (never over heads); kept f32 for safe lowering.
    mask3 = jnp.broadcast_to(mask.astype(jnp.float32).reshape(B, -1, Sk), (B, Sq, Sk))
    m_spec = pl.BlockSpec((1, TQ, Sk), lambda b, qi: (b, qi, 0))
    return pl.pallas_call(
        kern, out_shape=out_shape, grid=grid,
        in_specs=[q_spec, kv_spec, m_spec], out_specs=o_spec,
        compiler_params=_MOSAIC_ATTN,
    )(qsrc, kvsrc, mask3)


# ----------------------------------------------------------------------------
# Model glue (plain JAX: reshapes, embedding gather, parameter setup)
# ----------------------------------------------------------------------------

def mha_self(p, x, nhead, mask=None):
    B, S, D = x.shape
    d_k = D // nhead
    qkv = linear(x.reshape(B * S, D), p["wqkv"], p["bqkv"])     # (B*S, 3D) bf16
    qkv = qkv.reshape(B, S, 3 * D)                              # free reshape
    ctx = attention(qkv, qkv, d_k, nhead,
                    q_off=0, k_off=D, v_off=2 * D, mask=mask)   # (B, S, D) bf16
    return ctx.reshape(B * S, D)


def mha_cross(p, q_in, kv_in, nhead, mask=None):
    B, Sq, D = q_in.shape
    Sk = kv_in.shape[1]
    d_k = D // nhead
    q = linear(q_in.reshape(B * Sq, D), p["wq"], p["bq"]).reshape(B, Sq, D)
    kv = linear(kv_in.reshape(B * Sk, D), p["wkv"], p["bkv"]).reshape(B, Sk, 2 * D)
    ctx = attention(q, kv, d_k, nhead, q_off=0, k_off=0, v_off=D, mask=mask)
    return ctx.reshape(B * Sq, D)


def encoder_layer(p, src, nhead, src_mask=None):
    B, S, D = src.shape
    x2d = src.reshape(B * S, D)
    sa = p["self_attn"]
    ctx = mha_self(sa, src, nhead, src_mask)
    # out-projection fused with residual add + LayerNorm (norm1)
    x2d = linear(ctx, sa["wo"], sa["bo"],
                 residual=x2d, gamma=p["norm1_g"], beta=p["norm1_b"])
    ffn = p["ffn"]
    h = linear(x2d, ffn["w1"], ffn["b1"], activation="relu")
    x2d = linear(h, ffn["w2"], ffn["b2"],
                 residual=x2d, gamma=p["norm2_g"], beta=p["norm2_b"])
    return x2d.reshape(B, S, D)


def decoder_layer(p, tgt, memory, nhead, tgt_mask=None, memory_mask=None):
    B, S, D = tgt.shape
    x2d = tgt.reshape(B * S, D)
    sa = p["self_attn"]
    ctx = mha_self(sa, tgt, nhead, tgt_mask)
    x2d = linear(ctx, sa["wo"], sa["bo"],
                 residual=x2d, gamma=p["norm1_g"], beta=p["norm1_b"])
    ca = p["cross_attn"]
    ctx = mha_cross(ca, x2d.reshape(B, S, D), memory, nhead, memory_mask)
    x2d = linear(ctx, ca["wo"], ca["bo"],
                 residual=x2d, gamma=p["norm2_g"], beta=p["norm2_b"])
    ffn = p["ffn"]
    h = linear(x2d, ffn["w1"], ffn["b1"], activation="relu")
    x2d = linear(h, ffn["w2"], ffn["b2"],
                 residual=x2d, gamma=p["norm3_g"], beta=p["norm3_b"])
    return x2d.reshape(B, S, D)


def make_positional_encoding(d_model, max_seq_length):
    pos = jnp.arange(max_seq_length, dtype=jnp.float32)[:, None]
    div = jnp.exp(jnp.arange(0, d_model, 2, dtype=jnp.float32)
                  * (-math.log(10000.0) / d_model))
    pe = jnp.zeros((max_seq_length, d_model), jnp.float32)
    pe = pe.at[:, 0::2].set(jnp.sin(pos * div))
    pe = pe.at[:, 1::2].set(jnp.cos(pos * div))
    return pe


def transformer_forward(params, src, tgt, cfg, src_mask=None, tgt_mask=None):
    d_model, nhead, vocab = cfg["d_model"], cfg["nhead"], cfg["vocab_size"]

    # Embedding gather + positional encoding kept as host-side XLA ops (f32),
    # then cast once to bf16 for all kernel traffic.
    src_emb = jnp.take(params["enc_emb"], src, axis=0) * math.sqrt(d_model)
    src_emb = (src_emb + params["pe"][: src.shape[1], :]).astype(jnp.bfloat16)
    tgt_emb = jnp.take(params["dec_emb"], tgt, axis=0) * math.sqrt(d_model)
    tgt_emb = (tgt_emb + params["pe"][: tgt.shape[1], :]).astype(jnp.bfloat16)

    memory = src_emb
    for lp in params["encoder_layers"]:
        memory = encoder_layer(lp, memory, nhead, src_mask)

    output = tgt_emb
    for lp in params["decoder_layers"]:
        output = decoder_layer(lp, output, memory, nhead, tgt_mask, src_mask)

    B, St, D = output.shape
    # Vocab projection at a lane-dense, 128-padded width; slice padding afterwards.
    logits = linear(output.reshape(B * St, D), params["fc_w_pad"], params["fc_b_pad"],
                    out_dtype=jnp.float32)
    return logits.reshape(B, St, -1)[:, :, :vocab]


# ----------------------------------------------------------------------------
# Deterministic parameter initialization (weights stored bf16, biases/LN f32)
# ----------------------------------------------------------------------------

def _init_lin(key, d_in, d_out, scale=0.02):
    w = (scale * jax.random.normal(key, (d_in, d_out), jnp.float32)).astype(jnp.bfloat16)
    b = jnp.zeros((d_out,), jnp.float32)
    return w, b


def _init_mha_self(key, d_model):
    k1, k2 = jax.random.split(key)
    wqkv, bqkv = _init_lin(k1, d_model, 3 * d_model)   # fused Q|K|V projection
    wo, bo = _init_lin(k2, d_model, d_model)
    return dict(wqkv=wqkv, bqkv=bqkv, wo=wo, bo=bo)


def _init_mha_cross(key, d_model):
    k1, k2, k3 = jax.random.split(key, 3)
    wq, bq = _init_lin(k1, d_model, d_model)
    wkv, bkv = _init_lin(k2, d_model, 2 * d_model)     # fused K|V projection
    wo, bo = _init_lin(k3, d_model, d_model)
    return dict(wq=wq, bq=bq, wkv=wkv, bkv=bkv, wo=wo, bo=bo)


def _init_ffn(key, d_model, d_ff):
    k1, k2 = jax.random.split(key)
    w1, b1 = _init_lin(k1, d_model, d_ff)
    w2, b2 = _init_lin(k2, d_ff, d_model)
    return dict(w1=w1, b1=b1, w2=w2, b2=b2)


def _init_enc_layer(key, d_model, d_ff):
    k1, k2 = jax.random.split(key)
    return dict(
        self_attn=_init_mha_self(k1, d_model),
        ffn=_init_ffn(k2, d_model, d_ff),
        norm1_g=jnp.ones((d_model,), jnp.float32), norm1_b=jnp.zeros((d_model,), jnp.float32),
        norm2_g=jnp.ones((d_model,), jnp.float32), norm2_b=jnp.zeros((d_model,), jnp.float32),
    )


def _init_dec_layer(key, d_model, d_ff):
    k1, k2, k3 = jax.random.split(key, 3)
    return dict(
        self_attn=_init_mha_self(k1, d_model),
        cross_attn=_init_mha_cross(k2, d_model),
        ffn=_init_ffn(k3, d_model, d_ff),
        norm1_g=jnp.ones((d_model,), jnp.float32), norm1_b=jnp.zeros((d_model,), jnp.float32),
        norm2_g=jnp.ones((d_model,), jnp.float32), norm2_b=jnp.zeros((d_model,), jnp.float32),
        norm3_g=jnp.ones((d_model,), jnp.float32), norm3_b=jnp.zeros((d_model,), jnp.float32),
    )


def init_params(key, cfg):
    d_model, d_ff, vocab = cfg["d_model"], cfg["dim_feedforward"], cfg["vocab_size"]
    vocab_pad = ((vocab + 127) // 128) * 128
    n_keys = 3 + cfg["num_encoder_layers"] + cfg["num_decoder_layers"]
    keys = jax.random.split(key, n_keys)
    enc_emb = 0.02 * jax.random.normal(keys[0], (vocab, d_model), jnp.float32)
    dec_emb = 0.02 * jax.random.normal(keys[1], (vocab, d_model), jnp.float32)
    fc_w, fc_b = _init_lin(keys[2], d_model, vocab)
    fc_w_pad = jnp.zeros((d_model, vocab_pad), jnp.bfloat16).at[:, :vocab].set(fc_w)
    fc_b_pad = jnp.zeros((vocab_pad,), jnp.float32).at[:vocab].set(fc_b)
    enc_layers = [_init_enc_layer(keys[3 + i], d_model, d_ff)
                  for i in range(cfg["num_encoder_layers"])]
    dec_layers = [_init_dec_layer(keys[3 + cfg["num_encoder_layers"] + i], d_model, d_ff)
                  for i in range(cfg["num_decoder_layers"])]
    return dict(
        enc_emb=enc_emb, dec_emb=dec_emb,
        pe=make_positional_encoding(d_model, cfg["max_seq_length"]),
        encoder_layers=enc_layers, decoder_layers=dec_layers,
        fc_w_pad=fc_w_pad, fc_b_pad=fc_b_pad,
    )


# ----------------------------------------------------------------------------
# Main
# ----------------------------------------------------------------------------

if __name__ == "__main__":
    # TODO(synk): dropout layers are identity (eval semantics); training-mode dropout
    # is not reproduced.
    cfg = dict(
        d_model=32, nhead=4, num_encoder_layers=2, num_decoder_layers=2,
        dim_feedforward=64, max_seq_length=16, vocab_size=50, dropout=0.1,
    )
    key = jax.random.PRNGKey(0)
    kp, ks, kt = jax.random.split(key, 3)

    params = init_params(kp, cfg)

    batch, src_len, tgt_len = 2, 8, 8
    src = jax.random.randint(ks, (batch, src_len), 1, cfg["vocab_size"], dtype=jnp.int32)
    tgt = jax.random.randint(kt, (batch, tgt_len), 1, cfg["vocab_size"], dtype=jnp.int32)

    fwd = jax.jit(lambda p, s, t: transformer_forward(p, s, t, cfg))
    logits = jax.block_until_ready(fwd(params, src, tgt))

    assert logits.shape == (batch, tgt_len, cfg["vocab_size"]), logits.shape
    assert bool(jnp.all(jnp.isfinite(logits)))
    print("KERNEL_OK")
</pallas_src>

<mosaic_0001>
module attributes {stable_mosaic.version = 11 : i64} {
  func.func @_linear_kernel(%arg0: i32, %arg1: i32, %arg2: i32, %arg3: memref<16x32xbf16, #tpu.memory_space<vmem>>, %arg4: memref<32x64xbf16, #tpu.memory_space<vmem>>, %arg5: memref<1x64xf32, #tpu.memory_space<vmem>>, %arg6: memref<16x64xbf16, #tpu.memory_space<vmem>>, %arg7: memref<16x64xf32, #tpu.memory_space<vmem>>) attributes {dimension_semantics = [#tpu.dimension_semantics<parallel>, #tpu.dimension_semantics<parallel>, #tpu.dimension_semantics<arbitrary>], iteration_bounds = array<i64: 1, 1, 1>, scalar_prefetch = 0 : i64, scratch_operands = 1 : i64, tpu.core_type = #tpu.core_type<tc>, window_params = [{transform_indices = @transform_0, window_bounds = array<i64: 16, 32>}, {transform_indices = @transform_1, window_bounds = array<i64: 32, 64>}, {transform_indices = @transform_2, window_bounds = array<i64: 1, 64>}, {transform_indices = @transform_3, window_bounds = array<i64: 16, 64>}]} {
    %c0_i32 = arith.constant 0 : i32
    %0 = arith.cmpi eq, %arg2, %c0_i32 : i32
    %1 = arith.extui %0 : i1 to i32
    %c0_i32_0 = arith.constant 0 : i32
    %2 = arith.cmpi ne, %1, %c0_i32_0 : i32
    scf.if %2 {
      %cst_10 = arith.constant 0.000000e+00 : f32
      %12 = vector.broadcast %cst_10 : f32 to vector<16x64xf32>
      %c0_11 = arith.constant 0 : index
      %c0_12 = arith.constant 0 : index
      %13 = vector.load %arg7[%c0_11, %c0_12] : memref<16x64xf32, #tpu.memory_space<vmem>>, vector<16x64xf32>
      tpu.vector_store %arg7[%c0_11, %c0_12], %12 {strides = array<i32>} : memref<16x64xf32, #tpu.memory_space<vmem>>, vector<16x64xf32>,
    } else {
    }
    %c0 = arith.constant 0 : index
    %c0_1 = arith.constant 0 : index
    %3 = vector.load %arg7[%c0, %c0_1] : memref<16x64xf32, #tpu.memory_space<vmem>>, vector<16x64xf32>
    %c0_2 = arith.constant 0 : index
    %c0_3 = arith.constant 0 : index
    %4 = vector.load %arg3[%c0_2, %c0_3] : memref<16x32xbf16, #tpu.memory_space<vmem>>, vector<16x32xbf16>
    %c0_4 = arith.constant 0 : index
    %c0_5 = arith.constant 0 : index
    %5 = vector.load %arg4[%c0_4, %c0_5] : memref<32x64xbf16, #tpu.memory_space<vmem>>, vector<32x64xbf16>
    %cst = arith.constant dense<0.000000e+00> : vector<16x64xf32>
    %6 = tpu.matmul %4, %5, %cst {dimension_numbers = #tpu.dot_dimension_numbers<[1], [0], [0], [1], [0, 0, 1, 1], [], []>} : vector<16x32xbf16>, vector<32x64xbf16>, vector<16x64xf32> -> vector<16x64xf32>
    %7 = arith.addf %3, %6 : vector<16x64xf32>
    %c0_6 = arith.constant 0 : index
    %c0_7 = arith.constant 0 : index
    %8 = vector.load %arg7[%c0_6, %c0_7] : memref<16x64xf32, #tpu.memory_space<vmem>>, vector<16x64xf32>
    tpu.vector_store %arg7[%c0_6, %c0_7], %7 {strides = array<i32>} : memref<16x64xf32, #tpu.memory_space<vmem>>, vector<16x64xf32>,
    %c0_i32_8 = arith.constant 0 : i32
    %9 = arith.cmpi eq, %arg2, %c0_i32_8 : i32
    %10 = arith.extui %9 : i1 to i32
    %c0_i32_9 = arith.constant 0 : i32
    %11 = arith.cmpi ne, %10, %c0_i32_9 : i32
    scf.if %11 {
      %c0_10 = arith.constant 0 : index
      %c0_11 = arith.constant 0 : index
      %12 = vector.load %arg7[%c0_10, %c0_11] : memref<16x64xf32, #tpu.memory_space<vmem>>, vector<16x64xf32>
      %c0_12 = arith.constant 0 : index
      %c0_13 = arith.constant 0 : index
      %13 = vector.load %arg5[%c0_12, %c0_13] : memref<1x64xf32, #tpu.memory_space<vmem>>, vector<1x64xf32>
      %14 = vector.broadcast %13 : vector<1x64xf32> to vector<16x64xf32>
      %15 = arith.addf %12, %14 : vector<16x64xf32>
      %cst_14 = arith.constant 0.000000e+00 : f32
      %16 = vector.broadcast %cst_14 : f32 to vector<16x64xf32>
      %17 = arith.maximumf %15, %16 : vector<16x64xf32>
      %18 = arith.truncf %17 : vector<16x64xf32> to vector<16x64xbf16>
      %c0_15 = arith.constant 0 : index
      %c0_16 = arith.constant 0 : index
      %19 = vector.load %arg6[%c0_15, %c0_16] : memref<16x64xbf16, #tpu.memory_space<vmem>>, vector<16x64xbf16>
      tpu.vector_store %arg6[%c0_15, %c0_16], %18 {strides = array<i32>} : memref<16x64xbf16, #tpu.memory_space<vmem>>, vector<16x64xbf16>,
    } else {
    }
    return
  }
  func.func @transform_0(%arg0: i32, %arg1: i32, %arg2: i32) -> (i32, i32) {
    %c0_i32 = arith.constant 0 : i32
    return %arg0, %arg2 : i32, i32
  }
  func.func @transform_1(%arg0: i32, %arg1: i32, %arg2: i32) -> (i32, i32) {
    %c0_i32 = arith.constant 0 : i32
    return %arg2, %arg1 : i32, i32
  }
  func.func @transform_2(%arg0: i32, %arg1: i32, %arg2: i32) -> (i32, i32) {
    %c0_i32 = arith.constant 0 : i32
    %c0_i32_0 = arith.constant 0 : i32
    return %c0_i32, %arg1 : i32, i32
  }
  func.func @transform_3(%arg0: i32, %arg1: i32, %arg2: i32) -> (i32, i32) {
    %c0_i32 = arith.constant 0 : i32
    return %arg0, %arg1 : i32, i32
  }
}

module attributes {stable_mosaic.version = 11 : i64} {
  func.func @_linear_ln_kernel(%arg0: i32, %arg1: i32, %arg2: i32, %arg3: memref<16x32xbf16, #tpu.memory_space<vmem>>, %arg4: memref<32x32xbf16, #tpu.memory_space<vmem>>, %arg5: memref<1x32xf32, #tpu.memory_space<vmem>>, %arg6: memref<16x32xbf16, #tpu.memory_space<vmem>>, %arg7: memref<1x32xf32, #tpu.memory_space<vmem>>, %arg8: memref<1x32xf32, #tpu.memory_space<vmem>>, %arg9: memref<16x32xbf16, #tpu.memory_space<vmem>>, %arg10: memref<16x32xf32, #tpu.memory_space<vmem>>) attributes {dimension_semantics = [#tpu.dimension_semantics<parallel>, #tpu.dimension_semantics<parallel>, #tpu.dimension_semantics<arbitrary>], iteration_bounds = array<i64: 1, 1, 1>, scalar_prefetch = 0 : i64, scratch_operands = 1 : i64, tpu.core_type = #tpu.core_type<tc>, window_params = [{transform_indices = @transform_0, window_bounds = array<i64: 16, 32>}, {transform_indices = @transform_1, window_bounds = array<i64: 32, 32>}, {transform_indices = @transform_2, window_bounds = array<i64: 1, 32>}, {transform_indices = @transform_3, window_bounds = array<i64: 16, 32>}, {transform_indices = @transform_4, window_bounds = array<i64: 1, 32>}, {transform_indices = @transform_5, window_bounds = array<i64: 1, 32>}, {transform_indices = @transform_6, window_bounds = array<i64: 16, 32>}]} {
    %c0_i32 = arith.constant 0 : i32
    %0 = arith.cmpi eq, %arg2, %c0_i32 : i32
    %1 = arith.extui %0 : i1 to i32
    %c0_i32_0 = arith.constant 0 : i32
    %2 = arith.cmpi ne, %1, %c0_i32_0 : i32
    scf.if %2 {
      %cst_10 = arith.constant 0.000000e+00 : f32
      %12 = vector.broadcast %cst_10 : f32 to vector<16x32xf32>
      %c0_11 = arith.constant 0 : index
      %c0_12 = arith.constant 0 : index
      %13 = vector.load %arg10[%c0_11, %c0_12] : memref<16x32xf32, #tpu.memory_space<vmem>>, vector<16x32xf32>
      tpu.vector_store %arg10[%c0_11, %c0_12], %12 {strides = array<i32>} : memref<16x32xf32, #tpu.memory_space<vmem>>, vector<16x32xf32>,
    } else {
    }
    %c0 = arith.constant 0 : index
    %c0_1 = arith.constant 0 : index
    %3 = vector.load %arg10[%c0, %c0_1] : memref<16x32xf32, #tpu.memory_space<vmem>>, vector<16x32xf32>
    %c0_2 = arith.constant 0 : index
    %c0_3 = arith.constant 0 : index
    %4 = vector.load %arg3[%c0_2, %c0_3] : memref<16x32xbf16, #tpu.memory_space<vmem>>, vector<16x32xbf16>
    %c0_4 = arith.constant 0 : index
    %c0_5 = arith.constant 0 : index
    %5 = vector.load %arg4[%c0_4, %c0_5] : memref<32x32xbf16, #tpu.memory_space<vmem>>, vector<32x32xbf16>
    %cst = arith.constant dense<0.000000e+00> : vector<16x32xf32>
    %6 = tpu.matmul %4, %5, %cst {dimension_numbers = #tpu.dot_dimension_numbers<[1], [0], [0], [1], [0, 0, 1, 1], [], []>} : vector<16x32xbf16>, vector<32x32xbf16>, vector<16x32xf32> -> vector<16x32xf32>
    %7 = arith.addf %3, %6 : vector<16x32xf32>
    %c0_6 = arith.constant 0 : index
    %c0_7 = arith.constant 0 : index
    %8 = vector.load %arg10[%c0_6, %c0_7] : memref<16x32xf32, #tpu.memory_space<vmem>>, vector<16x32xf32>
    tpu.vector_store %arg10[%c0_6, %c0_7], %7 {strides = array<i32>} : memref<16x32xf32, #tpu.memory_space<vmem>>, vector<16x32xf32>,
    %c0_i32_8 = arith.constant 0 : i32
    %9 = arith.cmpi eq, %arg2, %c0_i32_8 : i32
    %10 = arith.extui %9 : i1 to i32
    %c0_i32_9 = arith.constant 0 : i32
    %11 = arith.cmpi ne, %10, %c0_i32_9 : i32
    scf.if %11 {
      %c0_10 = arith.constant 0 : index
      %c0_11 = arith.constant 0 : index
      %12 = vector.load %arg6[%c0_10, %c0_11] : memref<16x32xbf16, #tpu.memory_space<vmem>>, vector<16x32xbf16>
      %13 = arith.extf %12 : vector<16x32xbf16> to vector<16x32xf32>
      %c0_12 = arith.constant 0 : index
      %c0_13 = arith.constant 0 : index
      %14 = vector.load %arg10[%c0_12, %c0_13] : memref<16x32xf32, #tpu.memory_space<vmem>>, vector<16x32xf32>
      %15 = arith.addf %13, %14 : vector<16x32xf32>
      %c0_14 = arith.constant 0 : index
      %c0_15 = arith.constant 0 : index
      %16 = vector.load %arg5[%c0_14, %c0_15] : memref<1x32xf32, #tpu.memory_space<vmem>>, vector<1x32xf32>
      %17 = vector.broadcast %16 : vector<1x32xf32> to vector<16x32xf32>
      %18 = arith.addf %15, %17 : vector<16x32xf32>
      %cst_16 = arith.constant dense<0.000000e+00> : vector<16xf32>
      %19 = vector.multi_reduction <add>, %18, %cst_16 [1] : vector<16x32xf32> to vector<16xf32>
      %20 = vector.shape_cast %19 : vector<16xf32> to vector<16x1xf32>
      %cst_17 = arith.constant 3.200000e+01 : f32
      %21 = vector.broadcast %cst_17 : f32 to vector<16x1xf32>
      %22 = arith.divf %20, %21 : vector<16x1xf32>
      %23 = vector.broadcast %22 : vector<16x1xf32> to vector<16x32xf32>
      %24 = arith.subf %18, %23 : vector<16x32xf32>
      %25 = arith.mulf %24, %24 : vector<16x32xf32>
      %cst_18 = arith.constant dense<0.000000e+00> : vector<16xf32>
      %26 = vector.multi_reduction <add>, %25, %cst_18 [1] : vector<16x32xf32> to vector<16xf32>
      %27 = vector.shape_cast %26 : vector<16xf32> to vector<16x1xf32>
      %cst_19 = arith.constant 3.200000e+01 : f32
      %28 = vector.broadcast %cst_19 : f32 to vector<16x1xf32>
      %29 = arith.divf %27, %28 : vector<16x1xf32>
      %30 = vector.broadcast %22 : vector<16x1xf32> to vector<16x32xf32>
      %31 = arith.subf %18, %30 : vector<16x32xf32>
      %cst_20 = arith.constant 9.99999974E-6 : f32
      %32 = vector.broadcast %cst_20 : f32 to vector<16x1xf32>
      %33 = arith.addf %29, %32 : vector<16x1xf32>
      %34 = math.rsqrt %33 : vector<16x1xf32>
      %35 = vector.broadcast %34 : vector<16x1xf32> to vector<16x32xf32>
      %36 = arith.mulf %31, %35 : vector<16x32xf32>
      %c0_21 = arith.constant 0 : index
      %c0_22 = arith.constant 0 : index
      %37 = vector.load %arg7[%c0_21, %c0_22] : memref<1x32xf32, #tpu.memory_space<vmem>>, vector<1x32xf32>
      %38 = vector.broadcast %37 : vector<1x32xf32> to vector<16x32xf32>
      %39 = arith.mulf %36, %38 : vector<16x32xf32>
      %c0_23 = arith.constant 0 : index
      %c0_24 = arith.constant 0 : index
      %40 = vector.load %arg8[%c0_23, %c0_24] : memref<1x32xf32, #tpu.memory_space<vmem>>, vector<1x32xf32>
      %41 = vector.broadcast %40 : vector<1x32xf32> to vector<16x32xf32>
      %42 = arith.addf %39, %41 : vector<16x32xf32>
      %43 = arith.truncf %42 : vector<16x32xf32> to vector<16x32xbf16>
      %c0_25 = arith.constant 0 : index
      %c0_26 = arith.constant 0 : index
      %44 = vector.load %arg9[%c0_25, %c0_26] : memref<16x32xbf16, #tpu.memory_space<vmem>>, vector<16x32xbf16>
      tpu.vector_store %arg9[%c0_25, %c0_26], %43 {strides = array<i32>} : memref<16x32xbf16, #tpu.memory_space<vmem>>, vector<16x32xbf16>,
    } else {
    }
    return
  }
  func.func @transform_0(%arg0: i32, %arg1: i32, %arg2: i32) -> (i32, i32) {
    %c0_i32 = arith.constant 0 : i32
    return %arg0, %arg2 : i32, i32
  }
  func.func @transform_1(%arg0: i32, %arg1: i32, %arg2: i32) -> (i32, i32) {
    %c0_i32 = arith.constant 0 : i32
    return %arg2, %arg1 : i32, i32
  }
  func.func @transform_2(%arg0: i32, %arg1: i32, %arg2: i32) -> (i32, i32) {
    %c0_i32 = arith.constant 0 : i32
    %c0_i32_0 = arith.constant 0 : i32
    return %c0_i32, %arg1 : i32, i32
  }
  func.func @transform_3(%arg0: i32, %arg1: i32, %arg2: i32) -> (i32, i32) {
    %c0_i32 = arith.constant 0 : i32
    return %arg0, %arg1 : i32, i32
  }
  func.func @transform_4(%arg0: i32, %arg1: i32, %arg2: i32) -> (i32, i32) {
    %c0_i32 = arith.constant 0 : i32
    %c0_i32_0 = arith.constant 0 : i32
    return %c0_i32, %arg1 : i32, i32
  }
  func.func @transform_5(%arg0: i32, %arg1: i32, %arg2: i32) -> (i32, i32) {
    %c0_i32 = arith.constant 0 : i32
    %c0_i32_0 = arith.constant 0 : i32
    return %c0_i32, %arg1 : i32, i32
  }
  func.func @transform_6(%arg0: i32, %arg1: i32, %arg2: i32) -> (i32, i32) {
    %c0_i32 = arith.constant 0 : i32
    return %arg0, %arg1 : i32, i32
  }
}

module attributes {stable_mosaic.version = 11 : i64} {
  func.func @_linear_kernel(%arg0: i32, %arg1: i32, %arg2: i32, %arg3: memref<16x32xbf16, #tpu.memory_space<vmem>>, %arg4: memref<32x96xbf16, #tpu.memory_space<vmem>>, %arg5: memref<1x96xf32, #tpu.memory_space<vmem>>, %arg6: memref<16x96xbf16, #tpu.memory_space<vmem>>, %arg7: memref<16x96xf32, #tpu.memory_space<vmem>>) attributes {dimension_semantics = [#tpu.dimension_semantics<parallel>, #tpu.dimension_semantics<parallel>, #tpu.dimension_semantics<arbitrary>], iteration_bounds = array<i64: 1, 1, 1>, scalar_prefetch = 0 : i64, scratch_operands = 1 : i64, tpu.core_type = #tpu.core_type<tc>, window_params = [{transform_indices = @transform_0, window_bounds = array<i64: 16, 32>}, {transform_indices = @transform_1, window_bounds = array<i64: 32, 96>}, {transform_indices = @transform_2, window_bounds = array<i64: 1, 96>}, {transform_indices = @transform_3, window_bounds = array<i64: 16, 96>}]} {
    %c0_i32 = arith.constant 0 : i32
    %0 = arith.cmpi eq, %arg2, %c0_i32 : i32
    %1 = arith.extui %0 : i1 to i32
    %c0_i32_0 = arith.constant 0 : i32
    %2 = arith.cmpi ne, %1, %c0_i32_0 : i32
    scf.if %2 {
      %cst_10 = arith.constant 0.000000e+00 : f32
      %12 = vector.broadcast %cst_10 : f32 to vector<16x96xf32>
      %c0_11 = arith.constant 0 : index
      %c0_12 = arith.constant 0 : index
      %13 = vector.load %arg7[%c0_11, %c0_12] : memref<16x96xf32, #tpu.memory_space<vmem>>, vector<16x96xf32>
      tpu.vector_store %arg7[%c0_11, %c0_12], %12 {strides = array<i32>} : memref<16x96xf32, #tpu.memory_space<vmem>>, vector<16x96xf32>,
    } else {
    }
    %c0 = arith.constant 0 : index
    %c0_1 = arith.constant 0 : index
    %3 = vector.load %arg7[%c0, %c0_1] : memref<16x96xf32, #tpu.memory_space<vmem>>, vector<16x96xf32>
    %c0_2 = arith.constant 0 : index
    %c0_3 = arith.constant 0 : index
    %4 = vector.load %arg3[%c0_2, %c0_3] : memref<16x32xbf16, #tpu.memory_space<vmem>>, vector<16x32xbf16>
    %c0_4 = arith.constant 0 : index
    %c0_5 = arith.constant 0 : index
    %5 = vector.load %arg4[%c0_4, %c0_5] : memref<32x96xbf16, #tpu.memory_space<vmem>>, vector<32x96xbf16>
    %cst = arith.constant dense<0.000000e+00> : vector<16x96xf32>
    %6 = tpu.matmul %4, %5, %cst {dimension_numbers = #tpu.dot_dimension_numbers<[1], [0], [0], [1], [0, 0, 1, 1], [], []>} : vector<16x32xbf16>, vector<32x96xbf16>, vector<16x96xf32> -> vector<16x96xf32>
    %7 = arith.addf %3, %6 : vector<16x96xf32>
    %c0_6 = arith.constant 0 : index
    %c0_7 = arith.constant 0 : index
    %8 = vector.load %arg7[%c0_6, %c0_7] : memref<16x96xf32, #tpu.memory_space<vmem>>, vector<16x96xf32>
    tpu.vector_store %arg7[%c0_6, %c0_7], %7 {strides = array<i32>} : memref<16x96xf32, #tpu.memory_space<vmem>>, vector<16x96xf32>,
    %c0_i32_8 = arith.constant 0 : i32
    %9 = arith.cmpi eq, %arg2, %c0_i32_8 : i32
    %10 = arith.extui %9 : i1 to i32
    %c0_i32_9 = arith.constant 0 : i32
    %11 = arith.cmpi ne, %10, %c0_i32_9 : i32
    scf.if %11 {
      %c0_10 = arith.constant 0 : index
      %c0_11 = arith.constant 0 : index
      %12 = vector.load %arg7[%c0_10, %c0_11] : memref<16x96xf32, #tpu.memory_space<vmem>>, vector<16x96xf32>
      %c0_12 = arith.constant 0 : index
      %c0_13 = arith.constant 0 : index
      %13 = vector.load %arg5[%c0_12, %c0_13] : memref<1x96xf32, #tpu.memory_space<vmem>>, vector<1x96xf32>
      %14 = vector.broadcast %13 : vector<1x96xf32> to vector<16x96xf32>
      %15 = arith.addf %12, %14 : vector<16x96xf32>
      %16 = arith.truncf %15 : vector<16x96xf32> to vector<16x96xbf16>
      %c0_14 = arith.constant 0 : index
      %c0_15 = arith.constant 0 : index
      %17 = vector.load %arg6[%c0_14, %c0_15] : memref<16x96xbf16, #tpu.memory_space<vmem>>, vector<16x96xbf16>
      tpu.vector_store %arg6[%c0_14, %c0_15], %16 {strides = array<i32>} : memref<16x96xbf16, #tpu.memory_space<vmem>>, vector<16x96xbf16>,
    } else {
    }
    return
  }
  func.func @transform_0(%arg0: i32, %arg1: i32, %arg2: i32) -> (i32, i32) {
    %c0_i32 = arith.constant 0 : i32
    return %arg0, %arg2 : i32, i32
  }
  func.func @transform_1(%arg0: i32, %arg1: i32, %arg2: i32) -> (i32, i32) {
    %c0_i32 = arith.constant 0 : i32
    return %arg2, %arg1 : i32, i32
  }
  func.func @transform_2(%arg0: i32, %arg1: i32, %arg2: i32) -> (i32, i32) {
    %c0_i32 = arith.constant 0 : i32
    %c0_i32_0 = arith.constant 0 : i32
    return %c0_i32, %arg1 : i32, i32
  }
  func.func @transform_3(%arg0: i32, %arg1: i32, %arg2: i32) -> (i32, i32) {
    %c0_i32 = arith.constant 0 : i32
    return %arg0, %arg1 : i32, i32
  }
}

module attributes {stable_mosaic.version = 11 : i64} {
  func.func @_attention_kernel(%arg0: i32, %arg1: i32, %arg2: memref<1x8x96xbf16, #tpu.memory_space<vmem>>, %arg3: memref<1x8x96xbf16, #tpu.memory_space<vmem>>, %arg4: memref<1x8x32xbf16, #tpu.memory_space<vmem>>) attributes {dimension_semantics = [#tpu.dimension_semantics<parallel>, #tpu.dimension_semantics<parallel>], iteration_bounds = array<i64: 2, 1>, scalar_prefetch = 0 : i64, scratch_operands = 0 : i64, tpu.core_type = #tpu.core_type<tc>, window_params = [{transform_indices = @transform_0, window_bounds = array<i64: 1, 8, 96>}, {transform_indices = @transform_1, window_bounds = array<i64: 1, 8, 96>}, {transform_indices = @transform_2, window_bounds = array<i64: 1, 8, 32>}]} {
    %c0 = arith.constant 0 : index
    %c0_0 = arith.constant 0 : index
    %c0_1 = arith.constant 0 : index
    %0 = vector.load %arg2[%c0, %c0_0, %c0_1] : memref<1x8x96xbf16, #tpu.memory_space<vmem>>, vector<1x8x96xbf16>
    %1 = vector.shape_cast %0 : vector<1x8x96xbf16> to vector<8x96xbf16>
    %c0_2 = arith.constant 0 : index
    %c0_3 = arith.constant 0 : index
    %c0_4 = arith.constant 0 : index
    %2 = vector.load %arg3[%c0_2, %c0_3, %c0_4] : memref<1x8x96xbf16, #tpu.memory_space<vmem>>, vector<1x8x96xbf16>
    %3 = vector.shape_cast %2 : vector<1x8x96xbf16> to vector<8x96xbf16>
    %4 = vector.extract_strided_slice %1 {offsets = [0, 0], sizes = [8, 32], strides = [1, 1]} : vector<8x96xbf16> to vector<8x32xbf16>
    %5 = vector.extract_strided_slice %3 {offsets = [0, 32], sizes = [8, 32], strides = [1, 1]} : vector<8x96xbf16> to vector<8x32xbf16>
    %6 = vector.extract_strided_slice %3 {offsets = [0, 64], sizes = [8, 32], strides = [1, 1]} : vector<8x96xbf16> to vector<8x32xbf16>
    %7 = vector.extract_strided_slice %4 {offsets = [0, 0], sizes = [8, 8], strides = [1, 1]} : vector<8x32xbf16> to vector<8x8xbf16>
    %8 = vector.extract_strided_slice %5 {offsets = [0, 0], sizes = [8, 8], strides = [1, 1]} : vector<8x32xbf16> to vector<8x8xbf16>
    %cst = arith.constant dense<0.000000e+00> : vector<8x8xf32>
    %9 = tpu.matmul %7, %8, %cst {dimension_numbers = #tpu.dot_dimension_numbers<[1], [1], [0], [0], [0, 0, 1, 0], [], []>} : vector<8x8xbf16>, vector<8x8xbf16>, vector<8x8xf32> -> vector<8x8xf32>
    %cst_5 = arith.constant 0.353553385 : f32
    %10 = vector.broadcast %cst_5 : f32 to vector<8x8xf32>
    %11 = arith.mulf %9, %10 : vector<8x8xf32>
    %cst_6 = arith.constant dense<0xFF800000> : vector<8xf32>
    %12 = vector.multi_reduction <maximumf>, %11, %cst_6 [1] : vector<8x8xf32> to vector<8xf32>
    %13 = vector.shape_cast %12 : vector<8xf32> to vector<8x1xf32>
    %14 = vector.broadcast %13 : vector<8x1xf32> to vector<8x8xf32>
    %15 = arith.subf %11, %14 : vector<8x8xf32>
    %16 = math.exp %15 : vector<8x8xf32>
    %cst_7 = arith.constant dense<0.000000e+00> : vector<8xf32>
    %17 = vector.multi_reduction <add>, %16, %cst_7 [1] : vector<8x8xf32> to vector<8xf32>
    %18 = vector.shape_cast %17 : vector<8xf32> to vector<8x1xf32>
    %19 = tpu.reciprocal %18 {approx = true} : vector<8x1xf32> -> vector<8x1xf32>
    %20 = vector.broadcast %19 : vector<8x1xf32> to vector<8x8xf32>
    %21 = arith.mulf %16, %20 : vector<8x8xf32>
    %22 = arith.truncf %21 : vector<8x8xf32> to vector<8x8xbf16>
    %23 = vector.extract_strided_slice %6 {offsets = [0, 0], sizes = [8, 8], strides = [1, 1]} : vector<8x32xbf16> to vector<8x8xbf16>
    %cst_8 = arith.constant dense<0.000000e+00> : vector<8x8xf32>
    %24 = tpu.matmul %22, %23, %cst_8 {dimension_numbers = #tpu.dot_dimension_numbers<[1], [0], [0], [1], [0, 0, 1, 1], [], []>} : vector<8x8xbf16>, vector<8x8xbf16>, vector<8x8xf32> -> vector<8x8xf32>
    %25 = vector.extract_strided_slice %4 {offsets = [0, 8], sizes = [8, 8], strides = [1, 1]} : vector<8x32xbf16> to vector<8x8xbf16>
    %26 = vector.extract_strided_slice %5 {offsets = [0, 8], sizes = [8, 8], strides = [1, 1]} : vector<8x32xbf16> to vector<8x8xbf16>
    %cst_9 = arith.constant dense<0.000000e+00> : vector<8x8xf32>
    %27 = tpu.matmul %25, %26, %cst_9 {dimension_numbers = #tpu.dot_dimension_numbers<[1], [1], [0], [0], [0, 0, 1, 0], [], []>} : vector<8x8xbf16>, vector<8x8xbf16>, vector<8x8xf32> -> vector<8x8xf32>
    %cst_10 = arith.constant 0.353553385 : f32
    %28 = vector.broadcast %cst_10 : f32 to vector<8x8xf32>
    %29 = arith.mulf %27, %28 : vector<8x8xf32>
    %cst_11 = arith.constant dense<0xFF800000> : vector<8xf32>
    %30 = vector.multi_reduction <maximumf>, %29, %cst_11 [1] : vector<8x8xf32> to vector<8xf32>
    %31 = vector.shape_cast %30 : vector<8xf32> to vector<8x1xf32>
    %32 = vector.broadcast %31 : vector<8x1xf32> to vector<8x8xf32>
    %33 = arith.subf %29, %32 : vector<8x8xf32>
    %34 = math.exp %33 : vector<8x8xf32>
    %cst_12 = arith.constant dense<0.000000e+00> : vector<8xf32>
    %35 = vector.multi_reduction <add>, %34, %cst_12 [1] : vector<8x8xf32> to vector<8xf32>
    %36 = vector.shape_cast %35 : vector<8xf32> to vector<8x1xf32>
    %37 = tpu.reciprocal %36 {approx = true} : vector<8x1xf32> -> vector<8x1xf32>
    %38 = vector.broadcast %37 : vector<8x1xf32> to vector<8x8xf32>
    %39 = arith.mulf %34, %38 : vector<8x8xf32>
    %40 = arith.truncf %39 : vector<8x8xf32> to vector<8x8xbf16>
    %41 = vector.extract_strided_slice %6 {offsets = [0, 8], sizes = [8, 8], strides = [1, 1]} : vector<8x32xbf16> to vector<8x8xbf16>
    %cst_13 = arith.constant dense<0.000000e+00> : vector<8x8xf32>
    %42 = tpu.matmul %40, %41, %cst_13 {dimension_numbers = #tpu.dot_dimension_numbers<[1], [0], [0], [1], [0, 0, 1, 1], [], []>} : vector<8x8xbf16>, vector<8x8xbf16>, vector<8x8xf32> -> vector<8x8xf32>
    %43 = vector.extract_strided_slice %4 {offsets = [0, 16], sizes = [8, 8], strides = [1, 1]} : vector<8x32xbf16> to vector<8x8xbf16>
    %44 = vector.extract_strided_slice %5 {offsets = [0, 16], sizes = [8, 8], strides = [1, 1]} : vector<8x32xbf16> to vector<8x8xbf16>
    %cst_14 = arith.constant dense<0.000000e+00> : vector<8x8xf32>
    %45 = tpu.matmul %43, %44, %cst_14 {dimension_numbers = #tpu.dot_dimension_numbers<[1], [1], [0], [0], [0, 0, 1, 0], [], []>} : vector<8x8xbf16>, vector<8x8xbf16>, vector<8x8xf32> -> vector<8x8xf32>
    %cst_15 = arith.constant 0.353553385 : f32
    %46 = vector.broadcast %cst_15 : f32 to vector<8x8xf32>
    %47 = arith.mulf %45, %46 : vector<8x8xf32>
    %cst_16 = arith.constant dense<0xFF800000> : vector<8xf32>
    %48 = vector.multi_reduction <maximumf>, %47, %cst_16 [1] : vector<8x8xf32> to vector<8xf32>
    %49 = vector.shape_cast %48 : vector<8xf32> to vector<8x1xf32>
    %50 = vector.broadcast %49 : vector<8x1xf32> to vector<8x8xf32>
    %51 = arith.subf %47, %50 : vector<8x8xf32>
    %52 = math.exp %51 : vector<8x8xf32>
    %cst_17 = arith.constant dense<0.000000e+00> : vector<8xf32>
    %53 = vector.multi_reduction <add>, %52, %cst_17 [1] : vector<8x8xf32> to vector<8xf32>
    %54 = vector.shape_cast %53 : vector<8xf32> to vector<8x1xf32>
    %55 = tpu.reciprocal %54 {approx = true} : vector<8x1xf32> -> vector<8x1xf32>
    %56 = vector.broadcast %55 : vector<8x1xf32> to vector<8x8xf32>
    %57 = arith.mulf %52, %56 : vector<8x8xf32>
    %58 = arith.truncf %57 : vector<8x8xf32> to vector<8x8xbf16>
    %59 = vector.extract_strided_slice %6 {offsets = [0, 16], sizes = [8, 8], strides = [1, 1]} : vector<8x32xbf16> to vector<8x8xbf16>
    %cst_18 = arith.constant dense<0.000000e+00> : vector<8x8xf32>
    %60 = tpu.matmul %58, %59, %cst_18 {dimension_numbers = #tpu.dot_dimension_numbers<[1], [0], [0], [1], [0, 0, 1, 1], [], []>} : vector<8x8xbf16>, vector<8x8xbf16>, vector<8x8xf32> -> vector<8x8xf32>
    %61 = vector.extract_strided_slice %4 {offsets = [0, 24], sizes = [8, 8], strides = [1, 1]} : vector<8x32xbf16> to vector<8x8xbf16>
    %62 = vector.extract_strided_slice %5 {offsets = [0, 24], sizes = [8, 8], strides = [1, 1]} : vector<8x32xbf16> to vector<8x8xbf16>
    %cst_19 = arith.constant dense<0.000000e+00> : vector<8x8xf32>
    %63 = tpu.matmul %61, %62, %cst_19 {dimension_numbers = #tpu.dot_dimension_numbers<[1], [1], [0], [0], [0, 0, 1, 0], [], []>} : vector<8x8xbf16>, vector<8x8xbf16>, vector<8x8xf32> -> vector<8x8xf32>
    %cst_20 = arith.constant 0.353553385 : f32
    %64 = vector.broadcast %cst_20 : f32 to vector<8x8xf32>
    %65 = arith.mulf %63, %64 : vector<8x8xf32>
    %cst_21 = arith.constant dense<0xFF800000> : vector<8xf32>
    %66 = vector.multi_reduction <maximumf>, %65, %cst_21 [1] : vector<8x8xf32> to vector<8xf32>
    %67 = vector.shape_cast %66 : vector<8xf32> to vector<8x1xf32>
    %68 = vector.broadcast %67 : vector<8x1xf32> to vector<8x8xf32>
    %69 = arith.subf %65, %68 : vector<8x8xf32>
    %70 = math.exp %69 : vector<8x8xf32>
    %cst_22 = arith.constant dense<0.000000e+00> : vector<8xf32>
    %71 = vector.multi_reduction <add>, %70, %cst_22 [1] : vector<8x8xf32> to vector<8xf32>
    %72 = vector.shape_cast %71 : vector<8xf32> to vector<8x1xf32>
    %73 = tpu.reciprocal %72 {approx = true} : vector<8x1xf32> -> vector<8x1xf32>
    %74 = vector.broadcast %73 : vector<8x1xf32> to vector<8x8xf32>
    %75 = arith.mulf %70, %74 : vector<8x8xf32>
    %76 = arith.truncf %75 : vector<8x8xf32> to vector<8x8xbf16>
    %77 = vector.extract_strided_slice %6 {offsets = [0, 24], sizes = [8, 8], strides = [1, 1]} : vector<8x32xbf16> to vector<8x8xbf16>
    %cst_23 = arith.constant dense<0.000000e+00> : vector<8x8xf32>
    %78 = tpu.matmul %76, %77, %cst_23 {dimension_numbers = #tpu.dot_dimension_numbers<[1], [0], [0], [1], [0, 0, 1, 1], [], []>} : vector<8x8xbf16>, vector<8x8xbf16>, vector<8x8xf32> -> vector<8x8xf32>
    %79 = tpu.concatenate %24, %42, %60, %78 in 1 : vector<8x8xf32>, vector<8x8xf32>, vector<8x8xf32>, vector<8x8xf32> -> vector<8x32xf32>
    %80 = arith.truncf %79 : vector<8x32xf32> to vector<8x32xbf16>
    %c0_24 = arith.constant 0 : index
    %c0_25 = arith.constant 0 : index
    %c0_26 = arith.constant 0 : index
    %81 = vector.load %arg4[%c0_24, %c0_25, %c0_26] : memref<1x8x32xbf16, #tpu.memory_space<vmem>>, vector<1x8x32xbf16>
    %82 = vector.shape_cast %81 : vector<1x8x32xbf16> to vector<8x32xbf16>
    %83 = vector.shape_cast %80 : vector<8x32xbf16> to vector<1x8x32xbf16>
    tpu.vector_store %arg4[%c0_24, %c0_25, %c0_26], %83 {strides = array<i32>} : memref<1x8x32xbf16, #tpu.memory_space<vmem>>, vector<1x8x32xbf16>,
    return
  }
  func.func @transform_0(%arg0: i32, %arg1: i32) -> (i32, i32, i32) {
    %c0_i32 = arith.constant 0 : i32
    %c0_i32_0 = arith.constant 0 : i32
    return %arg0, %arg1, %c0_i32 : i32, i32, i32
  }
  func.func @transform_1(%arg0: i32, %arg1: i32) -> (i32, i32, i32) {
    %c0_i32 = arith.constant 0 : i32
    %c0_i32_0 = arith.constant 0 : i32
    %c0_i32_1 = arith.constant 0 : i32
    return %arg0, %c0_i32, %c0_i32_0 : i32, i32, i32
  }
  func.func @transform_2(%arg0: i32, %arg1: i32) -> (i32, i32, i32) {
    %c0_i32 = arith.constant 0 : i32
    %c0_i32_0 = arith.constant 0 : i32
    return %arg0, %arg1, %c0_i32 : i32, i32, i32
  }
}

module attributes {stable_mosaic.version = 11 : i64} {
  func.func @_linear_kernel(%arg0: i32, %arg1: i32, %arg2: i32, %arg3: memref<16x32xbf16, #tpu.memory_space<vmem>>, %arg4: memref<32x64xbf16, #tpu.memory_space<vmem>>, %arg5: memref<1x64xf32, #tpu.memory_space<vmem>>, %arg6: memref<16x64xbf16, #tpu.memory_space<vmem>>, %arg7: memref<16x64xf32, #tpu.memory_space<vmem>>) attributes {dimension_semantics = [#tpu.dimension_semantics<parallel>, #tpu.dimension_semantics<parallel>, #tpu.dimension_semantics<arbitrary>], iteration_bounds = array<i64: 1, 1, 1>, scalar_prefetch = 0 : i64, scratch_operands = 1 : i64, tpu.core_type = #tpu.core_type<tc>, window_params = [{transform_indices = @transform_0, window_bounds = array<i64: 16, 32>}, {transform_indices = @transform_1, window_bounds = array<i64: 32, 64>}, {transform_indices = @transform_2, window_bounds = array<i64: 1, 64>}, {transform_indices = @transform_3, window_bounds = array<i64: 16, 64>}]} {
    %c0_i32 = arith.constant 0 : i32
    %0 = arith.cmpi eq, %arg2, %c0_i32 : i32
    %1 = arith.extui %0 : i1 to i32
    %c0_i32_0 = arith.constant 0 : i32
    %2 = arith.cmpi ne, %1, %c0_i32_0 : i32
    scf.if %2 {
      %cst_10 = arith.constant 0.000000e+00 : f32
      %12 = vector.broadcast %cst_10 : f32 to vector<16x64xf32>
      %c0_11 = arith.constant 0 : index
      %c0_12 = arith.constant 0 : index
      %13 = vector.load %arg7[%c0_11, %c0_12] : memref<16x64xf32, #tpu.memory_space<vmem>>, vector<16x64xf32>
      tpu.vector_store %arg7[%c0_11, %c0_12], %12 {strides = array<i32>} : memref<16x64xf32, #tpu.memory_space<vmem>>, vector<16x64xf32>,
    } else {
    }
    %c0 = arith.constant 0 : index
    %c0_1 = arith.constant 0 : index
    %3 = vector.load %arg7[%c0, %c0_1] : memref<16x64xf32, #tpu.memory_space<vmem>>, vector<16x64xf32>
    %c0_2 = arith.constant 0 : index
    %c0_3 = arith.constant 0 : index
    %4 = vector.load %arg3[%c0_2, %c0_3] : memref<16x32xbf16, #tpu.memory_space<vmem>>, vector<16x32xbf16>
    %c0_4 = arith.constant 0 : index
    %c0_5 = arith.constant 0 : index
    %5 = vector.load %arg4[%c0_4, %c0_5] : memref<32x64xbf16, #tpu.memory_space<vmem>>, vector<32x64xbf16>
    %cst = arith.constant dense<0.000000e+00> : vector<16x64xf32>
    %6 = tpu.matmul %4, %5, %cst {dimension_numbers = #tpu.dot_dimension_numbers<[1], [0], [0], [1], [0, 0, 1, 1], [], []>} : vector<16x32xbf16>, vector<32x64xbf16>, vector<16x64xf32> -> vector<16x64xf32>
    %7 = arith.addf %3, %6 : vector<16x64xf32>
    %c0_6 = arith.constant 0 : index
    %c0_7 = arith.constant 0 : index
    %8 = vector.load %arg7[%c0_6, %c0_7] : memref<16x64xf32, #tpu.memory_space<vmem>>, vector<16x64xf32>
    tpu.vector_store %arg7[%c0_6, %c0_7], %7 {strides = array<i32>} : memref<16x64xf32, #tpu.memory_space<vmem>>, vector<16x64xf32>,
    %c0_i32_8 = arith.constant 0 : i32
    %9 = arith.cmpi eq, %arg2, %c0_i32_8 : i32
    %10 = arith.extui %9 : i1 to i32
    %c0_i32_9 = arith.constant 0 : i32
    %11 = arith.cmpi ne, %10, %c0_i32_9 : i32
    scf.if %11 {
      %c0_10 = arith.constant 0 : index
      %c0_11 = arith.constant 0 : index
      %12 = vector.load %arg7[%c0_10, %c0_11] : memref<16x64xf32, #tpu.memory_space<vmem>>, vector<16x64xf32>
      %c0_12 = arith.constant 0 : index
      %c0_13 = arith.constant 0 : index
      %13 = vector.load %arg5[%c0_12, %c0_13] : memref<1x64xf32, #tpu.memory_space<vmem>>, vector<1x64xf32>
      %14 = vector.broadcast %13 : vector<1x64xf32> to vector<16x64xf32>
      %15 = arith.addf %12, %14 : vector<16x64xf32>
      %16 = arith.truncf %15 : vector<16x64xf32> to vector<16x64xbf16>
      %c0_14 = arith.constant 0 : index
      %c0_15 = arith.constant 0 : index
      %17 = vector.load %arg6[%c0_14, %c0_15] : memref<16x64xbf16, #tpu.memory_space<vmem>>, vector<16x64xbf16>
      tpu.vector_store %arg6[%c0_14, %c0_15], %16 {strides = array<i32>} : memref<16x64xbf16, #tpu.memory_space<vmem>>, vector<16x64xbf16>,
    } else {
    }
    return
  }
  func.func @transform_0(%arg0: i32, %arg1: i32, %arg2: i32) -> (i32, i32) {
    %c0_i32 = arith.constant 0 : i32
    return %arg0, %arg2 : i32, i32
  }
  func.func @transform_1(%arg0: i32, %arg1: i32, %arg2: i32) -> (i32, i32) {
    %c0_i32 = arith.constant 0 : i32
    return %arg2, %arg1 : i32, i32
  }
  func.func @transform_2(%arg0: i32, %arg1: i32, %arg2: i32) -> (i32, i32) {
    %c0_i32 = arith.constant 0 : i32
    %c0_i32_0 = arith.constant 0 : i32
    return %c0_i32, %arg1 : i32, i32
  }
  func.func @transform_3(%arg0: i32, %arg1: i32, %arg2: i32) -> (i32, i32) {
    %c0_i32 = arith.constant 0 : i32
    return %arg0, %arg1 : i32, i32
  }
}

module attributes {stable_mosaic.version = 11 : i64} {
  func.func @_linear_ln_kernel(%arg0: i32, %arg1: i32, %arg2: i32, %arg3: memref<16x64xbf16, #tpu.memory_space<vmem>>, %arg4: memref<64x32xbf16, #tpu.memory_space<vmem>>, %arg5: memref<1x32xf32, #tpu.memory_space<vmem>>, %arg6: memref<16x32xbf16, #tpu.memory_space<vmem>>, %arg7: memref<1x32xf32, #tpu.memory_space<vmem>>, %arg8: memref<1x32xf32, #tpu.memory_space<vmem>>, %arg9: memref<16x32xbf16, #tpu.memory_space<vmem>>, %arg10: memref<16x32xf32, #tpu.memory_space<vmem>>) attributes {dimension_semantics = [#tpu.dimension_semantics<parallel>, #tpu.dimension_semantics<parallel>, #tpu.dimension_semantics<arbitrary>], iteration_bounds = array<i64: 1, 1, 1>, scalar_prefetch = 0 : i64, scratch_operands = 1 : i64, tpu.core_type = #tpu.core_type<tc>, window_params = [{transform_indices = @transform_0, window_bounds = array<i64: 16, 64>}, {transform_indices = @transform_1, window_bounds = array<i64: 64, 32>}, {transform_indices = @transform_2, window_bounds = array<i64: 1, 32>}, {transform_indices = @transform_3, window_bounds = array<i64: 16, 32>}, {transform_indices = @transform_4, window_bounds = array<i64: 1, 32>}, {transform_indices = @transform_5, window_bounds = array<i64: 1, 32>}, {transform_indices = @transform_6, window_bounds = array<i64: 16, 32>}]} {
    %c0_i32 = arith.constant 0 : i32
    %0 = arith.cmpi eq, %arg2, %c0_i32 : i32
    %1 = arith.extui %0 : i1 to i32
    %c0_i32_0 = arith.constant 0 : i32
    %2 = arith.cmpi ne, %1, %c0_i32_0 : i32
    scf.if %2 {
      %cst_10 = arith.constant 0.000000e+00 : f32
      %12 = vector.broadcast %cst_10 : f32 to vector<16x32xf32>
      %c0_11 = arith.constant 0 : index
      %c0_12 = arith.constant 0 : index
      %13 = vector.load %arg10[%c0_11, %c0_12] : memref<16x32xf32, #tpu.memory_space<vmem>>, vector<16x32xf32>
      tpu.vector_store %arg10[%c0_11, %c0_12], %12 {strides = array<i32>} : memref<16x32xf32, #tpu.memory_space<vmem>>, vector<16x32xf32>,
    } else {
    }
    %c0 = arith.constant 0 : index
    %c0_1 = arith.constant 0 : index
    %3 = vector.load %arg10[%c0, %c0_1] : memref<16x32xf32, #tpu.memory_space<vmem>>, vector<16x32xf32>
    %c0_2 = arith.constant 0 : index
    %c0_3 = arith.constant 0 : index
    %4 = vector.load %arg3[%c0_2, %c0_3] : memref<16x64xbf16, #tpu.memory_space<vmem>>, vector<16x64xbf16>
    %c0_4 = arith.constant 0 : index
    %c0_5 = arith.constant 0 : index
    %5 = vector.load %arg4[%c0_4, %c0_5] : memref<64x32xbf16, #tpu.memory_space<vmem>>, vector<64x32xbf16>
    %cst = arith.constant dense<0.000000e+00> : vector<16x32xf32>
    %6 = tpu.matmul %4, %5, %cst {dimension_numbers = #tpu.dot_dimension_numbers<[1], [0], [0], [1], [0, 0, 1, 1], [], []>} : vector<16x64xbf16>, vector<64x32xbf16>, vector<16x32xf32> -> vector<16x32xf32>
    %7 = arith.addf %3, %6 : vector<16x32xf32>
    %c0_6 = arith.constant 0 : index
    %c0_7 = arith.constant 0 : index
    %8 = vector.load %arg10[%c0_6, %c0_7] : memref<16x32xf32, #tpu.memory_space<vmem>>, vector<16x32xf32>
    tpu.vector_store %arg10[%c0_6, %c0_7], %7 {strides = array<i32>} : memref<16x32xf32, #tpu.memory_space<vmem>>, vector<16x32xf32>,
    %c0_i32_8 = arith.constant 0 : i32
    %9 = arith.cmpi eq, %arg2, %c0_i32_8 : i32
    %10 = arith.extui %9 : i1 to i32
    %c0_i32_9 = arith.constant 0 : i32
    %11 = arith.cmpi ne, %10, %c0_i32_9 : i32
    scf.if %11 {
      %c0_10 = arith.constant 0 : index
      %c0_11 = arith.constant 0 : index
      %12 = vector.load %arg6[%c0_10, %c0_11] : memref<16x32xbf16, #tpu.memory_space<vmem>>, vector<16x32xbf16>
      %13 = arith.extf %12 : vector<16x32xbf16> to vector<16x32xf32>
      %c0_12 = arith.constant 0 : index
      %c0_13 = arith.constant 0 : index
      %14 = vector.load %arg10[%c0_12, %c0_13] : memref<16x32xf32, #tpu.memory_space<vmem>>, vector<16x32xf32>
      %15 = arith.addf %13, %14 : vector<16x32xf32>
      %c0_14 = arith.constant 0 : index
      %c0_15 = arith.constant 0 : index
      %16 = vector.load %arg5[%c0_14, %c0_15] : memref<1x32xf32, #tpu.memory_space<vmem>>, vector<1x32xf32>
      %17 = vector.broadcast %16 : vector<1x32xf32> to vector<16x32xf32>
      %18 = arith.addf %15, %17 : vector<16x32xf32>
      %cst_16 = arith.constant dense<0.000000e+00> : vector<16xf32>
      %19 = vector.multi_reduction <add>, %18, %cst_16 [1] : vector<16x32xf32> to vector<16xf32>
      %20 = vector.shape_cast %19 : vector<16xf32> to vector<16x1xf32>
      %cst_17 = arith.constant 3.200000e+01 : f32
      %21 = vector.broadcast %cst_17 : f32 to vector<16x1xf32>
      %22 = arith.divf %20, %21 : vector<16x1xf32>
      %23 = vector.broadcast %22 : vector<16x1xf32> to vector<16x32xf32>
      %24 = arith.subf %18, %23 : vector<16x32xf32>
      %25 = arith.mulf %24, %24 : vector<16x32xf32>
      %cst_18 = arith.constant dense<0.000000e+00> : vector<16xf32>
      %26 = vector.multi_reduction <add>, %25, %cst_18 [1] : vector<16x32xf32> to vector<16xf32>
      %27 = vector.shape_cast %26 : vector<16xf32> to vector<16x1xf32>
      %cst_19 = arith.constant 3.200000e+01 : f32
      %28 = vector.broadcast %cst_19 : f32 to vector<16x1xf32>
      %29 = arith.divf %27, %28 : vector<16x1xf32>
      %30 = vector.broadcast %22 : vector<16x1xf32> to vector<16x32xf32>
      %31 = arith.subf %18, %30 : vector<16x32xf32>
      %cst_20 = arith.constant 9.99999974E-6 : f32
      %32 = vector.broadcast %cst_20 : f32 to vector<16x1xf32>
      %33 = arith.addf %29, %32 : vector<16x1xf32>
      %34 = math.rsqrt %33 : vector<16x1xf32>
      %35 = vector.broadcast %34 : vector<16x1xf32> to vector<16x32xf32>
      %36 = arith.mulf %31, %35 : vector<16x32xf32>
      %c0_21 = arith.constant 0 : index
      %c0_22 = arith.constant 0 : index
      %37 = vector.load %arg7[%c0_21, %c0_22] : memref<1x32xf32, #tpu.memory_space<vmem>>, vector<1x32xf32>
      %38 = vector.broadcast %37 : vector<1x32xf32> to vector<16x32xf32>
      %39 = arith.mulf %36, %38 : vector<16x32xf32>
      %c0_23 = arith.constant 0 : index
      %c0_24 = arith.constant 0 : index
      %40 = vector.load %arg8[%c0_23, %c0_24] : memref<1x32xf32, #tpu.memory_space<vmem>>, vector<1x32xf32>
      %41 = vector.broadcast %40 : vector<1x32xf32> to vector<16x32xf32>
      %42 = arith.addf %39, %41 : vector<16x32xf32>
      %43 = arith.truncf %42 : vector<16x32xf32> to vector<16x32xbf16>
      %c0_25 = arith.constant 0 : index
      %c0_26 = arith.constant 0 : index
      %44 = vector.load %arg9[%c0_25, %c0_26] : memref<16x32xbf16, #tpu.memory_space<vmem>>, vector<16x32xbf16>
      tpu.vector_store %arg9[%c0_25, %c0_26], %43 {strides = array<i32>} : memref<16x32xbf16, #tpu.memory_space<vmem>>, vector<16x32xbf16>,
    } else {
    }
    return
  }
  func.func @transform_0(%arg0: i32, %arg1: i32, %arg2: i32) -> (i32, i32) {
    %c0_i32 = arith.constant 0 : i32
    return %arg0, %arg2 : i32, i32
  }
  func.func @transform_1(%arg0: i32, %arg1: i32, %arg2: i32) -> (i32, i32) {
    %c0_i32 = arith.constant 0 : i32
    return %arg2, %arg1 : i32, i32
  }
  func.func @transform_2(%arg0: i32, %arg1: i32, %arg2: i32) -> (i32, i32) {
    %c0_i32 = arith.constant 0 : i32
    %c0_i32_0 = arith.constant 0 : i32
    return %c0_i32, %arg1 : i32, i32
  }
  func.func @transform_3(%arg0: i32, %arg1: i32, %arg2: i32) -> (i32, i32) {
    %c0_i32 = arith.constant 0 : i32
    return %arg0, %arg1 : i32, i32
  }
  func.func @transform_4(%arg0: i32, %arg1: i32, %arg2: i32) -> (i32, i32) {
    %c0_i32 = arith.constant 0 : i32
    %c0_i32_0 = arith.constant 0 : i32
    return %c0_i32, %arg1 : i32, i32
  }
  func.func @transform_5(%arg0: i32, %arg1: i32, %arg2: i32) -> (i32, i32) {
    %c0_i32 = arith.constant 0 : i32
    %c0_i32_0 = arith.constant 0 : i32
    return %c0_i32, %arg1 : i32, i32
  }
  func.func @transform_6(%arg0: i32, %arg1: i32, %arg2: i32) -> (i32, i32) {
    %c0_i32 = arith.constant 0 : i32
    return %arg0, %arg1 : i32, i32
  }
}

module attributes {stable_mosaic.version = 11 : i64} {
  func.func @_attention_kernel(%arg0: i32, %arg1: i32, %arg2: memref<1x8x32xbf16, #tpu.memory_space<vmem>>, %arg3: memref<1x8x64xbf16, #tpu.memory_space<vmem>>, %arg4: memref<1x8x32xbf16, #tpu.memory_space<vmem>>) attributes {dimension_semantics = [#tpu.dimension_semantics<parallel>, #tpu.dimension_semantics<parallel>], iteration_bounds = array<i64: 2, 1>, scalar_prefetch = 0 : i64, scratch_operands = 0 : i64, tpu.core_type = #tpu.core_type<tc>, window_params = [{transform_indices = @transform_0, window_bounds = array<i64: 1, 8, 32>}, {transform_indices = @transform_1, window_bounds = array<i64: 1, 8, 64>}, {transform_indices = @transform_2, window_bounds = array<i64: 1, 8, 32>}]} {
    %c0 = arith.constant 0 : index
    %c0_0 = arith.constant 0 : index
    %c0_1 = arith.constant 0 : index
    %0 = vector.load %arg2[%c0, %c0_0, %c0_1] : memref<1x8x32xbf16, #tpu.memory_space<vmem>>, vector<1x8x32xbf16>
    %1 = vector.shape_cast %0 : vector<1x8x32xbf16> to vector<8x32xbf16>
    %c0_2 = arith.constant 0 : index
    %c0_3 = arith.constant 0 : index
    %c0_4 = arith.constant 0 : index
    %2 = vector.load %arg3[%c0_2, %c0_3, %c0_4] : memref<1x8x64xbf16, #tpu.memory_space<vmem>>, vector<1x8x64xbf16>
    %3 = vector.shape_cast %2 : vector<1x8x64xbf16> to vector<8x64xbf16>
    %4 = vector.extract_strided_slice %3 {offsets = [0, 0], sizes = [8, 32], strides = [1, 1]} : vector<8x64xbf16> to vector<8x32xbf16>
    %5 = vector.extract_strided_slice %3 {offsets = [0, 32], sizes = [8, 32], strides = [1, 1]} : vector<8x64xbf16> to vector<8x32xbf16>
    %6 = vector.extract_strided_slice %1 {offsets = [0, 0], sizes = [8, 8], strides = [1, 1]} : vector<8x32xbf16> to vector<8x8xbf16>
    %7 = vector.extract_strided_slice %4 {offsets = [0, 0], sizes = [8, 8], strides = [1, 1]} : vector<8x32xbf16> to vector<8x8xbf16>
    %cst = arith.constant dense<0.000000e+00> : vector<8x8xf32>
    %8 = tpu.matmul %6, %7, %cst {dimension_numbers = #tpu.dot_dimension_numbers<[1], [1], [0], [0], [0, 0, 1, 0], [], []>} : vector<8x8xbf16>, vector<8x8xbf16>, vector<8x8xf32> -> vector<8x8xf32>
    %cst_5 = arith.constant 0.353553385 : f32
    %9 = vector.broadcast %cst_5 : f32 to vector<8x8xf32>
    %10 = arith.mulf %8, %9 : vector<8x8xf32>
    %cst_6 = arith.constant dense<0xFF800000> : vector<8xf32>
    %11 = vector.multi_reduction <maximumf>, %10, %cst_6 [1] : vector<8x8xf32> to vector<8xf32>
    %12 = vector.shape_cast %11 : vector<8xf32> to vector<8x1xf32>
    %13 = vector.broadcast %12 : vector<8x1xf32> to vector<8x8xf32>
    %14 = arith.subf %10, %13 : vector<8x8xf32>
    %15 = math.exp %14 : vector<8x8xf32>
    %cst_7 = arith.constant dense<0.000000e+00> : vector<8xf32>
    %16 = vector.multi_reduction <add>, %15, %cst_7 [1] : vector<8x8xf32> to vector<8xf32>
    %17 = vector.shape_cast %16 : vector<8xf32> to vector<8x1xf32>
    %18 = tpu.reciprocal %17 {approx = true} : vector<8x1xf32> -> vector<8x1xf32>
    %19 = vector.broadcast %18 : vector<8x1xf32> to vector<8x8xf32>
    %20 = arith.mulf %15, %19 : vector<8x8xf32>
    %21 = arith.truncf %20 : vector<8x8xf32> to vector<8x8xbf16>
    %22 = vector.extract_strided_slice %5 {offsets = [0, 0], sizes = [8, 8], strides = [1, 1]} : vector<8x32xbf16> to vector<8x8xbf16>
    %cst_8 = arith.constant dense<0.000000e+00> : vector<8x8xf32>
    %23 = tpu.matmul %21, %22, %cst_8 {dimension_numbers = #tpu.dot_dimension_numbers<[1], [0], [0], [1], [0, 0, 1, 1], [], []>} : vector<8x8xbf16>, vector<8x8xbf16>, vector<8x8xf32> -> vector<8x8xf32>
    %24 = vector.extract_strided_slice %1 {offsets = [0, 8], sizes = [8, 8], strides = [1, 1]} : vector<8x32xbf16> to vector<8x8xbf16>
    %25 = vector.extract_strided_slice %4 {offsets = [0, 8], sizes = [8, 8], strides = [1, 1]} : vector<8x32xbf16> to vector<8x8xbf16>
    %cst_9 = arith.constant dense<0.000000e+00> : vector<8x8xf32>
    %26 = tpu.matmul %24, %25, %cst_9 {dimension_numbers = #tpu.dot_dimension_numbers<[1], [1], [0], [0], [0, 0, 1, 0], [], []>} : vector<8x8xbf16>, vector<8x8xbf16>, vector<8x8xf32> -> vector<8x8xf32>
    %cst_10 = arith.constant 0.353553385 : f32
    %27 = vector.broadcast %cst_10 : f32 to vector<8x8xf32>
    %28 = arith.mulf %26, %27 : vector<8x8xf32>
    %cst_11 = arith.constant dense<0xFF800000> : vector<8xf32>
    %29 = vector.multi_reduction <maximumf>, %28, %cst_11 [1] : vector<8x8xf32> to vector<8xf32>
    %30 = vector.shape_cast %29 : vector<8xf32> to vector<8x1xf32>
    %31 = vector.broadcast %30 : vector<8x1xf32> to vector<8x8xf32>
    %32 = arith.subf %28, %31 : vector<8x8xf32>
    %33 = math.exp %32 : vector<8x8xf32>
    %cst_12 = arith.constant dense<0.000000e+00> : vector<8xf32>
    %34 = vector.multi_reduction <add>, %33, %cst_12 [1] : vector<8x8xf32> to vector<8xf32>
    %35 = vector.shape_cast %34 : vector<8xf32> to vector<8x1xf32>
    %36 = tpu.reciprocal %35 {approx = true} : vector<8x1xf32> -> vector<8x1xf32>
    %37 = vector.broadcast %36 : vector<8x1xf32> to vector<8x8xf32>
    %38 = arith.mulf %33, %37 : vector<8x8xf32>
    %39 = arith.truncf %38 : vector<8x8xf32> to vector<8x8xbf16>
    %40 = vector.extract_strided_slice %5 {offsets = [0, 8], sizes = [8, 8], strides = [1, 1]} : vector<8x32xbf16> to vector<8x8xbf16>
    %cst_13 = arith.constant dense<0.000000e+00> : vector<8x8xf32>
    %41 = tpu.matmul %39, %40, %cst_13 {dimension_numbers = #tpu.dot_dimension_numbers<[1], [0], [0], [1], [0, 0, 1, 1], [], []>} : vector<8x8xbf16>, vector<8x8xbf16>, vector<8x8xf32> -> vector<8x8xf32>
    %42 = vector.extract_strided_slice %1 {offsets = [0, 16], sizes = [8, 8], strides = [1, 1]} : vector<8x32xbf16> to vector<8x8xbf16>
    %43 = vector.extract_strided_slice %4 {offsets = [0, 16], sizes = [8, 8], strides = [1, 1]} : vector<8x32xbf16> to vector<8x8xbf16>
    %cst_14 = arith.constant dense<0.000000e+00> : vector<8x8xf32>
    %44 = tpu.matmul %42, %43, %cst_14 {dimension_numbers = #tpu.dot_dimension_numbers<[1], [1], [0], [0], [0, 0, 1, 0], [], []>} : vector<8x8xbf16>, vector<8x8xbf16>, vector<8x8xf32> -> vector<8x8xf32>
    %cst_15 = arith.constant 0.353553385 : f32
    %45 = vector.broadcast %cst_15 : f32 to vector<8x8xf32>
    %46 = arith.mulf %44, %45 : vector<8x8xf32>
    %cst_16 = arith.constant dense<0xFF800000> : vector<8xf32>
    %47 = vector.multi_reduction <maximumf>, %46, %cst_16 [1] : vector<8x8xf32> to vector<8xf32>
    %48 = vector.shape_cast %47 : vector<8xf32> to vector<8x1xf32>
    %49 = vector.broadcast %48 : vector<8x1xf32> to vector<8x8xf32>
    %50 = arith.subf %46, %49 : vector<8x8xf32>
    %51 = math.exp %50 : vector<8x8xf32>
    %cst_17 = arith.constant dense<0.000000e+00> : vector<8xf32>
    %52 = vector.multi_reduction <add>, %51, %cst_17 [1] : vector<8x8xf32> to vector<8xf32>
    %53 = vector.shape_cast %52 : vector<8xf32> to vector<8x1xf32>
    %54 = tpu.reciprocal %53 {approx = true} : vector<8x1xf32> -> vector<8x1xf32>
    %55 = vector.broadcast %54 : vector<8x1xf32> to vector<8x8xf32>
    %56 = arith.mulf %51, %55 : vector<8x8xf32>
    %57 = arith.truncf %56 : vector<8x8xf32> to vector<8x8xbf16>
    %58 = vector.extract_strided_slice %5 {offsets = [0, 16], sizes = [8, 8], strides = [1, 1]} : vector<8x32xbf16> to vector<8x8xbf16>
    %cst_18 = arith.constant dense<0.000000e+00> : vector<8x8xf32>
    %59 = tpu.matmul %57, %58, %cst_18 {dimension_numbers = #tpu.dot_dimension_numbers<[1], [0], [0], [1], [0, 0, 1, 1], [], []>} : vector<8x8xbf16>, vector<8x8xbf16>, vector<8x8xf32> -> vector<8x8xf32>
    %60 = vector.extract_strided_slice %1 {offsets = [0, 24], sizes = [8, 8], strides = [1, 1]} : vector<8x32xbf16> to vector<8x8xbf16>
    %61 = vector.extract_strided_slice %4 {offsets = [0, 24], sizes = [8, 8], strides = [1, 1]} : vector<8x32xbf16> to vector<8x8xbf16>
    %cst_19 = arith.constant dense<0.000000e+00> : vector<8x8xf32>
    %62 = tpu.matmul %60, %61, %cst_19 {dimension_numbers = #tpu.dot_dimension_numbers<[1], [1], [0], [0], [0, 0, 1, 0], [], []>} : vector<8x8xbf16>, vector<8x8xbf16>, vector<8x8xf32> -> vector<8x8xf32>
    %cst_20 = arith.constant 0.353553385 : f32
    %63 = vector.broadcast %cst_20 : f32 to vector<8x8xf32>
    %64 = arith.mulf %62, %63 : vector<8x8xf32>
    %cst_21 = arith.constant dense<0xFF800000> : vector<8xf32>
    %65 = vector.multi_reduction <maximumf>, %64, %cst_21 [1] : vector<8x8xf32> to vector<8xf32>
    %66 = vector.shape_cast %65 : vector<8xf32> to vector<8x1xf32>
    %67 = vector.broadcast %66 : vector<8x1xf32> to vector<8x8xf32>
    %68 = arith.subf %64, %67 : vector<8x8xf32>
    %69 = math.exp %68 : vector<8x8xf32>
    %cst_22 = arith.constant dense<0.000000e+00> : vector<8xf32>
    %70 = vector.multi_reduction <add>, %69, %cst_22 [1] : vector<8x8xf32> to vector<8xf32>
    %71 = vector.shape_cast %70 : vector<8xf32> to vector<8x1xf32>
    %72 = tpu.reciprocal %71 {approx = true} : vector<8x1xf32> -> vector<8x1xf32>
    %73 = vector.broadcast %72 : vector<8x1xf32> to vector<8x8xf32>
    %74 = arith.mulf %69, %73 : vector<8x8xf32>
    %75 = arith.truncf %74 : vector<8x8xf32> to vector<8x8xbf16>
    %76 = vector.extract_strided_slice %5 {offsets = [0, 24], sizes = [8, 8], strides = [1, 1]} : vector<8x32xbf16> to vector<8x8xbf16>
    %cst_23 = arith.constant dense<0.000000e+00> : vector<8x8xf32>
    %77 = tpu.matmul %75, %76, %cst_23 {dimension_numbers = #tpu.dot_dimension_numbers<[1], [0], [0], [1], [0, 0, 1, 1], [], []>} : vector<8x8xbf16>, vector<8x8xbf16>, vector<8x8xf32> -> vector<8x8xf32>
    %78 = tpu.concatenate %23, %41, %59, %77 in 1 : vector<8x8xf32>, vector<8x8xf32>, vector<8x8xf32>, vector<8x8xf32> -> vector<8x32xf32>
    %79 = arith.truncf %78 : vector<8x32xf32> to vector<8x32xbf16>
    %c0_24 = arith.constant 0 : index
    %c0_25 = arith.constant 0 : index
    %c0_26 = arith.constant 0 : index
    %80 = vector.load %arg4[%c0_24, %c0_25, %c0_26] : memref<1x8x32xbf16, #tpu.memory_space<vmem>>, vector<1x8x32xbf16>
    %81 = vector.shape_cast %80 : vector<1x8x32xbf16> to vector<8x32xbf16>
    %82 = vector.shape_cast %79 : vector<8x32xbf16> to vector<1x8x32xbf16>
    tpu.vector_store %arg4[%c0_24, %c0_25, %c0_26], %82 {strides = array<i32>} : memref<1x8x32xbf16, #tpu.memory_space<vmem>>, vector<1x8x32xbf16>,
    return
  }
  func.func @transform_0(%arg0: i32, %arg1: i32) -> (i32, i32, i32) {
    %c0_i32 = arith.constant 0 : i32
    %c0_i32_0 = arith.constant 0 : i32
    return %arg0, %arg1, %c0_i32 : i32, i32, i32
  }
  func.func @transform_1(%arg0: i32, %arg1: i32) -> (i32, i32, i32) {
    %c0_i32 = arith.constant 0 : i32
    %c0_i32_0 = arith.constant 0 : i32
    %c0_i32_1 = arith.constant 0 : i32
    return %arg0, %c0_i32, %c0_i32_0 : i32, i32, i32
  }
  func.func @transform_2(%arg0: i32, %arg1: i32) -> (i32, i32, i32) {
    %c0_i32 = arith.constant 0 : i32
    %c0_i32_0 = arith.constant 0 : i32
    return %arg0, %arg1, %c0_i32 : i32, i32, i32
  }
}

module attributes {stable_mosaic.version = 11 : i64} {
  func.func @_linear_kernel(%arg0: i32, %arg1: i32, %arg2: i32, %arg3: memref<16x32xbf16, #tpu.memory_space<vmem>>, %arg4: memref<32x32xbf16, #tpu.memory_space<vmem>>, %arg5: memref<1x32xf32, #tpu.memory_space<vmem>>, %arg6: memref<16x32xbf16, #tpu.memory_space<vmem>>, %arg7: memref<16x32xf32, #tpu.memory_space<vmem>>) attributes {dimension_semantics = [#tpu.dimension_semantics<parallel>, #tpu.dimension_semantics<parallel>, #tpu.dimension_semantics<arbitrary>], iteration_bounds = array<i64: 1, 1, 1>, scalar_prefetch = 0 : i64, scratch_operands = 1 : i64, tpu.core_type = #tpu.core_type<tc>, window_params = [{transform_indices = @transform_0, window_bounds = array<i64: 16, 32>}, {transform_indices = @transform_1, window_bounds = array<i64: 32, 32>}, {transform_indices = @transform_2, window_bounds = array<i64: 1, 32>}, {transform_indices = @transform_3, window_bounds = array<i64: 16, 32>}]} {
    %c0_i32 = arith.constant 0 : i32
    %0 = arith.cmpi eq, %arg2, %c0_i32 : i32
    %1 = arith.extui %0 : i1 to i32
    %c0_i32_0 = arith.constant 0 : i32
    %2 = arith.cmpi ne, %1, %c0_i32_0 : i32
    scf.if %2 {
      %cst_10 = arith.constant 0.000000e+00 : f32
      %12 = vector.broadcast %cst_10 : f32 to vector<16x32xf32>
      %c0_11 = arith.constant 0 : index
      %c0_12 = arith.constant 0 : index
      %13 = vector.load %arg7[%c0_11, %c0_12] : memref<16x32xf32, #tpu.memory_space<vmem>>, vector<16x32xf32>
      tpu.vector_store %arg7[%c0_11, %c0_12], %12 {strides = array<i32>} : memref<16x32xf32, #tpu.memory_space<vmem>>, vector<16x32xf32>,
    } else {
    }
    %c0 = arith.constant 0 : index
    %c0_1 = arith.constant 0 : index
    %3 = vector.load %arg7[%c0, %c0_1] : memref<16x32xf32, #tpu.memory_space<vmem>>, vector<16x32xf32>
    %c0_2 = arith.constant 0 : index
    %c0_3 = arith.constant 0 : index
    %4 = vector.load %arg3[%c0_2, %c0_3] : memref<16x32xbf16, #tpu.memory_space<vmem>>, vector<16x32xbf16>
    %c0_4 = arith.constant 0 : index
    %c0_5 = arith.constant 0 : index
    %5 = vector.load %arg4[%c0_4, %c0_5] : memref<32x32xbf16, #tpu.memory_space<vmem>>, vector<32x32xbf16>
    %cst = arith.constant dense<0.000000e+00> : vector<16x32xf32>
    %6 = tpu.matmul %4, %5, %cst {dimension_numbers = #tpu.dot_dimension_numbers<[1], [0], [0], [1], [0, 0, 1, 1], [], []>} : vector<16x32xbf16>, vector<32x32xbf16>, vector<16x32xf32> -> vector<16x32xf32>
    %7 = arith.addf %3, %6 : vector<16x32xf32>
    %c0_6 = arith.constant 0 : index
    %c0_7 = arith.constant 0 : index
    %8 = vector.load %arg7[%c0_6, %c0_7] : memref<16x32xf32, #tpu.memory_space<vmem>>, vector<16x32xf32>
    tpu.vector_store %arg7[%c0_6, %c0_7], %7 {strides = array<i32>} : memref<16x32xf32, #tpu.memory_space<vmem>>, vector<16x32xf32>,
    %c0_i32_8 = arith.constant 0 : i32
    %9 = arith.cmpi eq, %arg2, %c0_i32_8 : i32
    %10 = arith.extui %9 : i1 to i32
    %c0_i32_9 = arith.constant 0 : i32
    %11 = arith.cmpi ne, %10, %c0_i32_9 : i32
    scf.if %11 {
      %c0_10 = arith.constant 0 : index
      %c0_11 = arith.constant 0 : index
      %12 = vector.load %arg7[%c0_10, %c0_11] : memref<16x32xf32, #tpu.memory_space<vmem>>, vector<16x32xf32>
      %c0_12 = arith.constant 0 : index
      %c0_13 = arith.constant 0 : index
      %13 = vector.load %arg5[%c0_12, %c0_13] : memref<1x32xf32, #tpu.memory_space<vmem>>, vector<1x32xf32>
      %14 = vector.broadcast %13 : vector<1x32xf32> to vector<16x32xf32>
      %15 = arith.addf %12, %14 : vector<16x32xf32>
      %16 = arith.truncf %15 : vector<16x32xf32> to vector<16x32xbf16>
      %c0_14 = arith.constant 0 : index
      %c0_15 = arith.constant 0 : index
      %17 = vector.load %arg6[%c0_14, %c0_15] : memref<16x32xbf16, #tpu.memory_space<vmem>>, vector<16x32xbf16>
      tpu.vector_store %arg6[%c0_14, %c0_15], %16 {strides = array<i32>} : memref<16x32xbf16, #tpu.memory_space<vmem>>, vector<16x32xbf16>,
    } else {
    }
    return
  }
  func.func @transform_0(%arg0: i32, %arg1: i32, %arg2: i32) -> (i32, i32) {
    %c0_i32 = arith.constant 0 : i32
    return %arg0, %arg2 : i32, i32
  }
  func.func @transform_1(%arg0: i32, %arg1: i32, %arg2: i32) -> (i32, i32) {
    %c0_i32 = arith.constant 0 : i32
    return %arg2, %arg1 : i32, i32
  }
  func.func @transform_2(%arg0: i32, %arg1: i32, %arg2: i32) -> (i32, i32) {
    %c0_i32 = arith.constant 0 : i32
    %c0_i32_0 = arith.constant 0 : i32
    return %c0_i32, %arg1 : i32, i32
  }
  func.func @transform_3(%arg0: i32, %arg1: i32, %arg2: i32) -> (i32, i32) {
    %c0_i32 = arith.constant 0 : i32
    return %arg0, %arg1 : i32, i32
  }
}

module attributes {stable_mosaic.version = 11 : i64} {
  func.func @_linear_kernel(%arg0: i32, %arg1: i32, %arg2: i32, %arg3: memref<16x32xbf16, #tpu.memory_space<vmem>>, %arg4: memref<32x128xbf16, #tpu.memory_space<vmem>>, %arg5: memref<1x128xf32, #tpu.memory_space<vmem>>, %arg6: memref<16x128xf32, #tpu.memory_space<vmem>>, %arg7: memref<16x128xf32, #tpu.memory_space<vmem>>) attributes {dimension_semantics = [#tpu.dimension_semantics<parallel>, #tpu.dimension_semantics<parallel>, #tpu.dimension_semantics<arbitrary>], iteration_bounds = array<i64: 1, 1, 1>, scalar_prefetch = 0 : i64, scratch_operands = 1 : i64, tpu.core_type = #tpu.core_type<tc>, window_params = [{transform_indices = @transform_0, window_bounds = array<i64: 16, 32>}, {transform_indices = @transform_1, window_bounds = array<i64: 32, 128>}, {transform_indices = @transform_2, window_bounds = array<i64: 1, 128>}, {transform_indices = @transform_3, window_bounds = array<i64: 16, 128>}]} {
    %c0_i32 = arith.constant 0 : i32
    %0 = arith.cmpi eq, %arg2, %c0_i32 : i32
    %1 = arith.extui %0 : i1 to i32
    %c0_i32_0 = arith.constant 0 : i32
    %2 = arith.cmpi ne, %1, %c0_i32_0 : i32
    scf.if %2 {
      %cst_10 = arith.constant 0.000000e+00 : f32
      %12 = vector.broadcast %cst_10 : f32 to vector<16x128xf32>
      %c0_11 = arith.constant 0 : index
      %c0_12 = arith.constant 0 : index
      %13 = vector.load %arg7[%c0_11, %c0_12] : memref<16x128xf32, #tpu.memory_space<vmem>>, vector<16x128xf32>
      tpu.vector_store %arg7[%c0_11, %c0_12], %12 {strides = array<i32>} : memref<16x128xf32, #tpu.memory_space<vmem>>, vector<16x128xf32>,
    } else {
    }
    %c0 = arith.constant 0 : index
    %c0_1 = arith.constant 0 : index
    %3 = vector.load %arg7[%c0, %c0_1] : memref<16x128xf32, #tpu.memory_space<vmem>>, vector<16x128xf32>
    %c0_2 = arith.constant 0 : index
    %c0_3 = arith.constant 0 : index
    %4 = vector.load %arg3[%c0_2, %c0_3] : memref<16x32xbf16, #tpu.memory_space<vmem>>, vector<16x32xbf16>
    %c0_4 = arith.constant 0 : index
    %c0_5 = arith.constant 0 : index
    %5 = vector.load %arg4[%c0_4, %c0_5] : memref<32x128xbf16, #tpu.memory_space<vmem>>, vector<32x128xbf16>
    %cst = arith.constant dense<0.000000e+00> : vector<16x128xf32>
    %6 = tpu.matmul %4, %5, %cst {dimension_numbers = #tpu.dot_dimension_numbers<[1], [0], [0], [1], [0, 0, 1, 1], [], []>} : vector<16x32xbf16>, vector<32x128xbf16>, vector<16x128xf32> -> vector<16x128xf32>
    %7 = arith.addf %3, %6 : vector<16x128xf32>
    %c0_6 = arith.constant 0 : index
    %c0_7 = arith.constant 0 : index
    %8 = vector.load %arg7[%c0_6, %c0_7] : memref<16x128xf32, #tpu.memory_space<vmem>>, vector<16x128xf32>
    tpu.vector_store %arg7[%c0_6, %c0_7], %7 {strides = array<i32>} : memref<16x128xf32, #tpu.memory_space<vmem>>, vector<16x128xf32>,
    %c0_i32_8 = arith.constant 0 : i32
    %9 = arith.cmpi eq, %arg2, %c0_i32_8 : i32
    %10 = arith.extui %9 : i1 to i32
    %c0_i32_9 = arith.constant 0 : i32
    %11 = arith.cmpi ne, %10, %c0_i32_9 : i32
    scf.if %11 {
      %c0_10 = arith.constant 0 : index
      %c0_11 = arith.constant 0 : index
      %12 = vector.load %arg7[%c0_10, %c0_11] : memref<16x128xf32, #tpu.memory_space<vmem>>, vector<16x128xf32>
      %c0_12 = arith.constant 0 : index
      %c0_13 = arith.constant 0 : index
      %13 = vector.load %arg5[%c0_12, %c0_13] : memref<1x128xf32, #tpu.memory_space<vmem>>, vector<1x128xf32>
      %14 = vector.broadcast %13 : vector<1x128xf32> to vector<16x128xf32>
      %15 = arith.addf %12, %14 : vector<16x128xf32>
      %c0_14 = arith.constant 0 : index
      %c0_15 = arith.constant 0 : index
      %16 = vector.load %arg6[%c0_14, %c0_15] : memref<16x128xf32, #tpu.memory_space<vmem>>, vector<16x128xf32>
      tpu.vector_store %arg6[%c0_14, %c0_15], %15 {strides = array<i32>} : memref<16x128xf32, #tpu.memory_space<vmem>>, vector<16x128xf32>,
    } else {
    }
    return
  }
  func.func @transform_0(%arg0: i32, %arg1: i32, %arg2: i32) -> (i32, i32) {
    %c0_i32 = arith.constant 0 : i32
    return %arg0, %arg2 : i32, i32
  }
  func.func @transform_1(%arg0: i32, %arg1: i32, %arg2: i32) -> (i32, i32) {
    %c0_i32 = arith.constant 0 : i32
    return %arg2, %arg1 : i32, i32
  }
  func.func @transform_2(%arg0: i32, %arg1: i32, %arg2: i32) -> (i32, i32) {
    %c0_i32 = arith.constant 0 : i32
    %c0_i32_0 = arith.constant 0 : i32
    return %c0_i32, %arg1 : i32, i32
  }
  func.func @transform_3(%arg0: i32, %arg1: i32, %arg2: i32) -> (i32, i32) {
    %c0_i32 = arith.constant 0 : i32
    return %arg0, %arg1 : i32, i32
  }
}

</mosaic_0001>

<bundles_post_ra>
// kernel: _lambda_.29
= control target key start
LH: loop header
LB: loop body
LE: loop exit
PB: predicated region body
PF: predicated region fallthrough
CT: control target
= control target key end

     0   :  { %8 = vsyncpa [#allocation4], 0  ;;  %s401_s0 = inlined_call_operand.hbm [shape: bf16[16,32], index: 0, kind: input, shape index: {}]   ;;  %s402_s1 = inlined_call_operand.hbm [shape: bf16[32,96], index: 1, kind: input, shape index: {}]   ;;  %s403_s2 = inlined_call_operand.hbm [shape: f32[1,96], index: 2, kind: input, shape index: {}]   ;;  %s404_s3 = inlined_call_operand.hbm [shape: bf16[16,96], index: 3, kind: output, shape index: {}]  }
   0x1   :  { %9 = vsyncpa [#allocation7], 0 }
   0x2   :  { %10 = vsyncpa [#allocation5], 0  ;;  %s305_s12 = smov [#allocation6]   ;;  %s306_s14 = smov [#allocation3]  }
   0x3   :  { %s28_s13 = sshll.u32 %s305_s12, 4  ;;  %s16_s15 = sshll.u32 %s306_s14, 4  ;;  %s29_s13 = int_to_ptr.vmem [resolvable:$true] %s28_s13  ;;  %s333_s15 = int_to_ptr.vmem [resolvable:$true] %s16_s15 }
   0x4   :  { %s211_s18 = scalar_lea.hbm %s402_s1, 256 }
   0x5   :  { %p212_p0 = scmp.ne.s32.totalorder %s402_s1, %s211_s18  ;;  %p215_p1 = scmp.lt.u32.totalorder %s211_s18, %s402_s1 }
   0x7   :  { %p217_p2 = pnand %p215_p1, %p212_p0 }
   0x9   :  { %220 = shalt.err (!%p217_p2)
}
   0xa   :  { %s221_s23 = scalar_lea.vmem %s29_s13, 256  ;;  %p226_p4 = scmp.lt.s32.totalorder %s29_s13, %s29_s13 }
   0xb   :  { %p222_p3 = scmp.ne.s32.totalorder %s29_s13, %s221_s23  ;;  %p227_p5 = scmp.lt.s32.totalorder %s221_s23, %s221_s23 }
   0xd   :  { %p228_p6 = por %p227_p5, %p226_p4 }
   0xf   :  { %p229_p7 = pnand %p228_p6, %p222_p3 }
  0x11   :  { %232 = shalt.err (!%p229_p7)
}
  0x12   :  { %s307_s24 = smov 64   ;;  %s308_s25 = smov 4  }
  0x13   :  { %34 = dma.hbm_to_vmem [thread:$0]  %s402_s1, 256, %s29_s13, [#allocation7], %s307_s24, %s307_s24, %s308_s25  }
  0x14   :  { %s233_s30 = scalar_lea.hbm %s401_s0, 128 }
  0x15   :  { %p234_p8 = scmp.ne.s32.totalorder %s401_s0, %s233_s30  ;;  %p237_p9 = scmp.lt.u32.totalorder %s233_s30, %s401_s0 }
  0x17   :  { %p239_p10 = pnand %p237_p9, %p234_p8 }
  0x19   :  { %242 = shalt.err (!%p239_p10)
}
  0x1a   :  { %s243_s8 = scalar_lea.vmem %s333_s15, 128  ;;  %p248_p12 = scmp.lt.s32.totalorder %s333_s15, %s333_s15 }
  0x1b   :  { %p244_p11 = scmp.ne.s32.totalorder %s333_s15, %s243_s8  ;;  %p249_p13 = scmp.lt.s32.totalorder %s243_s8, %s243_s8 }
  0x1d   :  { %p250_p0 = por %p249_p13, %p248_p12 }
  0x1f   :  { %p251_p1 = pnand %p250_p0, %p244_p11 }
  0x21   :  { %254 = shalt.err (!%p251_p1)
}
  0x22   :  { %22 = dma.hbm_to_vmem [thread:$0]  %s401_s0, 128, %s333_s15, [#allocation4], %s307_s24, %s307_s24, %s308_s25  }
  0x23   :  { %s309_s10 = smov [#allocation8]   ;;  %s255_s14 = scalar_lea.hbm %s403_s2, 16 }
  0x24   :  { %s41_s11 = sshll.u32 %s309_s10, 4  ;;  %p256_p2 = scmp.ne.s32.totalorder %s403_s2, %s255_s14  ;;  %s42_s11 = int_to_ptr.vmem [resolvable:$true] %s41_s11 }
  0x25   :  { %p259_p3 = scmp.lt.u32.totalorder %s255_s14, %s403_s2 }
  0x27   :  { %p261_p4 = pnand %p259_p3, %p256_p2 }
  0x29   :  { %264 = shalt.err (!%p261_p4)
}
  0x2a   :  { %s265_s20 = scalar_lea.vmem %s42_s11, 16  ;;  %s269_s0 = scalar_lea.vmem %s42_s11, 32 }
  0x2b   :  { %p266_p5 = scmp.ne.s32.totalorder %s42_s11, %s265_s20  ;;  %p270_p6 = scmp.lt.s32.totalorder %s42_s11, %s42_s11 }
  0x2c   :  { %p271_p7 = scmp.lt.s32.totalorder %s269_s0, %s265_s20 }
  0x2e   :  { %p272_p8 = por %p271_p7, %p270_p6 }
  0x30   :  { %p273_p9 = pnand %p272_p8, %p266_p5 }
  0x32   :  { %276 = shalt.err (!%p273_p9)
}
  0x33   :  { %44 = dma.hbm_to_vmem [thread:$0]  %s403_s2, 16, %s42_s11, [#allocation7]  }
  0x34   :  { %299 = dma.done.wait [#allocation4], 128  }
  0x35   :  { %300 = vsyncadd [#allocation4], 4294967168 }
  0x36   :  { %301 = dma.done.wait [#allocation7], 272  }
  0x37   :  { %302 = vsyncadd [#allocation7], 4294967024  ;;  %vm59_vm0 = vcmask 785408   ;;  %v310_v0 = vmov 0.0   ;;  %vm311_vm1 = vmmov 0   ;;  %v208_v1 = vld [vmem:[#allocation6] sm:$0xff]  }
  0x38   :  { %60 = vst.msk [vmem:[#allocation2] sm:$0xff] %vm59_vm0, %v310_v0  ;;  %61 = vst.msk [vmem:[#allocation2 + $0x8] sm:$0xff] %vm59_vm0, %v310_v0  ;;  %192 = vmatprep.subr.bf16.mxu0 %v310_v0  ;;  %196 = vmatprep.mubr.msk.bf16.mxu0 %vm311_vm1, %v310_v0  ;;  %v209_v2 = vld [vmem:[#allocation6 + $0x8] sm:$0xff]   ;;  %v210_v3 = vld [vmem:[#allocation3] sm:$0xff]   ;;  %vm87_vm2 = vcmask 261120   ;;  %vm159_vm3 = vcmask 781312  }
  0x39   :  { %193 = vmatpush3.bf16.msra.mxu0 %v208_v1  ;;  %v184_v12 = vld [vmem:[#allocation8] ss:$0 sm:$0xff]  ;;  %s312_s2 = smov [#allocation9]  }
  0x3a   :  { %194 = vmatprep.subr.bf16.mxu0 %v310_v0  ;;  %s167_s22 = sshll.u32 %s312_s2, 4  ;;  %s168_s22 = int_to_ptr.vmem [resolvable:$true] %s167_s22 }
  0x3b   :  { %s277_s23 = scalar_lea.vmem %s168_s22, 128  ;;  %p282_p11 = scmp.lt.s32.totalorder %s168_s22, %s168_s22 }
  0x3c   :  { %p278_p10 = scmp.ne.s32.totalorder %s168_s22, %s277_s23  ;;  %p283_p12 = scmp.lt.s32.totalorder %s277_s23, %s277_s23 }
  0x3d   :  { %195 = vmatpush3.bf16.msra.mxu0 %v209_v2 }
  0x3e   :  { %p284_p13 = por %p283_p12, %p282_p11 }
  0x3f   :  { %v62_v4 = vld [vmem:[#allocation2] sm:$0xff]  ;;  %v63_v6 = vld [vmem:[#allocation2 + $0x8] sm:$0xff] }
  0x40   :  { %197 = vmatmul.mubr.msk.bf16.vlgmr.msra.gmra.mrb[0].mxu0 %vm87_vm2, %v210_v3  ;;  %p285_p0 = pnand %p284_p13, %p278_p10 }
 0x113   :  { %v125_v5 = vpop.f32.mrb[0].mxu0 }
 0x114   :  { %v132_v7 = vadd.f32 %v125_v5, %v62_v4  ;;  %v198_v8 = vpop.f32.mrb[1].mxu0 }
 0x115   :  { %v128_v9 = vpop.f32.mrb[2].mxu0 }
 0x116   :  { %135 = vst.msk [vmem:[#allocation2] sm:$0xff] %vm59_vm0, %v132_v7  ;;  %v133_v10 = vadd.f32 %v128_v9, %v63_v6  ;;  %v199_v11 = vpop.f32.mrb[3].mxu0 }
 0x118   :  { %136 = vst.msk [vmem:[#allocation2 + $0x8] sm:$0xff] %vm59_vm0, %v133_v10 }
 0x11d   :  { %v140_v13 = vld [vmem:[#allocation2] sm:$0xff] }
 0x11e   :  { %v149_v14 = vadd.f32 %v184_v12, %v140_v13 }
 0x11f   :  { %v141_v15 = vld [vmem:[#allocation2 + $0x8] sm:$0xff] }
 0x120   :  { %v150_v16 = vadd.f32 %v184_v12, %v141_v15  ;;  %v187_v17 = vpack.c.bf16 %v149_v14, %v149_v14 }
 0x122   :  { %v188_v18 = vpack.c.bf16 %v150_v16, %v150_v16  ;;  %160 = vst.msk [vmem:[#allocation9] sm:$0xf] %vm159_vm3, %v187_v17 }
 0x124   :  { %161 = vst.msk [vmem:[#allocation9 + $0x4] sm:$0xf] %vm159_vm3, %v188_v18 }
 0x125   :  { %288 = shalt.err (!%p285_p0)
}
 0x126   :  { %s289_s28 = scalar_lea.hbm %s404_s3, 128 }
 0x127   :  { %p290_p1 = scmp.ne.s32.totalorder %s404_s3, %s289_s28  ;;  %p293_p2 = scmp.lt.u32.totalorder %s289_s28, %s404_s3 }
 0x129   :  { %p295_p3 = pnand %p293_p2, %p290_p1 }
 0x12b   :  { %298 = shalt.err (!%p295_p3)
}
 0x12c   :  { %173 = dma.vmem_to_hbm [thread:$0]  %s168_s22, 128, %s404_s3, [#allocation5], %s307_s24, %s307_s24, %s308_s25  }
 0x12d   :  { %303 = dma.done.wait [#allocation5], 128  }
 0x12e   :  { %304 = vsyncadd [#allocation5], 4294967168 }
 0x12f   :  { %177 = vsyncpa [#allocation4], 1 }
 0x130   :  { %178 = vsyncpa [#allocation7], 1 }
 0x131   :  { %179 = vsyncpa [#allocation5], 1 }

// kernel: _lambda_.31
= control target key start
LH: loop header
LB: loop body
LE: loop exit
PB: predicated region body
PF: predicated region fallthrough
CT: control target
= control target key end

     0   :  { %11 = vsyncpa [#allocation4], 0  ;;  %s644_s0 = inlined_call_operand.hbm [shape: bf16[16,32], index: 0, kind: input, shape index: {}]   ;;  %s645_s1 = inlined_call_operand.hbm [shape: bf16[32,32], index: 1, kind: input, shape index: {}]   ;;  %s646_s2 = inlined_call_operand.hbm [shape: f32[1,32], index: 2, kind: input, shape index: {}]   ;;  %s647_s3 = inlined_call_operand.hbm [shape: bf16[16,32], index: 3, kind: input, shape index: {}]   ;;  %s648_s4 = inlined_call_operand.hbm [shape: f32[1,32], index: 4, kind: input, shape index: {}]   ;;  %s649_s5 = inlined_call_operand.hbm [shape: f32[1,32], index: 5, kind: input, shape index: {}]   ;;  %s650_s6 = inlined_call_operand.hbm [shape: bf16[16,32], index: 6, kind: output, shape index: {}]  }
   0x1   :  { %12 = vsyncpa [#allocation7], 0 }
   0x2   :  { %13 = vsyncpa [#allocation10], 0 }
   0x3   :  { %14 = vsyncpa [#allocation13], 0 }
   0x4   :  { %15 = vsyncpa [#allocation5], 0  ;;  %s486_s21 = smov [#allocation6]   ;;  %s487_s23 = smov [#allocation9]  }
   0x5   :  { %s33_s22 = sshll.u32 %s486_s21, 4  ;;  %s55_s24 = sshll.u32 %s487_s23, 4  ;;  %s34_s22 = int_to_ptr.vmem [resolvable:$true] %s33_s22  ;;  %s532_s24 = int_to_ptr.vmem [resolvable:$true] %s55_s24 }
   0x6   :  { %s322_s27 = scalar_lea.hbm %s645_s1, 256 }
   0x7   :  { %p323_p0 = scmp.ne.s32.totalorder %s645_s1, %s322_s27  ;;  %p326_p1 = scmp.lt.u32.totalorder %s322_s27, %s645_s1 }
   0x9   :  { %p328_p2 = pnand %p326_p1, %p323_p0 }
   0xb   :  { %331 = shalt.err (!%p328_p2)
}
   0xc   :  { %s332_s8 = scalar_lea.vmem %s34_s22, 256  ;;  %p337_p4 = scmp.lt.s32.totalorder %s34_s22, %s34_s22 }
   0xd   :  { %p333_p3 = scmp.ne.s32.totalorder %s34_s22, %s332_s8  ;;  %p338_p5 = scmp.lt.s32.totalorder %s332_s8, %s332_s8 }
   0xf   :  { %p339_p6 = por %p338_p5, %p337_p4 }
  0x11   :  { %p340_p7 = pnand %p339_p6, %p333_p3 }
  0x13   :  { %343 = shalt.err (!%p340_p7)
}
  0x14   :  { %s488_s9 = smov 64   ;;  %s489_s10 = smov 4  }
  0x15   :  { %39 = dma.hbm_to_vmem [thread:$0]  %s645_s1, 256, %s34_s22, [#allocation7], %s488_s9, %s488_s9, %s489_s10  }
  0x16   :  { %s344_s15 = scalar_lea.hbm %s647_s3, 128 }
  0x17   :  { %p345_p8 = scmp.ne.s32.totalorder %s647_s3, %s344_s15  ;;  %p348_p9 = scmp.lt.u32.totalorder %s344_s15, %s647_s3 }
  0x19   :  { %p350_p10 = pnand %p348_p9, %p345_p8 }
  0x1b   :  { %353 = shalt.err (!%p350_p10)
}
  0x1c   :  { %s354_s20 = scalar_lea.vmem %s532_s24, 128  ;;  %p359_p12 = scmp.lt.s32.totalorder %s532_s24, %s532_s24 }
  0x1d   :  { %p355_p11 = scmp.ne.s32.totalorder %s532_s24, %s354_s20  ;;  %p360_p13 = scmp.lt.s32.totalorder %s354_s20, %s354_s20 }
  0x1f   :  { %p361_p0 = por %p360_p13, %p359_p12 }
  0x21   :  { %p362_p1 = pnand %p361_p0, %p355_p11 }
  0x23   :  { %365 = shalt.err (!%p362_p1)
}
  0x24   :  { %61 = dma.hbm_to_vmem [thread:$0]  %s647_s3, 128, %s532_s24, [#allocation10], %s488_s9, %s488_s9, %s489_s10  }
  0x25   :  { %s490_s22 = smov [#allocation3]   ;;  %s491_s25 = smov [#allocation8]  }
  0x26   :  { %s21_s23 = sshll.u32 %s490_s22, 4  ;;  %s46_s26 = sshll.u32 %s491_s25, 4  ;;  %s22_s23 = int_to_ptr.vmem [resolvable:$true] %s21_s23  ;;  %s47_s26 = int_to_ptr.vmem [resolvable:$true] %s46_s26 }
  0x27   :  { %s366_s29 = scalar_lea.hbm %s644_s0, 128 }
  0x28   :  { %p367_p2 = scmp.ne.s32.totalorder %s644_s0, %s366_s29  ;;  %p370_p3 = scmp.lt.u32.totalorder %s366_s29, %s644_s0 }
  0x2a   :  { %p372_p4 = pnand %p370_p3, %p367_p2 }
  0x2c   :  { %375 = shalt.err (!%p372_p4)
}
  0x2d   :  { %s376_s3 = scalar_lea.vmem %s22_s23, 128  ;;  %p381_p6 = scmp.lt.s32.totalorder %s22_s23, %s22_s23 }
  0x2e   :  { %p377_p5 = scmp.ne.s32.totalorder %s22_s23, %s376_s3  ;;  %p382_p7 = scmp.lt.s32.totalorder %s376_s3, %s376_s3 }
  0x30   :  { %p383_p8 = por %p382_p7, %p381_p6 }
  0x32   :  { %p384_p9 = pnand %p383_p8, %p377_p5 }
  0x34   :  { %387 = shalt.err (!%p384_p9)
}
  0x35   :  { %27 = dma.hbm_to_vmem [thread:$0]  %s644_s0, 128, %s22_s23, [#allocation4], %s488_s9, %s488_s9, %s489_s10  }
  0x36   :  { %s388_s15 = scalar_lea.hbm %s646_s2, 16 }
  0x37   :  { %p389_p10 = scmp.ne.s32.totalorder %s646_s2, %s388_s15  ;;  %p392_p11 = scmp.lt.u32.totalorder %s388_s15, %s646_s2 }
  0x39   :  { %p394_p12 = pnand %p392_p11, %p389_p10 }
  0x3b   :  { %397 = shalt.err (!%p394_p12)
}
  0x3c   :  { %s398_s20 = scalar_lea.vmem %s47_s26, 16  ;;  %s402_s1 = scalar_lea.vmem %s47_s26, 32 }
  0x3d   :  { %p399_p13 = scmp.ne.s32.totalorder %s47_s26, %s398_s20  ;;  %p403_p0 = scmp.lt.s32.totalorder %s47_s26, %s47_s26 }
  0x3e   :  { %p404_p1 = scmp.lt.s32.totalorder %s402_s1, %s398_s20 }
  0x40   :  { %p405_p2 = por %p404_p1, %p403_p0 }
  0x42   :  { %p406_p3 = pnand %p405_p2, %p399_p13 }
  0x44   :  { %409 = shalt.err (!%p406_p3)
}
  0x45   :  { %49 = dma.hbm_to_vmem [thread:$0]  %s646_s2, 16, %s47_s26, [#allocation7]  }
  0x46   :  { %s492_s22 = smov [#allocation11]   ;;  %s493_s25 = smov [#allocation12]  }
  0x47   :  { %s68_s23 = sshll.u32 %s492_s22, 4  ;;  %s78_s27 = sshll.u32 %s493_s25, 4  ;;  %s69_s23 = int_to_ptr.vmem [resolvable:$true] %s68_s23  ;;  %s79_s27 = int_to_ptr.vmem [resolvable:$true] %s78_s27 }
  0x48   :  { %s410_s30 = scalar_lea.hbm %s648_s4, 16 }
  0x49   :  { %p411_p4 = scmp.ne.s32.totalorder %s648_s4, %s410_s30  ;;  %p414_p5 = scmp.lt.u32.totalorder %s410_s30, %s648_s4 }
  0x4b   :  { %p416_p6 = pnand %p414_p5, %p411_p4 }
  0x4d   :  { %419 = shalt.err (!%p416_p6)
}
  0x4e   :  { %s420_s2 = scalar_lea.vmem %s69_s23, 16  ;;  %s424_s26 = scalar_lea.vmem %s69_s23, 32 }
  0x4f   :  { %p421_p7 = scmp.ne.s32.totalorder %s69_s23, %s420_s2  ;;  %p425_p8 = scmp.lt.s32.totalorder %s69_s23, %s69_s23 }
  0x50   :  { %p426_p9 = scmp.lt.s32.totalorder %s424_s26, %s420_s2 }
  0x52   :  { %p427_p10 = por %p426_p9, %p425_p8 }
  0x54   :  { %p428_p11 = pnand %p427_p10, %p421_p7 }
  0x56   :  { %431 = shalt.err (!%p428_p11)
}
  0x57   :  { %71 = dma.hbm_to_vmem [thread:$0]  %s648_s4, 16, %s69_s23, [#allocation10]  }
  0x58   :  { %s432_s15 = scalar_lea.hbm %s649_s5, 16 }
  0x59   :  { %p433_p12 = scmp.ne.s32.totalorder %s649_s5, %s432_s15  ;;  %p436_p13 = scmp.lt.u32.totalorder %s432_s15, %s649_s5 }
  0x5b   :  { %p438_p0 = pnand %p436_p13, %p433_p12 }
  0x5d   :  { %441 = shalt.err (!%p438_p0)
}
  0x5e   :  { %s442_s20 = scalar_lea.vmem %s79_s27, 16  ;;  %s446_s1 = scalar_lea.vmem %s79_s27, 32 }
  0x5f   :  { %p443_p1 = scmp.ne.s32.totalorder %s79_s27, %s442_s20  ;;  %p447_p2 = scmp.lt.s32.totalorder %s79_s27, %s79_s27 }
  0x60   :  { %p448_p3 = scmp.lt.s32.totalorder %s446_s1, %s442_s20 }
  0x62   :  { %p449_p4 = por %p448_p3, %p447_p2 }
  0x64   :  { %p450_p5 = pnand %p449_p4, %p443_p1 }
  0x66   :  { %453 = shalt.err (!%p450_p5)
}
  0x67   :  { %81 = dma.hbm_to_vmem [thread:$0]  %s649_s5, 16, %s79_s27, [#allocation13]  }
  0x68   :  { %476 = dma.done.wait [#allocation4], 128  }
  0x69   :  { %477 = vsyncadd [#allocation4], 4294967168 }
  0x6a   :  { %478 = dma.done.wait [#allocation7], 272  }
  0x6b   :  { %479 = vsyncadd [#allocation7], 4294967024 }
  0x6c   :  { %480 = dma.done.wait [#allocation10], 144  }
  0x6d   :  { %481 = vsyncadd [#allocation10], 4294967152 }
  0x6e   :  { %482 = dma.done.wait [#allocation13], 16  }
  0x6f   :  { %483 = vsyncadd [#allocation13], 4294967280  ;;  %vm105_vm0 = vcmask 261120   ;;  %v494_v0 = vmov 0.0   ;;  %vm495_vm1 = vmmov 0   ;;  %v315_v1 = vld [vmem:[#allocation6] sm:$0xff]  }
  0x70   :  { %106 = vst.msk [vmem:[#allocation2] sm:$0xff] %vm105_vm0, %v494_v0  ;;  %107 = vst.msk [vmem:[#allocation2 + $0x8] sm:$0xff] %vm105_vm0, %v494_v0  ;;  %296 = vmatprep.subr.bf16.mxu0 %v494_v0  ;;  %300 = vmatprep.mubr.msk.bf16.mxu0 %vm495_vm1, %v494_v0  ;;  %v316_v2 = vld [vmem:[#allocation6 + $0x8] sm:$0xff]   ;;  %v317_v3 = vld [vmem:[#allocation3] sm:$0xff]   ;;  %vm255_vm2 = vcmask 257024   ;;  %s496_s5 = smov [#allocation14]  }
  0x71   :  { %297 = vmatpush3.bf16.msra.mxu0 %v315_v1  ;;  %v290_v12 = vld [vmem:[#allocation9] sm:$0xff]   ;;  %v282_v16 = vld [vmem:[#allocation8] ss:$0 sm:$0xff]  ;;  %v283_v41 = vld [vmem:[#allocation11] ss:$0 sm:$0xff]  ;;  %s263_s21 = sshll.u32 %s496_s5, 4  ;;  %s264_s21 = int_to_ptr.vmem [resolvable:$true] %s263_s21 }
  0x72   :  { %298 = vmatprep.subr.bf16.mxu0 %v494_v0  ;;  %v291_v13 = vunpack.c.l.bf16 %v290_v12  ;;  %v292_v14 = vunpack.c.h.bf16 %v290_v12  ;;  %v284_v43 = vld [vmem:[#allocation12] ss:$0 sm:$0xff]  ;;  %s454_s22 = scalar_lea.vmem %s264_s21, 128  ;;  %p459_p7 = scmp.lt.s32.totalorder %s264_s21, %s264_s21 }
  0x73   :  { %p455_p6 = scmp.ne.s32.totalorder %s264_s21, %s454_s22  ;;  %p460_p8 = scmp.lt.s32.totalorder %s454_s22, %s454_s22 }
  0x75   :  { %299 = vmatpush3.bf16.msra.mxu0 %v316_v2  ;;  %p461_p9 = por %p460_p8, %p459_p7 }
  0x77   :  { %v108_v4 = vld [vmem:[#allocation2] sm:$0xff]  ;;  %v109_v6 = vld [vmem:[#allocation2 + $0x8] sm:$0xff]  ;;  %p462_p10 = pnand %p461_p9, %p455_p6 }
  0x78   :  { %301 = vmatmul.mubr.msk.bf16.vlgmr.msra.gmra.mrb[0].mxu0 %vm105_vm0, %v317_v3 }
 0x14b   :  { %v171_v5 = vpop.f32.mrb[0].mxu0 }
 0x14c   :  { %v178_v7 = vadd.f32 %v171_v5, %v108_v4  ;;  %v302_v8 = vpop.f32.mrb[1].mxu0 }
 0x14d   :  { %v174_v9 = vpop.f32.mrb[2].mxu0 }
 0x14e   :  { %180 = vst.msk [vmem:[#allocation2] sm:$0xff] %vm105_vm0, %v178_v7  ;;  %v179_v10 = vadd.f32 %v174_v9, %v109_v6  ;;  %v303_v11 = vpop.f32.mrb[3].mxu0 }
 0x150   :  { %181 = vst.msk [vmem:[#allocation2 + $0x8] sm:$0xff] %vm105_vm0, %v179_v10 }
 0x155   :  { %v189_v15 = vld [vmem:[#allocation2] sm:$0xff] }
 0x156   :  { %v191_v17 = vadd.f32 %v291_v13, %v189_v15 }
 0x157   :  { %v190_v18 = vld [vmem:[#allocation2 + $0x8] sm:$0xff] }
 0x158   :  { %v200_v19 = vadd.f32 %v282_v16, %v191_v17  ;;  %v192_v20 = vadd.f32 %v292_v14, %v190_v18 }
 0x15a   :  { %v202_v21 = vsel %vm105_vm0, %v200_v19, 0.0  ;;  %v201_v22 = vadd.f32 %v282_v16, %v192_v20 }
 0x15b   :  { %203 = vadd.xlane.f32.xlu0 %v202_v21 }
 0x15c   :  { %v205_v23 = vsel %vm105_vm0, %v201_v22, 0.0 }
 0x15f   :  { %206 = vadd.xlane.f32.xlu0 %v205_v23 }
 0x1e8   :  { %v204_v24 = vpop.xlane.xlu0 %203 }
 0x1e9   :  { %v209_v25 = vmul.f32 0.03125, %v204_v24 }
 0x1eb   :  { %v211_v26 = vsub.f32 %v200_v19, %v209_v25 }
 0x1ec   :  { %v207_v27 = vpop.xlane.xlu0 %206 }
 0x1ed   :  { %v210_v28 = vmul.f32 0.03125, %v207_v27  ;;  %v213_v29 = vmul.f32 %v211_v26, %v211_v26 }
 0x1ef   :  { %v212_v30 = vsub.f32 %v201_v22, %v210_v28  ;;  %v215_v31 = vsel %vm105_vm0, %v213_v29, 0.0 }
 0x1f0   :  { %216 = vadd.xlane.f32.xlu1 %v215_v31 }
 0x1f1   :  { %v214_v32 = vmul.f32 %v212_v30, %v212_v30 }
 0x1f3   :  { %v218_v33 = vsel %vm105_vm0, %v214_v32, 0.0 }
 0x1f4   :  { %219 = vadd.xlane.f32.xlu1 %v218_v33 }
 0x27d   :  { %v217_v34 = vpop.xlane.xlu1 %216 }
 0x27e   :  { %v221_v35 = vmul.f32 0.03125, %v217_v34 }
 0x280   :  { %v223_v36 = vadd.f32 1e-05, %v221_v35 }
 0x281   :  { %v220_v37 = vpop.xlane.xlu1 %219 }
 0x282   :  { %318 = vrsqrt.f32 %v223_v36  ;;  %v222_v38 = vmul.f32 0.03125, %v220_v37 }
 0x284   :  { %v224_v39 = vadd.f32 1e-05, %v222_v38 }
 0x286   :  { %320 = vrsqrt.f32 %v224_v39 }
 0x28c   :  { %v319_v40 = vpop.eup %318 }
 0x28d   :  { %v227_v42 = vmul.f32 %v319_v40, %v211_v26 }
 0x28f   :  { %v236_v44 = vmul.f32 %v283_v41, %v227_v42 }
 0x290   :  { %v321_v45 = vpop.eup %320 }
 0x291   :  { %v228_v46 = vmul.f32 %v321_v45, %v212_v30  ;;  %v245_v47 = vadd.f32 %v284_v43, %v236_v44 }
 0x293   :  { %v237_v48 = vmul.f32 %v283_v41, %v228_v46  ;;  %v287_v49 = vpack.c.bf16 %v245_v47, %v245_v47 }
 0x295   :  { %v246_v50 = vadd.f32 %v284_v43, %v237_v48  ;;  %256 = vst.msk [vmem:[#allocation14] sm:$0xf] %vm255_vm2, %v287_v49 }
 0x297   :  { %v288_v51 = vpack.c.bf16 %v246_v50, %v246_v50 }
 0x299   :  { %257 = vst.msk [vmem:[#allocation14 + $0x4] sm:$0xf] %vm255_vm2, %v288_v51 }
 0x29a   :  { %465 = shalt.err (!%p462_p10)
}
 0x29b   :  { %s466_s27 = scalar_lea.hbm %s650_s6, 128 }
 0x29c   :  { %p467_p11 = scmp.ne.s32.totalorder %s650_s6, %s466_s27  ;;  %p470_p12 = scmp.lt.u32.totalorder %s466_s27, %s650_s6 }
 0x29e   :  { %p472_p13 = pnand %p470_p12, %p467_p11 }
 0x2a0   :  { %475 = shalt.err (!%p472_p13)
}
 0x2a1   :  { %269 = dma.vmem_to_hbm [thread:$0]  %s264_s21, 128, %s650_s6, [#allocation5], %s488_s9, %s488_s9, %s489_s10  }
 0x2a2   :  { %484 = dma.done.wait [#allocation5], 128  }
 0x2a3   :  { %485 = vsyncadd [#allocation5], 4294967168 }
 0x2a4   :  { %273 = vsyncpa [#allocation4], 1 }
 0x2a5   :  { %274 = vsyncpa [#allocation7], 1 }
 0x2a6   :  { %275 = vsyncpa [#allocation10], 1 }
 0x2a7   :  { %276 = vsyncpa [#allocation13], 1 }
 0x2a8   :  { %277 = vsyncpa [#allocation5], 1 }

// kernel: _lambda_.32
= control target key start
LH: loop header
LB: loop body
LE: loop exit
PB: predicated region body
PF: predicated region fallthrough
CT: control target
= control target key end

     0   :  { %8 = vsyncpa [#allocation4], 0  ;;  %s403_s0 = inlined_call_operand.hbm [shape: bf16[16,32], index: 0, kind: input, shape index: {}]   ;;  %s404_s1 = inlined_call_operand.hbm [shape: bf16[32,64], index: 1, kind: input, shape index: {}]   ;;  %s405_s2 = inlined_call_operand.hbm [shape: f32[1,64], index: 2, kind: input, shape index: {}]   ;;  %s406_s3 = inlined_call_operand.hbm [shape: bf16[16,64], index: 3, kind: output, shape index: {}]  }
   0x1   :  { %9 = vsyncpa [#allocation7], 0 }
   0x2   :  { %10 = vsyncpa [#allocation5], 0  ;;  %s307_s12 = smov [#allocation6]   ;;  %s308_s14 = smov [#allocation3]  }
   0x3   :  { %s28_s13 = sshll.u32 %s307_s12, 4  ;;  %s16_s15 = sshll.u32 %s308_s14, 4  ;;  %s29_s13 = int_to_ptr.vmem [resolvable:$true] %s28_s13  ;;  %s335_s15 = int_to_ptr.vmem [resolvable:$true] %s16_s15 }
   0x4   :  { %s213_s18 = scalar_lea.hbm %s404_s1, 256 }
   0x5   :  { %p214_p0 = scmp.ne.s32.totalorder %s404_s1, %s213_s18  ;;  %p217_p1 = scmp.lt.u32.totalorder %s213_s18, %s404_s1 }
   0x7   :  { %p219_p2 = pnand %p217_p1, %p214_p0 }
   0x9   :  { %222 = shalt.err (!%p219_p2)
}
   0xa   :  { %s223_s23 = scalar_lea.vmem %s29_s13, 256  ;;  %p228_p4 = scmp.lt.s32.totalorder %s29_s13, %s29_s13 }
   0xb   :  { %p224_p3 = scmp.ne.s32.totalorder %s29_s13, %s223_s23  ;;  %p229_p5 = scmp.lt.s32.totalorder %s223_s23, %s223_s23 }
   0xd   :  { %p230_p6 = por %p229_p5, %p228_p4 }
   0xf   :  { %p231_p7 = pnand %p230_p6, %p224_p3 }
  0x11   :  { %234 = shalt.err (!%p231_p7)
}
  0x12   :  { %s309_s24 = smov 64   ;;  %s310_s25 = smov 4  }
  0x13   :  { %34 = dma.hbm_to_vmem [thread:$0]  %s404_s1, 256, %s29_s13, [#allocation7], %s309_s24, %s309_s24, %s310_s25  }
  0x14   :  { %s235_s30 = scalar_lea.hbm %s403_s0, 128 }
  0x15   :  { %p236_p8 = scmp.ne.s32.totalorder %s403_s0, %s235_s30  ;;  %p239_p9 = scmp.lt.u32.totalorder %s235_s30, %s403_s0 }
  0x17   :  { %p241_p10 = pnand %p239_p9, %p236_p8 }
  0x19   :  { %244 = shalt.err (!%p241_p10)
}
  0x1a   :  { %s245_s8 = scalar_lea.vmem %s335_s15, 128  ;;  %p250_p12 = scmp.lt.s32.totalorder %s335_s15, %s335_s15 }
  0x1b   :  { %p246_p11 = scmp.ne.s32.totalorder %s335_s15, %s245_s8  ;;  %p251_p13 = scmp.lt.s32.totalorder %s245_s8, %s245_s8 }
  0x1d   :  { %p252_p0 = por %p251_p13, %p250_p12 }
  0x1f   :  { %p253_p1 = pnand %p252_p0, %p246_p11 }
  0x21   :  { %256 = shalt.err (!%p253_p1)
}
  0x22   :  { %22 = dma.hbm_to_vmem [thread:$0]  %s403_s0, 128, %s335_s15, [#allocation4], %s309_s24, %s309_s24, %s310_s25  }
  0x23   :  { %s311_s10 = smov [#allocation8]   ;;  %s257_s14 = scalar_lea.hbm %s405_s2, 16 }
  0x24   :  { %s41_s11 = sshll.u32 %s311_s10, 4  ;;  %p258_p2 = scmp.ne.s32.totalorder %s405_s2, %s257_s14  ;;  %s42_s11 = int_to_ptr.vmem [resolvable:$true] %s41_s11 }
  0x25   :  { %p261_p3 = scmp.lt.u32.totalorder %s257_s14, %s405_s2 }
  0x27   :  { %p263_p4 = pnand %p261_p3, %p258_p2 }
  0x29   :  { %266 = shalt.err (!%p263_p4)
}
  0x2a   :  { %s267_s20 = scalar_lea.vmem %s42_s11, 16  ;;  %s271_s0 = scalar_lea.vmem %s42_s11, 32 }
  0x2b   :  { %p268_p5 = scmp.ne.s32.totalorder %s42_s11, %s267_s20  ;;  %p272_p6 = scmp.lt.s32.totalorder %s42_s11, %s42_s11 }
  0x2c   :  { %p273_p7 = scmp.lt.s32.totalorder %s271_s0, %s267_s20 }
  0x2e   :  { %p274_p8 = por %p273_p7, %p272_p6 }
  0x30   :  { %p275_p9 = pnand %p274_p8, %p268_p5 }
  0x32   :  { %278 = shalt.err (!%p275_p9)
}
  0x33   :  { %44 = dma.hbm_to_vmem [thread:$0]  %s405_s2, 16, %s42_s11, [#allocation7]  }
  0x34   :  { %301 = dma.done.wait [#allocation4], 128  }
  0x35   :  { %302 = vsyncadd [#allocation4], 4294967168 }
  0x36   :  { %303 = dma.done.wait [#allocation7], 272  }
  0x37   :  { %304 = vsyncadd [#allocation7], 4294967024  ;;  %vm59_vm0 = vcmask 523264   ;;  %v312_v0 = vmov 0.0   ;;  %vm313_vm1 = vmmov 0   ;;  %v210_v1 = vld [vmem:[#allocation6] sm:$0xff]  }
  0x38   :  { %60 = vst.msk [vmem:[#allocation2] sm:$0xff] %vm59_vm0, %v312_v0  ;;  %61 = vst.msk [vmem:[#allocation2 + $0x8] sm:$0xff] %vm59_vm0, %v312_v0  ;;  %194 = vmatprep.subr.bf16.mxu0 %v312_v0  ;;  %198 = vmatprep.mubr.msk.bf16.mxu0 %vm313_vm1, %v312_v0  ;;  %v211_v2 = vld [vmem:[#allocation6 + $0x8] sm:$0xff]   ;;  %v212_v3 = vld [vmem:[#allocation3] sm:$0xff]   ;;  %vm87_vm2 = vcmask 261120   ;;  %vm161_vm3 = vcmask 519168  }
  0x39   :  { %195 = vmatpush3.bf16.msra.mxu0 %v210_v1  ;;  %v186_v12 = vld [vmem:[#allocation8] ss:$0 sm:$0xff]  ;;  %s314_s2 = smov [#allocation9]  }
  0x3a   :  { %196 = vmatprep.subr.bf16.mxu0 %v312_v0  ;;  %s169_s22 = sshll.u32 %s314_s2, 4  ;;  %s170_s22 = int_to_ptr.vmem [resolvable:$true] %s169_s22 }
  0x3b   :  { %s279_s23 = scalar_lea.vmem %s170_s22, 128  ;;  %p284_p11 = scmp.lt.s32.totalorder %s170_s22, %s170_s22 }
  0x3c   :  { %p280_p10 = scmp.ne.s32.totalorder %s170_s22, %s279_s23  ;;  %p285_p12 = scmp.lt.s32.totalorder %s279_s23, %s279_s23 }
  0x3d   :  { %197 = vmatpush3.bf16.msra.mxu0 %v211_v2 }
  0x3e   :  { %p286_p13 = por %p285_p12, %p284_p11 }
  0x3f   :  { %v62_v4 = vld [vmem:[#allocation2] sm:$0xff]  ;;  %v63_v6 = vld [vmem:[#allocation2 + $0x8] sm:$0xff] }
  0x40   :  { %199 = vmatmul.mubr.msk.bf16.vlgmr.msra.gmra.mrb[0].mxu0 %vm87_vm2, %v212_v3  ;;  %p287_p0 = pnand %p286_p13, %p280_p10 }
 0x113   :  { %v125_v5 = vpop.f32.mrb[0].mxu0 }
 0x114   :  { %v132_v7 = vadd.f32 %v125_v5, %v62_v4  ;;  %v200_v8 = vpop.f32.mrb[1].mxu0 }
 0x115   :  { %v128_v9 = vpop.f32.mrb[2].mxu0 }
 0x116   :  { %135 = vst.msk [vmem:[#allocation2] sm:$0xff] %vm59_vm0, %v132_v7  ;;  %v133_v10 = vadd.f32 %v128_v9, %v63_v6  ;;  %v201_v11 = vpop.f32.mrb[3].mxu0 }
 0x118   :  { %136 = vst.msk [vmem:[#allocation2 + $0x8] sm:$0xff] %vm59_vm0, %v133_v10 }
 0x11d   :  { %v140_v13 = vld [vmem:[#allocation2] sm:$0xff] }
 0x11e   :  { %v149_v14 = vadd.f32 %v186_v12, %v140_v13 }
 0x11f   :  { %v141_v15 = vld [vmem:[#allocation2 + $0x8] sm:$0xff] }
 0x120   :  { %v150_v16 = vadd.f32 %v186_v12, %v141_v15  ;;  %v151_v17 = vmax.f32 %v149_v14, 0.0 }
 0x122   :  { %v152_v18 = vmax.f32 %v150_v16, 0.0  ;;  %v189_v19 = vpack.c.bf16 %v151_v17, %v151_v17 }
 0x124   :  { %v190_v20 = vpack.c.bf16 %v152_v18, %v152_v18  ;;  %162 = vst.msk [vmem:[#allocation9] sm:$0xf] %vm161_vm3, %v189_v19 }
 0x126   :  { %163 = vst.msk [vmem:[#allocation9 + $0x4] sm:$0xf] %vm161_vm3, %v190_v20 }
 0x127   :  { %290 = shalt.err (!%p287_p0)
}
 0x128   :  { %s291_s28 = scalar_lea.hbm %s406_s3, 128 }
 0x129   :  { %p292_p1 = scmp.ne.s32.totalorder %s406_s3, %s291_s28  ;;  %p295_p2 = scmp.lt.u32.totalorder %s291_s28, %s406_s3 }
 0x12b   :  { %p297_p3 = pnand %p295_p2, %p292_p1 }
 0x12d   :  { %300 = shalt.err (!%p297_p3)
}
 0x12e   :  { %175 = dma.vmem_to_hbm [thread:$0]  %s170_s22, 128, %s406_s3, [#allocation5], %s309_s24, %s309_s24, %s310_s25  }
 0x12f   :  { %305 = dma.done.wait [#allocation5], 128  }
 0x130   :  { %306 = vsyncadd [#allocation5], 4294967168 }
 0x131   :  { %179 = vsyncpa [#allocation4], 1 }
 0x132   :  { %180 = vsyncpa [#allocation7], 1 }
 0x133   :  { %181 = vsyncpa [#allocation5], 1 }

// kernel: _lambda_.30
= control target key start
LH: loop header
LB: loop body
LE: loop exit
PB: predicated region body
PF: predicated region fallthrough
CT: control target
= control target key end

     0   :  { %7 = vsyncpa [#allocation3], 0  ;;  %s1464_s0 = inlined_call_operand.hbm [shape: bf16[2,8,96], index: 0, kind: input, shape index: {}, may-alias: {0,1}]   ;;  %s1465_s1 = inlined_call_operand.hbm [shape: bf16[2,8,96], index: 1, kind: input, shape index: {}, may-alias: {0,1}]   ;;  %s1466_s2 = inlined_call_operand.hbm [shape: bf16[2,8,32], index: 2, kind: output, shape index: {}]  }
   0x1   :  { %9 = vsyncpa [#allocation3 + $0x1], 0 }
   0x2   :  { %10 = vsyncpa [#allocation6], 0 }
   0x3   :  { %12 = vsyncpa [#allocation6 + $0x1], 0 }
   0x4   :  { %13 = vsyncpa [#allocation4], 0 }
   0x5   :  { %15 = vsyncpa [#allocation4 + $0x1], 0  ;;  %s1177_s9 = smov 0   ;;  %s1179_s10 = smov 0  }
   0x6   :  { %s1181_s11 = smov 0   ;;  %s1183_s12 = smov 0  }
   0x7   :  { %s1185_s13 = smov 0   ;;  %s1187_s14 = smov 0  }
   0x8 LB: > { %s804_s15 = sadd.s32 4294967295, %s1141_s14   ;;  %s805_s16 = sadd.s32 4294967294, %s1141_s14   ;;  %s1141_s14 = sphi %s1187_s14, %s21_s14   ;;  %s1137_s13 = sphi %s1185_s13, %s1486_s13   ;;  %s1133_s12 = sphi %s1183_s12, %s1485_s12   ;;  %s1129_s11 = sphi %s1181_s11, %s1484_s11   ;;  %s1125_s10 = sphi %s1179_s10, %s1483_s10   ;;  %s1121_s9 = sphi %s1177_s9, %s1482_s9  }
   0x9   : > { %s33_s17 = sadd.s32 1, %s1137_s13  ;;  %s42_s18 = sadd.s32 1, %s1129_s11 }
   0xa   : > { %p35_p0 = scmp.ge.s32.totalorder %s33_s17, 2  ;;  %p49_p1 = scmp.ne.s32.totalorder %s1129_s11, %s1125_s10 }
   0xb   : > { %p50_p2 = scmp.eq.s32.totalorder %s1141_s14, 0  ;;  %p55_p3 = scmp.ne.s32.totalorder %s1125_s10, %s1121_s9 }
   0xc   : > { %s1488_s17 = smov (%p35_p0, %s33_s17), 0  ;;  %p56_p5 = scmp.eq.s32.totalorder %s804_s15, 0 }
   0xd   : > { %p1218_p4 = por %p50_p2, %p49_p1  ;;  %s37_s20 = ssub.s32 %s1137_s13, %s1488_s17 }
   0xe   : > { %p107_p6 = scmp.eq.s32.totalorder %s804_s15, 1  ;;  %p40_p7 = scmp.eq.s32.totalorder %s37_s20, 0 }
   0xf   : > { %p1224_p8 = por %p56_p5, %p55_p3  ;;  %p113_p10 = scmp.eq.s32.totalorder %s805_s16, 1 }
  0x10   : > { %p1228_p9 = por %p107_p6, %p49_p1  ;;  %p911_p13 = scmp.lt.s32.totalorder %s1141_s14, 2 }
  0x11   : > { %s1470_s21 = scalar_select %p1224_p8, 1, 0 }
  0x12   : > { %s1471_s22 = scalar_select %p1228_p9, 1, 0 }
  0x13   : > { %s1233_s23 = scalar_select %p40_p7, %s1129_s11, %s42_s18  }
  0x14   : > { %p1235_p11 = por %p113_p10, %p55_p3  ;;  %s1242_s25 = sand.u32 1, %s1129_s11  }
  0x15   : > { %s808_s26 = sshll.u32 %s1242_s25, 2  ;;  %s809_s27 = sshll.u32 %s1137_s13, 6 }
  0x16   : > { %s1472_s24 = scalar_select %p1235_p11, 1, 0 }
  0x17   : > { %s1251_s30 = scalar_lea.hbm %s1464_s0, %s809_s27  ;;  %s137_s3 = scalar_lea.vmem [#allocation2], %s808_s26 }
  0x18   : > { %s145_s4 = sshll.u32 %s137_s3, 4  ;;  %p1259_p0 = pnand %p911_p13, %p1218_p4  ;;  %s1255_s4 = int_to_ptr.vmem [resolvable:$true] %s145_s4 }
  0x19   : > { %s134_s6 = scalar_lea.sflag [#allocation3], %s1242_s25  ;;  %s995_s7 = scalar_lea.hbm %s1251_s30, 64 }
  0x1a   : > { %p996_p3 = scmp.ne.s32.totalorder %s1251_s30, %s995_s7  ;;  %p997_p5 = pneg %p1259_p0 }
  0x1b   : > { %s1000_s16 = scalar_lea.hbm %s1464_s0, 128  ;;  %p1001_p4 = scmp.lt.u32.totalorder %s1251_s30, %s1464_s0 }
  0x1c   : > { %p998_p6 = pnand %p997_p5, %p996_p3  ;;  %p1002_p10 = scmp.lt.u32.totalorder %s1000_s16, %s995_s7 }
  0x1d   : > { %p1004_p12 = scmp.lt.u32.totalorder %s995_s7, %s1251_s30 }
  0x1e   : > { %p999_p7 = pneg %p998_p6  ;;  %p1003_p13 = por %p1002_p10, %p1001_p4 }
  0x20   : > { %p1005_p1 = por %p1004_p12, %p1003_p13 }
  0x22   : > { %p1006_p2 = pnand %p1005_p1, %p999_p7 }
  0x24   : > { %1009 = shalt.err (!%p1006_p2)
}
  0x25   : > { %s1010_s20 = scalar_lea.vmem %s1255_s4, 64  ;;  %s1143_s28 = smov [#allocation2]  }
  0x26   : > { %p1011_p3 = scmp.ne.s32.totalorder %s1255_s4, %s1010_s20  ;;  %s1015_s29 = sshll.u32 %s1143_s28, 4  ;;  %s1016_s29 = int_to_ptr.vmem [resolvable:$false] %s1015_s29 }
  0x27   : > { %s1017_s3 = scalar_lea.vmem %s1016_s29, 128  ;;  %p1018_p9 = scmp.lt.s32.totalorder %s1255_s4, %s1016_s29 }
  0x28   : > { %p1013_p6 = pnand %p1011_p3, %p997_p5  ;;  %p1019_p4 = scmp.lt.s32.totalorder %s1017_s3, %s1010_s20 }
  0x2a   : > { %p1014_p11 = pneg %p1013_p6  ;;  %p1020_p10 = por %p1019_p4, %p1018_p9 }
  0x2c   : > { %p1021_p12 = pnand %p1020_p10, %p1014_p11 }
  0x2e   : > { %1024 = shalt.err (!%p1021_p12)
}
  0x2f   : > { %903 = dma.hbm_to_vmem [thread:$0]  (!%p1259_p0), %s1251_s30, 64, %s1255_s4, %s134_s6  }
  0x30   : > { %p1474_p1 = scmp.lt.s32.totalorder %s1141_s14, 3  ;;  %p1475_p2 = scmp.ge.s32.totalorder %s1141_s14, 1 }
  0x31   : > { %s1304_s16 = scalar_lea.hbm %s1465_s1, %s809_s27  ;;  %s156_s18 = scalar_lea.vmem [#allocation5], %s808_s26 }
  0x32   : > { %p1295_p7 = pnand %p1475_p2, %p1474_p1  ;;  %s163_s19 = sshll.u32 %s156_s18, 4  ;;  %s164_s19 = int_to_ptr.vmem [resolvable:$true] %s163_s19 }
  0x33   : > { %s153_s30 = scalar_lea.sflag [#allocation6], %s1242_s25  ;;  %s1025_s4 = scalar_lea.hbm %s1304_s16, 64 }
  0x34   : > { %s1476_s7 = scalar_select %p1295_p7, 1, 0 }
  0x35   : > { %p1026_p9 = scmp.ne.s32.totalorder %s1304_s16, %s1025_s4  ;;  %s1030_s27 = scalar_lea.hbm %s1465_s1, 128 }
  0x36   : > { %p1031_p3 = scmp.lt.u32.totalorder %s1304_s16, %s1465_s1  ;;  %p1032_p6 = scmp.lt.u32.totalorder %s1030_s27, %s1025_s4 }
  0x37   : > { %p1028_p11 = pnand %p1026_p9, %p997_p5  ;;  %p1034_p10 = scmp.lt.u32.totalorder %s1025_s4, %s1304_s16 }
  0x38   : > { %p1033_p4 = por %p1032_p6, %p1031_p3 }
  0x39   : > { %p1029_p13 = pneg %p1028_p11 }
  0x3a   : > { %p1035_p12 = por %p1034_p10, %p1033_p4 }
  0x3c   : > { %p1036_p1 = pnand %p1035_p12, %p1029_p13 }
  0x3e   : > { %1039 = shalt.err (!%p1036_p1)
}
  0x3f   : > { %s1040_s25 = scalar_lea.vmem %s164_s19, 64  ;;  %s1144_s26 = smov [#allocation5]  }
  0x40   : > { %p1041_p2 = scmp.ne.s32.totalorder %s164_s19, %s1040_s25  ;;  %s1045_s3 = sshll.u32 %s1144_s26, 4  ;;  %s1046_s3 = int_to_ptr.vmem [resolvable:$false] %s1045_s3 }
  0x41   : > { %s1047_s8 = scalar_lea.vmem %s1046_s3, 128  ;;  %p1048_p8 = scmp.lt.s32.totalorder %s164_s19, %s1046_s3 }
  0x42   : > { %p1043_p9 = pnand %p1041_p2, %p997_p5  ;;  %p1049_p7 = scmp.lt.s32.totalorder %s1047_s8, %s1040_s25 }
  0x44   : > { %p1044_p11 = pneg %p1043_p9  ;;  %p1050_p3 = por %p1049_p7, %p1048_p8 }
  0x46   : > { %p1051_p6 = pnand %p1050_p3, %p1044_p11 }
  0x48   : > { %1054 = shalt.err (!%p1051_p6)
}
  0x49   : > { %906 = dma.hbm_to_vmem [thread:$0]  (!%p1259_p0), %s1304_s16, 64, %s164_s19, %s153_s30  }
  0x4a   : > { %p1477_p13 = scmp.ne.s32.totalorder %s1476_s7, 0 }
  0x4b   : > { %s1331_s15 = sand.u32 (!%p1477_p13), 1, %s1125_s10   ;;  %p1478_p8 = scmp.ne.s32.totalorder (!%p1477_p13), %s1470_s21, 0 }
  0x4c   : > { %172 = sbr.rel (%p1477_p13) target bundleno = 1685 (0x695), region = 28  ;;  %s1334_s18 = sshll.u32 (!%p1477_p13), %s1331_s15, 2 }
  0x4d   : > { %s175_s4 = scalar_lea.sflag (!%p1477_p13), [#allocation3], %s1331_s15  ;;  %s178_s6 = scalar_lea.vmem (!%p1477_p13), [#allocation2], %s1334_s18 }
  0x53   : > { %1108 = dma.done.wait (%p1478_p8), %s175_s4, 64  }
  0x54   : > { %1110 = vsyncadd (%p1478_p8), %s175_s4, 4294967232  ;;  %s184_s5 = scalar_lea.sflag [#allocation6], %s1331_s15  ;;  %s187_s7 = scalar_lea.vmem [#allocation5], %s1334_s18 }
  0x55   : > { %1112 = dma.done.wait (%p1478_p8), %s184_s5, 64  }
  0x56   : > { %1114 = vsyncadd (%p1478_p8), %s184_s5, 4294967232  ;;  %v1145_v0 = vmov 0.0   ;;  %vm1146_vm0 = vmmov 0   ;;  %v1354_v1 = vld [vmem:[%s187_s7] ss:$0 sps:$4 sm:$0xff]   ;;  %s1147_s16 = smov 96  }
  0x57   : > { %846 = vmatprep.subr.bf16.mxu0 %v1145_v0  ;;  %848 = vmatprep.mubr.msk.bf16.mxu0 %vm1146_vm0, %v1145_v0  ;;  %vm221_vm1 = vcmask 64512   ;;  %v214_v4 = vld [vmem:[%s178_s6] sm:$0xf]  ;;  %s1148_s21 = smov 64   ;;  %s1149_s19 = smov 88   ;;  %vm286_vm2 = vcmask 1043456  }
  0x58   : > { %852 = vmatprep.subr.bf16.mxu1 %v1145_v0  ;;  %854 = vmatprep.mubr.msk.bf16.mxu1 %vm1146_vm0, %v1145_v0  ;;  %s1150_s30 = smov 72   ;;  %v819_v18 = vcombine.low %v214_v4, %v214_v4  ;;  %s1151_s20 = smov 120   ;;  %vm679_vm3 = vcmask 130048   ;;  %vm681_vm4 = vcmask 195584   ;;  %vm684_vm5 = vcmask 257024  }
  0x59   : > { %219 = vrot.lane.b32.xlu0 %v1354_v1, %s1147_s16  ;;  %281 = vrot.lane.b32.xlu1 %v1354_v1, %s1148_s21  ;;  %s1152_s27 = smov 80   ;;  %s1153_s28 = smov 112  }
  0x5a   : > { %s1154_s29 = smov 104   ;;  %s1155_s25 = smov 56  }
  0x5b   : > { %s1156_s26 = smov 48   ;;  %s1157_s3 = smov 40  }
  0x5c   : > { %s1158_s8 = smov 8   ;;  %s1159_s4 = smov 16  }
  0x5d   : > { %335 = vrot.lane.b32.xlu1 %v1354_v1, %s1149_s19  ;;  %s1160_s6 = smov 24   ;;  %s827_s5 = sshll.u32 %s1133_s12, 6 }
  0x5e   : > { %s212_s7 = scalar_lea.vmem [#allocation7], %s1334_s18  ;;  %p1479_p5 = scmp.ne.s32.totalorder %s1471_s22, 0 }
  0x5f   : > { %s701_s16 = sshll.u32 %s212_s7, 4  ;;  %s1161_s18 = smov [#allocation7]   ;;  %s1417_s16 = int_to_ptr.vmem [resolvable:$true] %s701_s16 }
  0x60   : > { %s1055_s12 = scalar_lea.vmem %s1417_s16, 64 }
  0x61   : > { %p1056_p0 = scmp.ne.s32.totalorder %s1417_s16, %s1055_s12 }
  0x63   : > { %p1057_p7 = pnand %p1056_p0, %p1479_p5 }
  0x65   : > { %p1058_p4 = pneg %p1057_p7 }
  0xcb   : > { %v220_v2 = vpop.permute.xlu0 %219  ;;  %v282_v11 = vpop.permute.xlu1 %281 }
  0xcc   : > { %v226_v3 = vsel %vm221_vm1, %v220_v2, 0  ;;  %v288_v12 = vsel %vm286_vm2, %v282_v11, 0 }
  0xcd   : > { %847 = vmatpush3.bf16.xpose.msra.mxu0 %v226_v3  ;;  %853 = vmatpush3.bf16.msra.mxu1 %v288_v12 }
  0xce   : > { %864 = vmatprep.subr.bf16.mxu0 %v1145_v0  ;;  %858 = vmatprep.subr.bf16.mxu1 %v1145_v0 }
  0xcf   : > { %v336_v19 = vpop.permute.xlu1 %335 }
  0xd0   : > { %v341_v25 = vsel %vm221_vm1, %v336_v19, 0 }
  0xd4   : > { %849 = vmatmul.mubr.msk.bf16.vlgmr.msra.gmra.mrb[0].mxu0 %vm221_vm1, %v214_v4 }
  0xd5   : > { %866 = vmatprep.mubr.msk.bf16.mxu0 %vm1146_vm0, %v1145_v0 }
 0x1a7   : > { %v262_v5 = vpop.f32.mrb[0].mxu0 }
 0x1a8   : > { %v268_v6 = vmul.f32 0.35355338, %v262_v5  ;;  %v850_v7 = vpop.f32.mrb[1].mxu0 }
 0x1a9   : > { %v265_v8 = vpop.f32.mrb[2].mxu0 }
 0x1aa   : > { %v851_v9 = vpop.f32.mrb[3].mxu0  ;;  %v269_v10 = vsel %vm221_vm1, %v268_v6, -inf }
 0x1ab   : > { %270 = vmax.xlane.f32.xlu0 %v269_v10 }
 0x1c1   : > { %557 = vrot.lane.b32.xlu0 %v1354_v1, %s1150_s30  ;;  %s1415_s30 = scalar_lea.hbm %s1466_s2, %s827_s5 }
 0x238   : > { %v271_v13 = vpop.xlane.xlu0 %270 }
 0x239   : > { %v272_v14 = vsub.f32 %v268_v6, %v271_v13 }
 0x23b   : > { %v273_v15 = vmul.f32 1.442695, %v272_v14 }
 0x23c   : > { %v558_v28 = vpop.permute.xlu0 %557 }
 0x23d   : > { %979 = vpow2.f32 %v273_v15  ;;  %v563_v30 = vsel %vm221_vm1, %v558_v28, 0 }
 0x247   : > { %v980_v16 = vpop.eup %979 }
 0x248   : > { %v275_v17 = vsel %vm221_vm1, %v980_v16, 0.0 }
 0x249   : > { %276 = vadd.xlane.f32.xlu1 %v275_v17 }
 0x25a   : > { %333 = vrot.lane.b32.xlu1 %v819_v18, %s1151_s20  ;;  %s687_s20 = scalar_lea.sflag [#allocation4], %s1331_s15 }
 0x25e   : > { %446 = vrot.lane.b32.xlu1 %v1354_v1, %s1152_s27  ;;  %s1059_s27 = sshll.u32 %s1161_s18, 4  ;;  %s1060_s27 = int_to_ptr.vmem [resolvable:$false] %s1059_s27 }
 0x25f   : > { %p1062_p10 = scmp.lt.s32.totalorder %s1417_s16, %s1060_s27 }
 0x262   : > { %444 = vrot.lane.b32.xlu1 %v819_v18, %s1153_s28  ;;  %s1061_s28 = scalar_lea.vmem %s1060_s27, 128 }
 0x263   : > { %p1063_p12 = scmp.lt.s32.totalorder %s1061_s28, %s1055_s12 }
 0x265   : > { %p1064_p1 = por %p1063_p12, %p1062_p10 }
 0x266   : > { %555 = vrot.lane.b32.xlu1 %v819_v18, %s1154_s29 }
 0x267   : > { %p1065_p2 = pnand %p1064_p1, %p1058_p4 }
 0x2d6   : > { %v277_v20 = vpop.xlane.xlu1 %276 }
 0x2d7   : > { %981 = vrcp.f32 %v277_v20 }
 0x2da   : > { %v334_v23 = vpop.permute.xlu1 %333 }
 0x2de   : > { %v447_v26 = vpop.permute.xlu1 %446 }
 0x2df   : > { %v452_v27 = vsel %vm221_vm1, %v447_v26, 0 }
 0x2e1   : > { %v982_v21 = vpop.eup %981 }
 0x2e2   : > { %v279_v22 = vmul.f32 %v982_v21, %v980_v16  ;;  %v445_v29 = vpop.permute.xlu1 %444 }
 0x2e4   : > { %v280_v24 = vpack.c.bf16 %v279_v22, %v279_v22 }
 0x2e6   : > { %855 = vmatmul.mubr.msk.bf16.vlgmr.msra.gmra.mrb[0].mxu1 %vm221_vm1, %v280_v24  ;;  %v556_v31 = vpop.permute.xlu1 %555 }
 0x2e7   : > { %859 = vmatpush3.bf16.xpose.msra.mxu1 %v341_v25  ;;  %860 = vmatprep.mubr.msk.bf16.mxu1 %vm1146_vm0, %v1145_v0 }
 0x2e8   : > { %870 = vmatprep.subr.bf16.mxu1 %v1145_v0 }
 0x2ee   : > { %861 = vmatmul.mubr.msk.bf16.vlgmr.msra.gmra.mrb[4].mxu1 %vm221_vm1, %v334_v23 }
 0x2ef   : > { %871 = vmatpush3.bf16.xpose.msra.mxu1 %v452_v27  ;;  %872 = vmatprep.mubr.msk.bf16.mxu1 %vm1146_vm0, %v1145_v0 }
 0x2f0   : > { %882 = vmatprep.subr.bf16.mxu1 %v1145_v0 }
 0x2f6   : > { %873 = vmatmul.mubr.msk.bf16.vlgmr.msra.gmra.mrb[8].mxu1 %vm221_vm1, %v445_v29 }
 0x2f7   : > { %883 = vmatpush3.bf16.xpose.msra.mxu1 %v563_v30  ;;  %884 = vmatprep.mubr.msk.bf16.mxu1 %vm1146_vm0, %v1145_v0 }
 0x2fe   : > { %885 = vmatmul.mubr.msk.bf16.vlgmr.msra.gmra.mrb[12].mxu1 %vm221_vm1, %v556_v31 }
 0x3b9   : > { %v1385_v32 = vpop.f32.mrb[0].mxu1 }
 0x3ba   : > { %v856_v33 = vpop.f32.mrb[1].mxu1 }
 0x3bb   : > { %v327_v34 = vpop.f32.mrb[2].mxu1 }
 0x3bc   : > { %v857_v35 = vpop.f32.mrb[3].mxu1 }
 0x3c1   : > { %v377_v36 = vpop.f32.mrb[4].mxu1 }
 0x3c2   : > { %v383_v37 = vmul.f32 0.35355338, %v377_v36  ;;  %v862_v38 = vpop.f32.mrb[5].mxu1 }
 0x3c3   : > { %v380_v39 = vpop.f32.mrb[6].mxu1 }
 0x3c4   : > { %v863_v40 = vpop.f32.mrb[7].mxu1  ;;  %v384_v41 = vsel %vm221_vm1, %v383_v37, -inf }
 0x3c5   : > { %385 = vmax.xlane.f32.xlu1 %v384_v41 }
 0x3c9   : > { %v488_v42 = vpop.f32.mrb[8].mxu1 }
 0x3ca   : > { %v494_v43 = vmul.f32 0.35355338, %v488_v42  ;;  %v874_v44 = vpop.f32.mrb[9].mxu1 }
 0x3cb   : > { %v491_v45 = vpop.f32.mrb[10].mxu1 }
 0x3cc   : > { %v495_v46 = vsel %vm221_vm1, %v494_v43, -inf  ;;  %v875_v47 = vpop.f32.mrb[11].mxu1 }
 0x3cd   : > { %496 = vmax.xlane.f32.xlu0 %v495_v46 }
 0x3d1   : > { %v599_v48 = vpop.f32.mrb[12].mxu1 }
 0x3d2   : > { %v605_v49 = vmul.f32 0.35355338, %v599_v48  ;;  %v886_v50 = vpop.f32.mrb[13].mxu1 }
 0x3d3   : > { %v602_v51 = vpop.f32.mrb[14].mxu1 }
 0x3d4   : > { %v606_v52 = vsel %vm221_vm1, %v605_v49, -inf  ;;  %v887_v53 = vpop.f32.mrb[15].mxu1 }
 0x3d5   : > { %607 = vmax.xlane.f32.xlu1 %v606_v52 }
 0x452   : > { %v386_v54 = vpop.xlane.xlu1 %385 }
 0x453   : > { %v387_v55 = vsub.f32 %v383_v37, %v386_v54 }
 0x455   : > { %v388_v56 = vmul.f32 1.442695, %v387_v55 }
 0x457   : > { %983 = vpow2.f32 %v388_v56 }
 0x45a   : > { %v497_v2 = vpop.xlane.xlu0 %496 }
 0x45b   : > { %v498_v3 = vsub.f32 %v494_v43, %v497_v2 }
 0x45d   : > { %v499_v4 = vmul.f32 1.442695, %v498_v3 }
 0x461   : > { %v984_v57 = vpop.eup %983 }
 0x462   : > { %v608_v58 = vpop.xlane.xlu1 %607  ;;  %v390_v59 = vsel %vm221_vm1, %v984_v57, 0.0 }
 0x463   : > { %v609_v60 = vsub.f32 %v605_v49, %v608_v58  ;;  %391 = vadd.xlane.f32.xlu1 %v390_v59 }
 0x465   : > { %v610_v61 = vmul.f32 1.442695, %v609_v60 }
 0x467   : > { %985 = vpow2.f32 %v610_v61 }
 0x468   : > { %987 = vpow2.f32 %v499_v4 }
 0x471   : > { %v986_v62 = vpop.eup %985 }
 0x472   : > { %v612_v63 = vsel %vm221_vm1, %v986_v62, 0.0  ;;  %v988_v5 = vpop.eup %987 }
 0x473   : > { %613 = vadd.xlane.f32.xlu0 %v612_v63  ;;  %v501_v6 = vsel %vm221_vm1, %v988_v5, 0.0 }
 0x474   : > { %396 = vrot.lane.b32.xlu1 %v1354_v1, %s1155_s25 }
 0x489   : > { %507 = vrot.lane.b32.xlu0 %v1354_v1, %s1156_s26 }
 0x498   : > { %502 = vadd.xlane.f32.xlu1 %v501_v6 }
 0x4a9   : > { %618 = vrot.lane.b32.xlu1 %v1354_v1, %s1157_s3 }
 0x4f0   : > { %v392_v7 = vpop.xlane.xlu1 %391 }
 0x4f1   : > { %989 = vrcp.f32 %v392_v7 }
 0x4f4   : > { %v397_v8 = vpop.permute.xlu1 %396 }
 0x4f5   : > { %v402_v9 = vsel %vm286_vm2, %v397_v8, 0 }
 0x4f6   : > { %865 = vmatpush3.bf16.msra.mxu0 %v402_v9 }
 0x4f7   : > { %876 = vmatprep.subr.bf16.mxu0 %v1145_v0 }
 0x4fb   : > { %v990_v10 = vpop.eup %989 }
 0x4fc   : > { %v394_v11 = vmul.f32 %v990_v10, %v984_v57 }
 0x4fe   : > { %v395_v12 = vpack.c.bf16 %v394_v11, %v394_v11 }
 0x500   : > { %867 = vmatmul.mubr.msk.bf16.vlgmr.msra.gmra.mrb[4].mxu0 %vm221_vm1, %v395_v12  ;;  %v614_v13 = vpop.xlane.xlu0 %613 }
 0x501   : > { %878 = vmatprep.mubr.msk.bf16.mxu0 %vm1146_vm0, %v1145_v0 }
 0x504   : > { %v508_v14 = vpop.permute.xlu0 %507 }
 0x505   : > { %v513_v1 = vsel %vm286_vm2, %v508_v14, 0 }
 0x506   : > { %877 = vmatpush3.bf16.msra.mxu0 %v513_v1 }
 0x507   : > { %888 = vmatprep.subr.bf16.mxu0 %v1145_v0 }
 0x525   : > { %v503_v15 = vpop.xlane.xlu1 %502 }
 0x526   : > { %991 = vrcp.f32 %v503_v15 }
 0x527   : > { %993 = vrcp.f32 %v614_v13 }
 0x529   : > { %v619_v17 = vpop.permute.xlu1 %618 }
 0x52a   : > { %v624_v19 = vsel %vm286_vm2, %v619_v17, 0 }
 0x530   : > { %v992_v16 = vpop.eup %991 }
 0x531   : > { %v505_v18 = vmul.f32 %v992_v16, %v988_v5  ;;  %v994_v21 = vpop.eup %993 }
 0x532   : > { %v616_v22 = vmul.f32 %v994_v21, %v986_v62 }
 0x533   : > { %v506_v20 = vpack.c.bf16 %v505_v18, %v505_v18 }
 0x534   : > { %v617_v23 = vpack.c.bf16 %v616_v22, %v616_v22 }
 0x535   : > { %879 = vmatmul.mubr.msk.bf16.vlgmr.msra.gmra.mrb[8].mxu0 %vm221_vm1, %v506_v20 }
 0x536   : > { %889 = vmatpush3.bf16.msra.mxu0 %v624_v19  ;;  %890 = vmatprep.mubr.msk.bf16.mxu0 %vm1146_vm0, %v1145_v0 }
 0x53d   : > { %891 = vmatmul.mubr.msk.bf16.vlgmr.msra.gmra.mrb[12].mxu0 %vm221_vm1, %v617_v23 }
 0x5d3   : > { %v438_v24 = vpop.f32.mrb[4].mxu0 }
 0x5d4   : > { %667 = vrot.lane.b32.xlu1 %v438_v24, %s1158_s8  ;;  %v868_v25 = vpop.f32.mrb[5].mxu0 }
 0x5d5   : > { %v441_v26 = vpop.f32.mrb[6].mxu0 }
 0x5d6   : > { %v869_v27 = vpop.f32.mrb[7].mxu0 }
 0x608   : > { %v549_v28 = vpop.f32.mrb[8].mxu0 }
 0x609   : > { %671 = vrot.lane.b32.xlu0 %v549_v28, %s1159_s4  ;;  %v880_v29 = vpop.f32.mrb[9].mxu0 }
 0x60a   : > { %v552_v30 = vpop.f32.mrb[10].mxu0 }
 0x60b   : > { %v881_v31 = vpop.f32.mrb[11].mxu0 }
 0x610   : > { %v660_v33 = vpop.f32.mrb[12].mxu0 }
 0x611   : > { %675 = vrot.lane.b32.xlu1 %v660_v33, %s1160_s6  ;;  %v892_v0 = vpop.f32.mrb[13].mxu0 }
 0x612   : > { %v663_v34 = vpop.f32.mrb[14].mxu0 }
 0x613   : > { %v893_v35 = vpop.f32.mrb[15].mxu0 }
 0x646   : > { %v668_v36 = vpop.permute.xlu1 %667 }
 0x647   : > { %v678_v38 = vsel %vm221_vm1, %v1385_v32, %v668_v36 }
 0x67b   : > { %v672_v37 = vpop.permute.xlu0 %671 }
 0x67c   : > { %v680_v39 = vsel %vm679_vm3, %v678_v38, %v672_v37 }
 0x683   : > { %v676_v40 = vpop.permute.xlu1 %675 }
 0x684   : > { %v682_v41 = vsel %vm681_vm4, %v680_v39, %v676_v40 }
 0x685   : > { %v683_v42 = vpack.c.bf16 %v682_v41, %v682_v41 }
 0x687   : > { %685 = vst.msk [vmem:[%s212_s7] sm:$0xf] %vm684_vm5, %v683_v42 }
 0x688   : > { %1068 = shalt.err (!%p1065_p2)
}
 0x689   : > { %s1069_s15 = scalar_lea.hbm %s1415_s30, 64  ;;  %s1073_s26 = scalar_lea.hbm %s1466_s2, 128 }
 0x68a   : > { %p1070_p9 = scmp.ne.s32.totalorder %s1415_s30, %s1069_s15  ;;  %p1074_p6 = scmp.lt.u32.totalorder %s1415_s30, %s1466_s2 }
 0x68b   : > { %p1075_p13 = scmp.lt.u32.totalorder %s1073_s26, %s1069_s15  ;;  %p1077_p0 = scmp.lt.u32.totalorder %s1069_s15, %s1415_s30 }
 0x68c   : > { %p1071_p11 = pnand %p1070_p9, %p1479_p5 }
 0x68d   : > { %p1076_p8 = por %p1075_p13, %p1074_p6 }
 0x68e   : > { %p1072_p3 = pneg %p1071_p11 }
 0x68f   : > { %p1078_p7 = por %p1077_p0, %p1076_p8 }
 0x691   : > { %p1079_p4 = pnand %p1078_p7, %p1072_p3 }
 0x693   : > { %1082 = shalt.err (!%p1079_p4)
}
 0x694   : > { %898 = dma.vmem_to_hbm [thread:$0]  (%p1479_p5), %s1417_s16, 64, %s1415_s30, %s687_s20  }
 0x695 PF: > { %s713_s4 = sand.u32 1, %s1121_s9   ;;  %p1480_p10 = scmp.ne.s32.totalorder %s1472_s24, 0 }
 0x696   : > { %p1481_p12 = scmp.ge.s32.totalorder %s1141_s14, 2  ;;  %s714_s6 = scalar_lea.sflag [#allocation4], %s713_s4 }
 0x698   : > { %p908_p1 = pnand %p1481_p12, %p1480_p10 }
 0x69a   : > { %1116 = dma.done.wait (!%p908_p1), %s714_s6, 64  }
 0x69b   : > { %1118 = vsyncadd (!%p908_p1), %s714_s6, 4294967232  ;;  %s21_s14 = sadd.s32 1, %s1141_s14   ;;  %s1482_s9 = smov %s1125_s10 }
 0x69c   : > { %p18_p2 = scmp.ge.s32.totalorder %s21_s14, 4   ;;  %s1483_s10 = smov %s1129_s11 }
 0x69d   : > { %s1484_s11 = smov %s1233_s23  ;;  %s1485_s12 = smov %s1137_s13 }
 0x69e   : > { %s1486_s13 = smov %s1488_s17  ;;  %20 = sbr.rel (!%p18_p2) target bundleno = 8 (0x8), region = 86 }
 0x6a5   :  { %719 = vsyncpa [#allocation3], 1 }
 0x6a6   :  { %721 = vsyncpa [#allocation3 + $0x1], 1 }
 0x6a7   :  { %722 = vsyncpa [#allocation6], 1 }
 0x6a8   :  { %724 = vsyncpa [#allocation6 + $0x1], 1 }
 0x6a9   :  { %725 = vsyncpa [#allocation4], 1 }
 0x6aa   :  { %727 = vsyncpa [#allocation4 + $0x1], 1 }

// kernel: _lambda_.43
= control target key start
LH: loop header
LB: loop body
LE: loop exit
PB: predicated region body
PF: predicated region fallthrough
CT: control target
= control target key end

     0   :  { %8 = vsyncpa [#allocation4], 0  ;;  %s401_s0 = inlined_call_operand.hbm [shape: bf16[16,32], index: 0, kind: input, shape index: {}]   ;;  %s402_s1 = inlined_call_operand.hbm [shape: bf16[32,64], index: 1, kind: input, shape index: {}]   ;;  %s403_s2 = inlined_call_operand.hbm [shape: f32[1,64], index: 2, kind: input, shape index: {}]   ;;  %s404_s3 = inlined_call_operand.hbm [shape: bf16[16,64], index: 3, kind: output, shape index: {}]  }
   0x1   :  { %9 = vsyncpa [#allocation7], 0 }
   0x2   :  { %10 = vsyncpa [#allocation5], 0  ;;  %s305_s12 = smov [#allocation6]   ;;  %s306_s14 = smov [#allocation3]  }
   0x3   :  { %s28_s13 = sshll.u32 %s305_s12, 4  ;;  %s16_s15 = sshll.u32 %s306_s14, 4  ;;  %s29_s13 = int_to_ptr.vmem [resolvable:$true] %s28_s13  ;;  %s333_s15 = int_to_ptr.vmem [resolvable:$true] %s16_s15 }
   0x4   :  { %s211_s18 = scalar_lea.hbm %s402_s1, 256 }
   0x5   :  { %p212_p0 = scmp.ne.s32.totalorder %s402_s1, %s211_s18  ;;  %p215_p1 = scmp.lt.u32.totalorder %s211_s18, %s402_s1 }
   0x7   :  { %p217_p2 = pnand %p215_p1, %p212_p0 }
   0x9   :  { %220 = shalt.err (!%p217_p2)
}
   0xa   :  { %s221_s23 = scalar_lea.vmem %s29_s13, 256  ;;  %p226_p4 = scmp.lt.s32.totalorder %s29_s13, %s29_s13 }
   0xb   :  { %p222_p3 = scmp.ne.s32.totalorder %s29_s13, %s221_s23  ;;  %p227_p5 = scmp.lt.s32.totalorder %s221_s23, %s221_s23 }
   0xd   :  { %p228_p6 = por %p227_p5, %p226_p4 }
   0xf   :  { %p229_p7 = pnand %p228_p6, %p222_p3 }
  0x11   :  { %232 = shalt.err (!%p229_p7)
}
  0x12   :  { %s307_s24 = smov 64   ;;  %s308_s25 = smov 4  }
  0x13   :  { %34 = dma.hbm_to_vmem [thread:$0]  %s402_s1, 256, %s29_s13, [#allocation7], %s307_s24, %s307_s24, %s308_s25  }
  0x14   :  { %s233_s30 = scalar_lea.hbm %s401_s0, 128 }
  0x15   :  { %p234_p8 = scmp.ne.s32.totalorder %s401_s0, %s233_s30  ;;  %p237_p9 = scmp.lt.u32.totalorder %s233_s30, %s401_s0 }
  0x17   :  { %p239_p10 = pnand %p237_p9, %p234_p8 }
  0x19   :  { %242 = shalt.err (!%p239_p10)
}
  0x1a   :  { %s243_s8 = scalar_lea.vmem %s333_s15, 128  ;;  %p248_p12 = scmp.lt.s32.totalorder %s333_s15, %s333_s15 }
  0x1b   :  { %p244_p11 = scmp.ne.s32.totalorder %s333_s15, %s243_s8  ;;  %p249_p13 = scmp.lt.s32.totalorder %s243_s8, %s243_s8 }
  0x1d   :  { %p250_p0 = por %p249_p13, %p248_p12 }
  0x1f   :  { %p251_p1 = pnand %p250_p0, %p244_p11 }
  0x21   :  { %254 = shalt.err (!%p251_p1)
}
  0x22   :  { %22 = dma.hbm_to_vmem [thread:$0]  %s401_s0, 128, %s333_s15, [#allocation4], %s307_s24, %s307_s24, %s308_s25  }
  0x23   :  { %s309_s10 = smov [#allocation8]   ;;  %s255_s14 = scalar_lea.hbm %s403_s2, 16 }
  0x24   :  { %s41_s11 = sshll.u32 %s309_s10, 4  ;;  %p256_p2 = scmp.ne.s32.totalorder %s403_s2, %s255_s14  ;;  %s42_s11 = int_to_ptr.vmem [resolvable:$true] %s41_s11 }
  0x25   :  { %p259_p3 = scmp.lt.u32.totalorder %s255_s14, %s403_s2 }
  0x27   :  { %p261_p4 = pnand %p259_p3, %p256_p2 }
  0x29   :  { %264 = shalt.err (!%p261_p4)
}
  0x2a   :  { %s265_s20 = scalar_lea.vmem %s42_s11, 16  ;;  %s269_s0 = scalar_lea.vmem %s42_s11, 32 }
  0x2b   :  { %p266_p5 = scmp.ne.s32.totalorder %s42_s11, %s265_s20  ;;  %p270_p6 = scmp.lt.s32.totalorder %s42_s11, %s42_s11 }
  0x2c   :  { %p271_p7 = scmp.lt.s32.totalorder %s269_s0, %s265_s20 }
  0x2e   :  { %p272_p8 = por %p271_p7, %p270_p6 }
  0x30   :  { %p273_p9 = pnand %p272_p8, %p266_p5 }
  0x32   :  { %276 = shalt.err (!%p273_p9)
}
  0x33   :  { %44 = dma.hbm_to_vmem [thread:$0]  %s403_s2, 16, %s42_s11, [#allocation7]  }
  0x34   :  { %299 = dma.done.wait [#allocation4], 128  }
  0x35   :  { %300 = vsyncadd [#allocation4], 4294967168 }
  0x36   :  { %301 = dma.done.wait [#allocation7], 272  }
  0x37   :  { %302 = vsyncadd [#allocation7], 4294967024  ;;  %vm59_vm0 = vcmask 523264   ;;  %v310_v0 = vmov 0.0   ;;  %vm311_vm1 = vmmov 0   ;;  %v208_v1 = vld [vmem:[#allocation6] sm:$0xff]  }
  0x38   :  { %60 = vst.msk [vmem:[#allocation2] sm:$0xff] %vm59_vm0, %v310_v0  ;;  %61 = vst.msk [vmem:[#allocation2 + $0x8] sm:$0xff] %vm59_vm0, %v310_v0  ;;  %192 = vmatprep.subr.bf16.mxu0 %v310_v0  ;;  %196 = vmatprep.mubr.msk.bf16.mxu0 %vm311_vm1, %v310_v0  ;;  %v209_v2 = vld [vmem:[#allocation6 + $0x8] sm:$0xff]   ;;  %v210_v3 = vld [vmem:[#allocation3] sm:$0xff]   ;;  %vm87_vm2 = vcmask 261120   ;;  %vm159_vm3 = vcmask 519168  }
  0x39   :  { %193 = vmatpush3.bf16.msra.mxu0 %v208_v1  ;;  %v184_v12 = vld [vmem:[#allocation8] ss:$0 sm:$0xff]  ;;  %s312_s2 = smov [#allocation9]  }
  0x3a   :  { %194 = vmatprep.subr.bf16.mxu0 %v310_v0  ;;  %s167_s22 = sshll.u32 %s312_s2, 4  ;;  %s168_s22 = int_to_ptr.vmem [resolvable:$true] %s167_s22 }
  0x3b   :  { %s277_s23 = scalar_lea.vmem %s168_s22, 128  ;;  %p282_p11 = scmp.lt.s32.totalorder %s168_s22, %s168_s22 }
  0x3c   :  { %p278_p10 = scmp.ne.s32.totalorder %s168_s22, %s277_s23  ;;  %p283_p12 = scmp.lt.s32.totalorder %s277_s23, %s277_s23 }
  0x3d   :  { %195 = vmatpush3.bf16.msra.mxu0 %v209_v2 }
  0x3e   :  { %p284_p13 = por %p283_p12, %p282_p11 }
  0x3f   :  { %v62_v4 = vld [vmem:[#allocation2] sm:$0xff]  ;;  %v63_v6 = vld [vmem:[#allocation2 + $0x8] sm:$0xff] }
  0x40   :  { %197 = vmatmul.mubr.msk.bf16.vlgmr.msra.gmra.mrb[0].mxu0 %vm87_vm2, %v210_v3  ;;  %p285_p0 = pnand %p284_p13, %p278_p10 }
 0x113   :  { %v125_v5 = vpop.f32.mrb[0].mxu0 }
 0x114   :  { %v132_v7 = vadd.f32 %v125_v5, %v62_v4  ;;  %v198_v8 = vpop.f32.mrb[1].mxu0 }
 0x115   :  { %v128_v9 = vpop.f32.mrb[2].mxu0 }
 0x116   :  { %135 = vst.msk [vmem:[#allocation2] sm:$0xff] %vm59_vm0, %v132_v7  ;;  %v133_v10 = vadd.f32 %v128_v9, %v63_v6  ;;  %v199_v11 = vpop.f32.mrb[3].mxu0 }
 0x118   :  { %136 = vst.msk [vmem:[#allocation2 + $0x8] sm:$0xff] %vm59_vm0, %v133_v10 }
 0x11d   :  { %v140_v13 = vld [vmem:[#allocation2] sm:$0xff] }
 0x11e   :  { %v149_v14 = vadd.f32 %v184_v12, %v140_v13 }
 0x11f   :  { %v141_v15 = vld [vmem:[#allocation2 + $0x8] sm:$0xff] }
 0x120   :  { %v150_v16 = vadd.f32 %v184_v12, %v141_v15  ;;  %v187_v17 = vpack.c.bf16 %v149_v14, %v149_v14 }
 0x122   :  { %v188_v18 = vpack.c.bf16 %v150_v16, %v150_v16  ;;  %160 = vst.msk [vmem:[#allocation9] sm:$0xf] %vm159_vm3, %v187_v17 }
 0x124   :  { %161 = vst.msk [vmem:[#allocation9 + $0x4] sm:$0xf] %vm159_vm3, %v188_v18 }
 0x125   :  { %288 = shalt.err (!%p285_p0)
}
 0x126   :  { %s289_s28 = scalar_lea.hbm %s404_s3, 128 }
 0x127   :  { %p290_p1 = scmp.ne.s32.totalorder %s404_s3, %s289_s28  ;;  %p293_p2 = scmp.lt.u32.totalorder %s289_s28, %s404_s3 }
 0x129   :  { %p295_p3 = pnand %p293_p2, %p290_p1 }
 0x12b   :  { %298 = shalt.err (!%p295_p3)
}
 0x12c   :  { %173 = dma.vmem_to_hbm [thread:$0]  %s168_s22, 128, %s404_s3, [#allocation5], %s307_s24, %s307_s24, %s308_s25  }
 0x12d   :  { %303 = dma.done.wait [#allocation5], 128  }
 0x12e   :  { %304 = vsyncadd [#allocation5], 4294967168 }
 0x12f   :  { %177 = vsyncpa [#allocation4], 1 }
 0x130   :  { %178 = vsyncpa [#allocation7], 1 }
 0x131   :  { %179 = vsyncpa [#allocation5], 1 }

// kernel: _lambda_.33
= control target key start
LH: loop header
LB: loop body
LE: loop exit
PB: predicated region body
PF: predicated region fallthrough
CT: control target
= control target key end

     0   :  { %11 = vsyncpa [#allocation4], 0  ;;  %s670_s0 = inlined_call_operand.hbm [shape: bf16[16,64], index: 0, kind: input, shape index: {}]   ;;  %s671_s1 = inlined_call_operand.hbm [shape: bf16[64,32], index: 1, kind: input, shape index: {}]   ;;  %s672_s2 = inlined_call_operand.hbm [shape: f32[1,32], index: 2, kind: input, shape index: {}]   ;;  %s673_s3 = inlined_call_operand.hbm [shape: bf16[16,32], index: 3, kind: input, shape index: {}]   ;;  %s674_s4 = inlined_call_operand.hbm [shape: f32[1,32], index: 4, kind: input, shape index: {}]   ;;  %s675_s5 = inlined_call_operand.hbm [shape: f32[1,32], index: 5, kind: input, shape index: {}]   ;;  %s676_s6 = inlined_call_operand.hbm [shape: bf16[16,32], index: 6, kind: output, shape index: {}]  }
   0x1   :  { %12 = vsyncpa [#allocation7], 0 }
   0x2   :  { %13 = vsyncpa [#allocation10], 0 }
   0x3   :  { %14 = vsyncpa [#allocation13], 0 }
   0x4   :  { %15 = vsyncpa [#allocation5], 0  ;;  %s513_s21 = smov [#allocation6]   ;;  %s514_s23 = smov [#allocation9]  }
   0x5   :  { %s33_s22 = sshll.u32 %s513_s21, 4  ;;  %s55_s24 = sshll.u32 %s514_s23, 4  ;;  %s34_s22 = int_to_ptr.vmem [resolvable:$true] %s33_s22  ;;  %s559_s24 = int_to_ptr.vmem [resolvable:$true] %s55_s24 }
   0x6   :  { %s349_s27 = scalar_lea.hbm %s671_s1, 512 }
   0x7   :  { %p350_p0 = scmp.ne.s32.totalorder %s671_s1, %s349_s27  ;;  %p353_p1 = scmp.lt.u32.totalorder %s349_s27, %s671_s1 }
   0x9   :  { %p355_p2 = pnand %p353_p1, %p350_p0 }
   0xb   :  { %358 = shalt.err (!%p355_p2)
}
   0xc   :  { %s359_s8 = scalar_lea.vmem %s34_s22, 512  ;;  %p364_p4 = scmp.lt.s32.totalorder %s34_s22, %s34_s22 }
   0xd   :  { %p360_p3 = scmp.ne.s32.totalorder %s34_s22, %s359_s8  ;;  %p365_p5 = scmp.lt.s32.totalorder %s359_s8, %s359_s8 }
   0xf   :  { %p366_p6 = por %p365_p5, %p364_p4 }
  0x11   :  { %p367_p7 = pnand %p366_p6, %p360_p3 }
  0x13   :  { %370 = shalt.err (!%p367_p7)
}
  0x14   :  { %s515_s9 = smov 64   ;;  %s516_s10 = smov 4  }
  0x15   :  { %39 = dma.hbm_to_vmem [thread:$0]  %s671_s1, 512, %s34_s22, [#allocation7], %s515_s9, %s515_s9, %s516_s10  }
  0x16   :  { %s371_s15 = scalar_lea.hbm %s673_s3, 128 }
  0x17   :  { %p372_p8 = scmp.ne.s32.totalorder %s673_s3, %s371_s15  ;;  %p375_p9 = scmp.lt.u32.totalorder %s371_s15, %s673_s3 }
  0x19   :  { %p377_p10 = pnand %p375_p9, %p372_p8 }
  0x1b   :  { %380 = shalt.err (!%p377_p10)
}
  0x1c   :  { %s381_s20 = scalar_lea.vmem %s559_s24, 128  ;;  %p386_p12 = scmp.lt.s32.totalorder %s559_s24, %s559_s24 }
  0x1d   :  { %p382_p11 = scmp.ne.s32.totalorder %s559_s24, %s381_s20  ;;  %p387_p13 = scmp.lt.s32.totalorder %s381_s20, %s381_s20 }
  0x1f   :  { %p388_p0 = por %p387_p13, %p386_p12 }
  0x21   :  { %p389_p1 = pnand %p388_p0, %p382_p11 }
  0x23   :  { %392 = shalt.err (!%p389_p1)
}
  0x24   :  { %61 = dma.hbm_to_vmem [thread:$0]  %s673_s3, 128, %s559_s24, [#allocation10], %s515_s9, %s515_s9, %s516_s10  }
  0x25   :  { %s517_s22 = smov [#allocation3]   ;;  %s518_s25 = smov [#allocation8]  }
  0x26   :  { %s21_s23 = sshll.u32 %s517_s22, 4  ;;  %s46_s26 = sshll.u32 %s518_s25, 4  ;;  %s22_s23 = int_to_ptr.vmem [resolvable:$true] %s21_s23  ;;  %s47_s26 = int_to_ptr.vmem [resolvable:$true] %s46_s26 }
  0x27   :  { %s393_s29 = scalar_lea.hbm %s670_s0, 128 }
  0x28   :  { %p394_p2 = scmp.ne.s32.totalorder %s670_s0, %s393_s29  ;;  %p397_p3 = scmp.lt.u32.totalorder %s393_s29, %s670_s0 }
  0x2a   :  { %p399_p4 = pnand %p397_p3, %p394_p2 }
  0x2c   :  { %402 = shalt.err (!%p399_p4)
}
  0x2d   :  { %s403_s3 = scalar_lea.vmem %s22_s23, 128  ;;  %p408_p6 = scmp.lt.s32.totalorder %s22_s23, %s22_s23 }
  0x2e   :  { %p404_p5 = scmp.ne.s32.totalorder %s22_s23, %s403_s3  ;;  %p409_p7 = scmp.lt.s32.totalorder %s403_s3, %s403_s3 }
  0x30   :  { %p410_p8 = por %p409_p7, %p408_p6 }
  0x32   :  { %p411_p9 = pnand %p410_p8, %p404_p5 }
  0x34   :  { %414 = shalt.err (!%p411_p9)
}
  0x35   :  { %27 = dma.hbm_to_vmem [thread:$0]  %s670_s0, 128, %s22_s23, [#allocation4], %s515_s9, %s515_s9, %s516_s10  }
  0x36   :  { %s415_s15 = scalar_lea.hbm %s672_s2, 16 }
  0x37   :  { %p416_p10 = scmp.ne.s32.totalorder %s672_s2, %s415_s15  ;;  %p419_p11 = scmp.lt.u32.totalorder %s415_s15, %s672_s2 }
  0x39   :  { %p421_p12 = pnand %p419_p11, %p416_p10 }
  0x3b   :  { %424 = shalt.err (!%p421_p12)
}
  0x3c   :  { %s425_s20 = scalar_lea.vmem %s47_s26, 16  ;;  %s429_s1 = scalar_lea.vmem %s47_s26, 32 }
  0x3d   :  { %p426_p13 = scmp.ne.s32.totalorder %s47_s26, %s425_s20  ;;  %p430_p0 = scmp.lt.s32.totalorder %s47_s26, %s47_s26 }
  0x3e   :  { %p431_p1 = scmp.lt.s32.totalorder %s429_s1, %s425_s20 }
  0x40   :  { %p432_p2 = por %p431_p1, %p430_p0 }
  0x42   :  { %p433_p3 = pnand %p432_p2, %p426_p13 }
  0x44   :  { %436 = shalt.err (!%p433_p3)
}
  0x45   :  { %49 = dma.hbm_to_vmem [thread:$0]  %s672_s2, 16, %s47_s26, [#allocation7]  }
  0x46   :  { %s519_s22 = smov [#allocation11]   ;;  %s520_s25 = smov [#allocation12]  }
  0x47   :  { %s68_s23 = sshll.u32 %s519_s22, 4  ;;  %s78_s27 = sshll.u32 %s520_s25, 4  ;;  %s69_s23 = int_to_ptr.vmem [resolvable:$true] %s68_s23  ;;  %s79_s27 = int_to_ptr.vmem [resolvable:$true] %s78_s27 }
  0x48   :  { %s437_s30 = scalar_lea.hbm %s674_s4, 16 }
  0x49   :  { %p438_p4 = scmp.ne.s32.totalorder %s674_s4, %s437_s30  ;;  %p441_p5 = scmp.lt.u32.totalorder %s437_s30, %s674_s4 }
  0x4b   :  { %p443_p6 = pnand %p441_p5, %p438_p4 }
  0x4d   :  { %446 = shalt.err (!%p443_p6)
}
  0x4e   :  { %s447_s2 = scalar_lea.vmem %s69_s23, 16  ;;  %s451_s26 = scalar_lea.vmem %s69_s23, 32 }
  0x4f   :  { %p448_p7 = scmp.ne.s32.totalorder %s69_s23, %s447_s2  ;;  %p452_p8 = scmp.lt.s32.totalorder %s69_s23, %s69_s23 }
  0x50   :  { %p453_p9 = scmp.lt.s32.totalorder %s451_s26, %s447_s2 }
  0x52   :  { %p454_p10 = por %p453_p9, %p452_p8 }
  0x54   :  { %p455_p11 = pnand %p454_p10, %p448_p7 }
  0x56   :  { %458 = shalt.err (!%p455_p11)
}
  0x57   :  { %71 = dma.hbm_to_vmem [thread:$0]  %s674_s4, 16, %s69_s23, [#allocation10]  }
  0x58   :  { %s459_s15 = scalar_lea.hbm %s675_s5, 16 }
  0x59   :  { %p460_p12 = scmp.ne.s32.totalorder %s675_s5, %s459_s15  ;;  %p463_p13 = scmp.lt.u32.totalorder %s459_s15, %s675_s5 }
  0x5b   :  { %p465_p0 = pnand %p463_p13, %p460_p12 }
  0x5d   :  { %468 = shalt.err (!%p465_p0)
}
  0x5e   :  { %s469_s20 = scalar_lea.vmem %s79_s27, 16  ;;  %s473_s1 = scalar_lea.vmem %s79_s27, 32 }
  0x5f   :  { %p470_p1 = scmp.ne.s32.totalorder %s79_s27, %s469_s20  ;;  %p474_p2 = scmp.lt.s32.totalorder %s79_s27, %s79_s27 }
  0x60   :  { %p475_p3 = scmp.lt.s32.totalorder %s473_s1, %s469_s20 }
  0x62   :  { %p476_p4 = por %p475_p3, %p474_p2 }
  0x64   :  { %p477_p5 = pnand %p476_p4, %p470_p1 }
  0x66   :  { %480 = shalt.err (!%p477_p5)
}
  0x67   :  { %81 = dma.hbm_to_vmem [thread:$0]  %s675_s5, 16, %s79_s27, [#allocation13]  }
  0x68   :  { %503 = dma.done.wait [#allocation4], 128  }
  0x69   :  { %504 = vsyncadd [#allocation4], 4294967168 }
  0x6a   :  { %505 = dma.done.wait [#allocation7], 528  }
  0x6b   :  { %506 = vsyncadd [#allocation7], 4294966768 }
  0x6c   :  { %507 = dma.done.wait [#allocation10], 144  }
  0x6d   :  { %508 = vsyncadd [#allocation10], 4294967152 }
  0x6e   :  { %509 = dma.done.wait [#allocation13], 16  }
  0x6f   :  { %510 = vsyncadd [#allocation13], 4294967280  ;;  %vm105_vm0 = vcmask 261120   ;;  %v521_v0 = vmov 0.0   ;;  %vm522_vm1 = vmmov 0   ;;  %v340_v1 = vld [vmem:[#allocation6] sm:$0xff]  }
  0x70   :  { %317 = vmatprep.subr.bf16.mxu0 %v521_v0  ;;  %325 = vmatprep.mubr.msk.bf16.mxu0 %vm522_vm1, %v521_v0  ;;  %106 = vst.msk [vmem:[#allocation2] sm:$0xff] %vm105_vm0, %v521_v0  ;;  %107 = vst.msk [vmem:[#allocation2 + $0x8] sm:$0xff] %vm105_vm0, %v521_v0  ;;  %v341_v2 = vld [vmem:[#allocation6 + $0x8] sm:$0xff]   ;;  %v342_v3 = vld [vmem:[#allocation6 + $0x10] sm:$0xff]   ;;  %vm149_vm2 = vcmask 523264   ;;  %vm272_vm3 = vcmask 257024  }
  0x71   :  { %318 = vmatpush3.bf16.msra.mxu0 %v340_v1  ;;  %v343_v4 = vld [vmem:[#allocation6 + $0x18] sm:$0xff]   ;;  %v309_v14 = vld [vmem:[#allocation9] sm:$0xff]   ;;  %v301_v18 = vld [vmem:[#allocation8] ss:$0 sm:$0xff]  ;;  %s523_s5 = smov [#allocation14]  }
  0x72   :  { %319 = vmatprep.subr.bf16.mxu0 %v521_v0  ;;  %v344_v5 = vld [vmem:[#allocation3] sm:$0xff]   ;;  %v310_v15 = vunpack.c.l.bf16 %v309_v14  ;;  %v311_v16 = vunpack.c.h.bf16 %v309_v14  ;;  %v302_v43 = vld [vmem:[#allocation11] ss:$0 sm:$0xff]  ;;  %v303_v45 = vld [vmem:[#allocation12] ss:$0 sm:$0xff]  ;;  %s280_s21 = sshll.u32 %s523_s5, 4  ;;  %s281_s21 = int_to_ptr.vmem [resolvable:$true] %s280_s21 }
  0x73   :  { %s481_s22 = scalar_lea.vmem %s281_s21, 128  ;;  %p486_p7 = scmp.lt.s32.totalorder %s281_s21, %s281_s21 }
  0x74   :  { %p482_p6 = scmp.ne.s32.totalorder %s281_s21, %s481_s22  ;;  %p487_p8 = scmp.lt.s32.totalorder %s481_s22, %s481_s22 }
  0x75   :  { %320 = vmatpush3.bf16.msra.mxu0 %v341_v2 }
  0x76   :  { %321 = vmatprep.subr.bf16.mxu0 %v521_v0  ;;  %p488_p9 = por %p487_p8, %p486_p7 }
  0x77   :  { %v108_v6 = vld [vmem:[#allocation2] sm:$0xff]  ;;  %v109_v8 = vld [vmem:[#allocation2 + $0x8] sm:$0xff] }
  0x78   :  { %p489_p10 = pnand %p488_p9, %p482_p6 }
  0x79   :  { %322 = vmatpush3.bf16.msra.mxu0 %v342_v3 }
  0x7a   :  { %323 = vmatprep.subr.bf16.mxu0 %v521_v0 }
  0x7d   :  { %324 = vmatpush3.bf16.msra.mxu0 %v343_v4 }
  0x80   :  { %326 = vmatmul.mubr.msk.bf16.vlgmr.msra.gmra.mrb[0].mxu0 %vm149_vm2, %v344_v5 }
 0x153   :  { %v187_v7 = vpop.f32.mrb[0].mxu0 }
 0x154   :  { %v194_v9 = vadd.f32 %v187_v7, %v108_v6  ;;  %v327_v10 = vpop.f32.mrb[1].mxu0 }
 0x155   :  { %v190_v11 = vpop.f32.mrb[2].mxu0 }
 0x156   :  { %197 = vst.msk [vmem:[#allocation2] sm:$0xff] %vm105_vm0, %v194_v9  ;;  %v195_v12 = vadd.f32 %v190_v11, %v109_v8  ;;  %v328_v13 = vpop.f32.mrb[3].mxu0 }
 0x158   :  { %198 = vst.msk [vmem:[#allocation2 + $0x8] sm:$0xff] %vm105_vm0, %v195_v12 }
 0x15d   :  { %v206_v17 = vld [vmem:[#allocation2] sm:$0xff] }
 0x15e   :  { %v208_v19 = vadd.f32 %v310_v15, %v206_v17 }
 0x15f   :  { %v207_v20 = vld [vmem:[#allocation2 + $0x8] sm:$0xff] }
 0x160   :  { %v217_v21 = vadd.f32 %v301_v18, %v208_v19  ;;  %v209_v22 = vadd.f32 %v311_v16, %v207_v20 }
 0x162   :  { %v219_v23 = vsel %vm105_vm0, %v217_v21, 0.0  ;;  %v218_v24 = vadd.f32 %v301_v18, %v209_v22 }
 0x163   :  { %220 = vadd.xlane.f32.xlu0 %v219_v23 }
 0x164   :  { %v222_v25 = vsel %vm105_vm0, %v218_v24, 0.0 }
 0x167   :  { %223 = vadd.xlane.f32.xlu0 %v222_v25 }
 0x1f0   :  { %v221_v26 = vpop.xlane.xlu0 %220 }
 0x1f1   :  { %v226_v27 = vmul.f32 0.03125, %v221_v26 }
 0x1f3   :  { %v228_v28 = vsub.f32 %v217_v21, %v226_v27 }
 0x1f4   :  { %v224_v29 = vpop.xlane.xlu0 %223 }
 0x1f5   :  { %v227_v30 = vmul.f32 0.03125, %v224_v29  ;;  %v230_v31 = vmul.f32 %v228_v28, %v228_v28 }
 0x1f7   :  { %v229_v32 = vsub.f32 %v218_v24, %v227_v30  ;;  %v232_v33 = vsel %vm105_vm0, %v230_v31, 0.0 }
 0x1f8   :  { %233 = vadd.xlane.f32.xlu1 %v232_v33 }
 0x1f9   :  { %v231_v34 = vmul.f32 %v229_v32, %v229_v32 }
 0x1fb   :  { %v235_v35 = vsel %vm105_vm0, %v231_v34, 0.0 }
 0x1fc   :  { %236 = vadd.xlane.f32.xlu1 %v235_v35 }
 0x285   :  { %v234_v36 = vpop.xlane.xlu1 %233 }
 0x286   :  { %v238_v37 = vmul.f32 0.03125, %v234_v36 }
 0x288   :  { %v240_v38 = vadd.f32 1e-05, %v238_v37 }
 0x289   :  { %v237_v39 = vpop.xlane.xlu1 %236 }
 0x28a   :  { %345 = vrsqrt.f32 %v240_v38  ;;  %v239_v40 = vmul.f32 0.03125, %v237_v39 }
 0x28c   :  { %v241_v41 = vadd.f32 1e-05, %v239_v40 }
 0x28e   :  { %347 = vrsqrt.f32 %v241_v41 }
 0x294   :  { %v346_v42 = vpop.eup %345 }
 0x295   :  { %v244_v44 = vmul.f32 %v346_v42, %v228_v28 }
 0x297   :  { %v253_v46 = vmul.f32 %v302_v43, %v244_v44 }
 0x298   :  { %v348_v47 = vpop.eup %347 }
 0x299   :  { %v245_v48 = vmul.f32 %v348_v47, %v229_v32  ;;  %v262_v49 = vadd.f32 %v303_v45, %v253_v46 }
 0x29b   :  { %v254_v50 = vmul.f32 %v302_v43, %v245_v48  ;;  %v306_v51 = vpack.c.bf16 %v262_v49, %v262_v49 }
 0x29d   :  { %v263_v52 = vadd.f32 %v303_v45, %v254_v50  ;;  %273 = vst.msk [vmem:[#allocation14] sm:$0xf] %vm272_vm3, %v306_v51 }
 0x29f   :  { %v307_v53 = vpack.c.bf16 %v263_v52, %v263_v52 }
 0x2a1   :  { %274 = vst.msk [vmem:[#allocation14 + $0x4] sm:$0xf] %vm272_vm3, %v307_v53 }
 0x2a2   :  { %492 = shalt.err (!%p489_p10)
}
 0x2a3   :  { %s493_s27 = scalar_lea.hbm %s676_s6, 128 }
 0x2a4   :  { %p494_p11 = scmp.ne.s32.totalorder %s676_s6, %s493_s27  ;;  %p497_p12 = scmp.lt.u32.totalorder %s493_s27, %s676_s6 }
 0x2a6   :  { %p499_p13 = pnand %p497_p12, %p494_p11 }
 0x2a8   :  { %502 = shalt.err (!%p499_p13)
}
 0x2a9   :  { %286 = dma.vmem_to_hbm [thread:$0]  %s281_s21, 128, %s676_s6, [#allocation5], %s515_s9, %s515_s9, %s516_s10  }
 0x2aa   :  { %511 = dma.done.wait [#allocation5], 128  }
 0x2ab   :  { %512 = vsyncadd [#allocation5], 4294967168 }
 0x2ac   :  { %290 = vsyncpa [#allocation4], 1 }
 0x2ad   :  { %291 = vsyncpa [#allocation7], 1 }
 0x2ae   :  { %292 = vsyncpa [#allocation10], 1 }
 0x2af   :  { %293 = vsyncpa [#allocation13], 1 }
 0x2b0   :  { %294 = vsyncpa [#allocation5], 1 }

// kernel: _lambda_.42
= control target key start
LH: loop header
LB: loop body
LE: loop exit
PB: predicated region body
PF: predicated region fallthrough
CT: control target
= control target key end

     0   :  { %8 = vsyncpa [#allocation4], 0  ;;  %s401_s0 = inlined_call_operand.hbm [shape: bf16[16,32], index: 0, kind: input, shape index: {}]   ;;  %s402_s1 = inlined_call_operand.hbm [shape: bf16[32,32], index: 1, kind: input, shape index: {}]   ;;  %s403_s2 = inlined_call_operand.hbm [shape: f32[1,32], index: 2, kind: input, shape index: {}]   ;;  %s404_s3 = inlined_call_operand.hbm [shape: bf16[16,32], index: 3, kind: output, shape index: {}]  }
   0x1   :  { %9 = vsyncpa [#allocation7], 0 }
   0x2   :  { %10 = vsyncpa [#allocation5], 0  ;;  %s304_s12 = smov [#allocation6]   ;;  %s305_s14 = smov [#allocation3]  }
   0x3   :  { %s28_s13 = sshll.u32 %s304_s12, 4  ;;  %s16_s15 = sshll.u32 %s305_s14, 4  ;;  %s29_s13 = int_to_ptr.vmem [resolvable:$true] %s28_s13  ;;  %s332_s15 = int_to_ptr.vmem [resolvable:$true] %s16_s15 }
   0x4   :  { %s210_s18 = scalar_lea.hbm %s402_s1, 256 }
   0x5   :  { %p211_p0 = scmp.ne.s32.totalorder %s402_s1, %s210_s18  ;;  %p214_p1 = scmp.lt.u32.totalorder %s210_s18, %s402_s1 }
   0x7   :  { %p216_p2 = pnand %p214_p1, %p211_p0 }
   0x9   :  { %219 = shalt.err (!%p216_p2)
}
   0xa   :  { %s220_s23 = scalar_lea.vmem %s29_s13, 256  ;;  %p225_p4 = scmp.lt.s32.totalorder %s29_s13, %s29_s13 }
   0xb   :  { %p221_p3 = scmp.ne.s32.totalorder %s29_s13, %s220_s23  ;;  %p226_p5 = scmp.lt.s32.totalorder %s220_s23, %s220_s23 }
   0xd   :  { %p227_p6 = por %p226_p5, %p225_p4 }
   0xf   :  { %p228_p7 = pnand %p227_p6, %p221_p3 }
  0x11   :  { %231 = shalt.err (!%p228_p7)
}
  0x12   :  { %s306_s24 = smov 64   ;;  %s307_s25 = smov 4  }
  0x13   :  { %34 = dma.hbm_to_vmem [thread:$0]  %s402_s1, 256, %s29_s13, [#allocation7], %s306_s24, %s306_s24, %s307_s25  }
  0x14   :  { %s232_s30 = scalar_lea.hbm %s401_s0, 128 }
  0x15   :  { %p233_p8 = scmp.ne.s32.totalorder %s401_s0, %s232_s30  ;;  %p236_p9 = scmp.lt.u32.totalorder %s232_s30, %s401_s0 }
  0x17   :  { %p238_p10 = pnand %p236_p9, %p233_p8 }
  0x19   :  { %241 = shalt.err (!%p238_p10)
}
  0x1a   :  { %s242_s8 = scalar_lea.vmem %s332_s15, 128  ;;  %p247_p12 = scmp.lt.s32.totalorder %s332_s15, %s332_s15 }
  0x1b   :  { %p243_p11 = scmp.ne.s32.totalorder %s332_s15, %s242_s8  ;;  %p248_p13 = scmp.lt.s32.totalorder %s242_s8, %s242_s8 }
  0x1d   :  { %p249_p0 = por %p248_p13, %p247_p12 }
  0x1f   :  { %p250_p1 = pnand %p249_p0, %p243_p11 }
  0x21   :  { %253 = shalt.err (!%p250_p1)
}
  0x22   :  { %22 = dma.hbm_to_vmem [thread:$0]  %s401_s0, 128, %s332_s15, [#allocation4], %s306_s24, %s306_s24, %s307_s25  }
  0x23   :  { %s308_s10 = smov [#allocation8]   ;;  %s254_s14 = scalar_lea.hbm %s403_s2, 16 }
  0x24   :  { %s41_s11 = sshll.u32 %s308_s10, 4  ;;  %p255_p2 = scmp.ne.s32.totalorder %s403_s2, %s254_s14  ;;  %s42_s11 = int_to_ptr.vmem [resolvable:$true] %s41_s11 }
  0x25   :  { %p258_p3 = scmp.lt.u32.totalorder %s254_s14, %s403_s2 }
  0x27   :  { %p260_p4 = pnand %p258_p3, %p255_p2 }
  0x29   :  { %263 = shalt.err (!%p260_p4)
}
  0x2a   :  { %s264_s20 = scalar_lea.vmem %s42_s11, 16  ;;  %s268_s0 = scalar_lea.vmem %s42_s11, 32 }
  0x2b   :  { %p265_p5 = scmp.ne.s32.totalorder %s42_s11, %s264_s20  ;;  %p269_p6 = scmp.lt.s32.totalorder %s42_s11, %s42_s11 }
  0x2c   :  { %p270_p7 = scmp.lt.s32.totalorder %s268_s0, %s264_s20 }
  0x2e   :  { %p271_p8 = por %p270_p7, %p269_p6 }
  0x30   :  { %p272_p9 = pnand %p271_p8, %p265_p5 }
  0x32   :  { %275 = shalt.err (!%p272_p9)
}
  0x33   :  { %44 = dma.hbm_to_vmem [thread:$0]  %s403_s2, 16, %s42_s11, [#allocation7]  }
  0x34   :  { %298 = dma.done.wait [#allocation4], 128  }
  0x35   :  { %299 = vsyncadd [#allocation4], 4294967168 }
  0x36   :  { %300 = dma.done.wait [#allocation7], 272  }
  0x37   :  { %301 = vsyncadd [#allocation7], 4294967024  ;;  %vm59_vm0 = vcmask 261120   ;;  %v309_v0 = vmov 0.0   ;;  %vm310_vm1 = vmmov 0   ;;  %v207_v1 = vld [vmem:[#allocation6] sm:$0xff]  }
  0x38   :  { %191 = vmatprep.subr.bf16.mxu0 %v309_v0  ;;  %195 = vmatprep.mubr.msk.bf16.mxu0 %vm310_vm1, %v309_v0  ;;  %60 = vst.msk [vmem:[#allocation2] sm:$0xff] %vm59_vm0, %v309_v0  ;;  %61 = vst.msk [vmem:[#allocation2 + $0x8] sm:$0xff] %vm59_vm0, %v309_v0  ;;  %v208_v2 = vld [vmem:[#allocation6 + $0x8] sm:$0xff]   ;;  %v209_v3 = vld [vmem:[#allocation3] sm:$0xff]   ;;  %vm158_vm2 = vcmask 257024   ;;  %s311_s2 = smov [#allocation9]  }
  0x39   :  { %192 = vmatpush3.bf16.msra.mxu0 %v207_v1  ;;  %v183_v12 = vld [vmem:[#allocation8] ss:$0 sm:$0xff]  ;;  %s166_s22 = sshll.u32 %s311_s2, 4  ;;  %s167_s22 = int_to_ptr.vmem [resolvable:$true] %s166_s22 }
  0x3a   :  { %193 = vmatprep.subr.bf16.mxu0 %v309_v0  ;;  %s276_s23 = scalar_lea.vmem %s167_s22, 128  ;;  %p281_p11 = scmp.lt.s32.totalorder %s167_s22, %s167_s22 }
  0x3b   :  { %p277_p10 = scmp.ne.s32.totalorder %s167_s22, %s276_s23  ;;  %p282_p12 = scmp.lt.s32.totalorder %s276_s23, %s276_s23 }
  0x3d   :  { %194 = vmatpush3.bf16.msra.mxu0 %v208_v2  ;;  %p283_p13 = por %p282_p12, %p281_p11 }
  0x3f   :  { %v62_v4 = vld [vmem:[#allocation2] sm:$0xff]  ;;  %v63_v6 = vld [vmem:[#allocation2 + $0x8] sm:$0xff]  ;;  %p284_p0 = pnand %p283_p13, %p277_p10 }
  0x40   :  { %196 = vmatmul.mubr.msk.bf16.vlgmr.msra.gmra.mrb[0].mxu0 %vm59_vm0, %v209_v3 }
 0x113   :  { %v125_v5 = vpop.f32.mrb[0].mxu0 }
 0x114   :  { %v132_v7 = vadd.f32 %v125_v5, %v62_v4  ;;  %v197_v8 = vpop.f32.mrb[1].mxu0 }
 0x115   :  { %v128_v9 = vpop.f32.mrb[2].mxu0 }
 0x116   :  { %134 = vst.msk [vmem:[#allocation2] sm:$0xff] %vm59_vm0, %v132_v7  ;;  %v133_v10 = vadd.f32 %v128_v9, %v63_v6  ;;  %v198_v11 = vpop.f32.mrb[3].mxu0 }
 0x118   :  { %135 = vst.msk [vmem:[#allocation2 + $0x8] sm:$0xff] %vm59_vm0, %v133_v10 }
 0x11d   :  { %v139_v13 = vld [vmem:[#allocation2] sm:$0xff] }
 0x11e   :  { %v148_v14 = vadd.f32 %v183_v12, %v139_v13 }
 0x11f   :  { %v140_v15 = vld [vmem:[#allocation2 + $0x8] sm:$0xff] }
 0x120   :  { %v149_v16 = vadd.f32 %v183_v12, %v140_v15  ;;  %v186_v17 = vpack.c.bf16 %v148_v14, %v148_v14 }
 0x122   :  { %v187_v18 = vpack.c.bf16 %v149_v16, %v149_v16  ;;  %159 = vst.msk [vmem:[#allocation9] sm:$0xf] %vm158_vm2, %v186_v17 }
 0x124   :  { %160 = vst.msk [vmem:[#allocation9 + $0x4] sm:$0xf] %vm158_vm2, %v187_v18 }
 0x125   :  { %287 = shalt.err (!%p284_p0)
}
 0x126   :  { %s288_s28 = scalar_lea.hbm %s404_s3, 128 }
 0x127   :  { %p289_p1 = scmp.ne.s32.totalorder %s404_s3, %s288_s28  ;;  %p292_p2 = scmp.lt.u32.totalorder %s288_s28, %s404_s3 }
 0x129   :  { %p294_p3 = pnand %p292_p2, %p289_p1 }
 0x12b   :  { %297 = shalt.err (!%p294_p3)
}
 0x12c   :  { %172 = dma.vmem_to_hbm [thread:$0]  %s167_s22, 128, %s404_s3, [#allocation5], %s306_s24, %s306_s24, %s307_s25  }
 0x12d   :  { %302 = dma.done.wait [#allocation5], 128  }
 0x12e   :  { %303 = vsyncadd [#allocation5], 4294967168 }
 0x12f   :  { %176 = vsyncpa [#allocation4], 1 }
 0x130   :  { %177 = vsyncpa [#allocation7], 1 }
 0x131   :  { %178 = vsyncpa [#allocation5], 1 }

// kernel: _lambda_.44
= control target key start
LH: loop header
LB: loop body
LE: loop exit
PB: predicated region body
PF: predicated region fallthrough
CT: control target
= control target key end

     0   :  { %7 = vsyncpa [#allocation3], 0  ;;  %s1453_s0 = inlined_call_operand.hbm [shape: bf16[2,8,32], index: 0, kind: input, shape index: {}]   ;;  %s1454_s1 = inlined_call_operand.hbm [shape: bf16[2,8,64], index: 1, kind: input, shape index: {}]   ;;  %s1455_s2 = inlined_call_operand.hbm [shape: bf16[2,8,32], index: 2, kind: output, shape index: {}]  }
   0x1   :  { %9 = vsyncpa [#allocation3 + $0x1], 0 }
   0x2   :  { %10 = vsyncpa [#allocation6], 0 }
   0x3   :  { %12 = vsyncpa [#allocation6 + $0x1], 0 }
   0x4   :  { %13 = vsyncpa [#allocation4], 0 }
   0x5   :  { %15 = vsyncpa [#allocation4 + $0x1], 0  ;;  %s1167_s9 = smov 0   ;;  %s1169_s10 = smov 0  }
   0x6   :  { %s1171_s11 = smov 0   ;;  %s1173_s12 = smov 0  }
   0x7   :  { %s1175_s13 = smov 0   ;;  %s1177_s14 = smov 0  }
   0x8 LB: > { %s802_s15 = sadd.s32 4294967295, %s1135_s14   ;;  %s803_s16 = sadd.s32 4294967294, %s1135_s14   ;;  %s1135_s14 = sphi %s1177_s14, %s21_s14   ;;  %s1131_s13 = sphi %s1175_s13, %s1475_s13   ;;  %s1127_s12 = sphi %s1173_s12, %s1474_s12   ;;  %s1123_s11 = sphi %s1171_s11, %s1473_s11   ;;  %s1119_s10 = sphi %s1169_s10, %s1472_s10   ;;  %s1115_s9 = sphi %s1167_s9, %s1471_s9  }
   0x9   : > { %s33_s17 = sadd.s32 1, %s1131_s13  ;;  %s42_s18 = sadd.s32 1, %s1123_s11 }
   0xa   : > { %p35_p0 = scmp.ge.s32.totalorder %s33_s17, 2  ;;  %p49_p1 = scmp.ne.s32.totalorder %s1123_s11, %s1119_s10 }
   0xb   : > { %p50_p2 = scmp.eq.s32.totalorder %s1135_s14, 0  ;;  %p55_p3 = scmp.ne.s32.totalorder %s1119_s10, %s1115_s9 }
   0xc   : > { %s1477_s17 = smov (%p35_p0, %s33_s17), 0  ;;  %p56_p5 = scmp.eq.s32.totalorder %s802_s15, 0 }
   0xd   : > { %p1208_p4 = por %p50_p2, %p49_p1  ;;  %s37_s20 = ssub.s32 %s1131_s13, %s1477_s17 }
   0xe   : > { %p107_p6 = scmp.eq.s32.totalorder %s802_s15, 1  ;;  %p40_p7 = scmp.eq.s32.totalorder %s37_s20, 0 }
   0xf   : > { %p1214_p8 = por %p56_p5, %p55_p3  ;;  %p113_p10 = scmp.eq.s32.totalorder %s803_s16, 1 }
  0x10   : > { %p1218_p9 = por %p107_p6, %p49_p1  ;;  %p909_p13 = scmp.lt.s32.totalorder %s1135_s14, 2 }
  0x11   : > { %s1459_s21 = scalar_select %p1214_p8, 1, 0 }
  0x12   : > { %s1460_s22 = scalar_select %p1218_p9, 1, 0 }
  0x13   : > { %s1223_s23 = scalar_select %p40_p7, %s1123_s11, %s42_s18  }
  0x14   : > { %p1225_p11 = por %p113_p10, %p55_p3  ;;  %s1232_s25 = sand.u32 1, %s1123_s11  }
  0x15   : > { %s806_s26 = sshll.u32 %s1232_s25, 2  ;;  %s807_s27 = sshll.u32 %s1131_s13, 6 }
  0x16   : > { %s1461_s24 = scalar_select %p1225_p11, 1, 0 }
  0x17   : > { %s1241_s30 = scalar_lea.hbm %s1453_s0, %s807_s27  ;;  %s137_s3 = scalar_lea.vmem [#allocation2], %s806_s26 }
  0x18   : > { %s145_s4 = sshll.u32 %s137_s3, 4  ;;  %p1249_p0 = pnand %p909_p13, %p1208_p4  ;;  %s1245_s4 = int_to_ptr.vmem [resolvable:$true] %s145_s4 }
  0x19   : > { %s134_s6 = scalar_lea.sflag [#allocation3], %s1232_s25  ;;  %s989_s7 = scalar_lea.hbm %s1241_s30, 64 }
  0x1a   : > { %p990_p3 = scmp.ne.s32.totalorder %s1241_s30, %s989_s7  ;;  %p991_p5 = pneg %p1249_p0 }
  0x1b   : > { %s994_s16 = scalar_lea.hbm %s1453_s0, 128  ;;  %p995_p4 = scmp.lt.u32.totalorder %s1241_s30, %s1453_s0 }
  0x1c   : > { %p992_p6 = pnand %p991_p5, %p990_p3  ;;  %p996_p10 = scmp.lt.u32.totalorder %s994_s16, %s989_s7 }
  0x1d   : > { %p998_p12 = scmp.lt.u32.totalorder %s989_s7, %s1241_s30 }
  0x1e   : > { %p993_p7 = pneg %p992_p6  ;;  %p997_p13 = por %p996_p10, %p995_p4 }
  0x20   : > { %p999_p1 = por %p998_p12, %p997_p13 }
  0x22   : > { %p1000_p2 = pnand %p999_p1, %p993_p7 }
  0x24   : > { %1003 = shalt.err (!%p1000_p2)
}
  0x25   : > { %s1004_s20 = scalar_lea.vmem %s1245_s4, 64  ;;  %s1137_s28 = smov [#allocation2]  }
  0x26   : > { %p1005_p3 = scmp.ne.s32.totalorder %s1245_s4, %s1004_s20  ;;  %s1009_s29 = sshll.u32 %s1137_s28, 4  ;;  %s1010_s29 = int_to_ptr.vmem [resolvable:$false] %s1009_s29 }
  0x27   : > { %s1011_s3 = scalar_lea.vmem %s1010_s29, 128  ;;  %p1012_p9 = scmp.lt.s32.totalorder %s1245_s4, %s1010_s29 }
  0x28   : > { %p1007_p6 = pnand %p1005_p3, %p991_p5  ;;  %p1013_p4 = scmp.lt.s32.totalorder %s1011_s3, %s1004_s20 }
  0x2a   : > { %p1008_p11 = pneg %p1007_p6  ;;  %p1014_p10 = por %p1013_p4, %p1012_p9 }
  0x2c   : > { %p1015_p12 = pnand %p1014_p10, %p1008_p11 }
  0x2e   : > { %1018 = shalt.err (!%p1015_p12)
}
  0x2f   : > { %901 = dma.hbm_to_vmem [thread:$0]  (!%p1249_p0), %s1241_s30, 64, %s1245_s4, %s134_s6  }
  0x30   : > { %p1463_p1 = scmp.lt.s32.totalorder %s1135_s14, 3  ;;  %p1464_p2 = scmp.ge.s32.totalorder %s1135_s14, 1 }
  0x31   : > { %s1294_s16 = scalar_lea.hbm %s1454_s1, %s807_s27  ;;  %s156_s18 = scalar_lea.vmem [#allocation5], %s806_s26 }
  0x32   : > { %p1285_p7 = pnand %p1464_p2, %p1463_p1  ;;  %s163_s19 = sshll.u32 %s156_s18, 4  ;;  %s164_s19 = int_to_ptr.vmem [resolvable:$true] %s163_s19 }
  0x33   : > { %s153_s30 = scalar_lea.sflag [#allocation6], %s1232_s25  ;;  %s1019_s4 = scalar_lea.hbm %s1294_s16, 64 }
  0x34   : > { %s1465_s7 = scalar_select %p1285_p7, 1, 0 }
  0x35   : > { %p1020_p9 = scmp.ne.s32.totalorder %s1294_s16, %s1019_s4  ;;  %s1024_s27 = scalar_lea.hbm %s1454_s1, 128 }
  0x36   : > { %p1025_p3 = scmp.lt.u32.totalorder %s1294_s16, %s1454_s1  ;;  %p1026_p6 = scmp.lt.u32.totalorder %s1024_s27, %s1019_s4 }
  0x37   : > { %p1022_p11 = pnand %p1020_p9, %p991_p5  ;;  %p1028_p10 = scmp.lt.u32.totalorder %s1019_s4, %s1294_s16 }
  0x38   : > { %p1027_p4 = por %p1026_p6, %p1025_p3 }
  0x39   : > { %p1023_p13 = pneg %p1022_p11 }
  0x3a   : > { %p1029_p12 = por %p1028_p10, %p1027_p4 }
  0x3c   : > { %p1030_p1 = pnand %p1029_p12, %p1023_p13 }
  0x3e   : > { %1033 = shalt.err (!%p1030_p1)
}
  0x3f   : > { %s1034_s25 = scalar_lea.vmem %s164_s19, 64  ;;  %s1138_s26 = smov [#allocation5]  }
  0x40   : > { %p1035_p2 = scmp.ne.s32.totalorder %s164_s19, %s1034_s25  ;;  %s1039_s3 = sshll.u32 %s1138_s26, 4  ;;  %s1040_s3 = int_to_ptr.vmem [resolvable:$false] %s1039_s3 }
  0x41   : > { %s1041_s8 = scalar_lea.vmem %s1040_s3, 128  ;;  %p1042_p8 = scmp.lt.s32.totalorder %s164_s19, %s1040_s3 }
  0x42   : > { %p1037_p9 = pnand %p1035_p2, %p991_p5  ;;  %p1043_p7 = scmp.lt.s32.totalorder %s1041_s8, %s1034_s25 }
  0x44   : > { %p1038_p11 = pneg %p1037_p9  ;;  %p1044_p3 = por %p1043_p7, %p1042_p8 }
  0x46   : > { %p1045_p6 = pnand %p1044_p3, %p1038_p11 }
  0x48   : > { %1048 = shalt.err (!%p1045_p6)
}
  0x49   : > { %904 = dma.hbm_to_vmem [thread:$0]  (!%p1249_p0), %s1294_s16, 64, %s164_s19, %s153_s30  }
  0x4a   : > { %p1466_p13 = scmp.ne.s32.totalorder %s1465_s7, 0 }
  0x4b   : > { %s1321_s15 = sand.u32 (!%p1466_p13), 1, %s1119_s10   ;;  %p1467_p8 = scmp.ne.s32.totalorder (!%p1466_p13), %s1459_s21, 0 }
  0x4c   : > { %172 = sbr.rel (%p1466_p13) target bundleno = 1525 (0x5f5), region = 28  ;;  %s1324_s18 = sshll.u32 (!%p1466_p13), %s1321_s15, 2 }
  0x4d   : > { %s175_s4 = scalar_lea.sflag (!%p1466_p13), [#allocation3], %s1321_s15  ;;  %s178_s6 = scalar_lea.vmem (!%p1466_p13), [#allocation2], %s1324_s18 }
  0x53   : > { %1102 = dma.done.wait (%p1467_p8), %s175_s4, 64  }
  0x54   : > { %1104 = vsyncadd (%p1467_p8), %s175_s4, 4294967232  ;;  %s184_s5 = scalar_lea.sflag [#allocation6], %s1321_s15  ;;  %s187_s7 = scalar_lea.vmem [#allocation5], %s1324_s18 }
  0x55   : > { %1106 = dma.done.wait (%p1467_p8), %s184_s5, 64  }
  0x56   : > { %1108 = vsyncadd (%p1467_p8), %s184_s5, 4294967232  ;;  %v1139_v0 = vmov 0.0   ;;  %vm1140_vm0 = vmmov 0   ;;  %vm216_vm1 = vcmask 64512   ;;  %v215_v1 = vld [vmem:[%s187_s7] sm:$0xf] }
  0x57   : > { %844 = vmatprep.subr.bf16.mxu0 %v1139_v0  ;;  %846 = vmatprep.mubr.msk.bf16.mxu0 %vm1140_vm0, %v1139_v0  ;;  %v221_v2 = vsel %vm216_vm1, %v215_v1, 0  ;;  %v214_v3 = vld [vmem:[%s178_s6] sm:$0xf]  ;;  %v1350_v10 = vcombine.low %v215_v1, %v215_v1  ;;  %s1141_s21 = smov 96   ;;  %s1142_s16 = smov 120   ;;  %vm284_vm2 = vcmask 1043456  }
  0x58   : > { %850 = vmatprep.subr.bf16.mxu1 %v1139_v0  ;;  %852 = vmatprep.mubr.msk.bf16.mxu1 %vm1140_vm0, %v1139_v0  ;;  %s1143_s19 = smov 112   ;;  %v817_v11 = vcombine.low %v214_v3, %v214_v3  ;;  %s1144_s30 = smov 104   ;;  %vm677_vm3 = vcmask 130048   ;;  %vm679_vm4 = vcmask 195584   ;;  %vm682_vm5 = vcmask 257024  }
  0x59   : > { %845 = vmatpush3.bf16.xpose.msra.mxu0 %v221_v2  ;;  %279 = vrot.lane.b32.xlu1 %v1350_v10, %s1141_s21  ;;  %s1145_s20 = smov 88   ;;  %s1146_s27 = smov 72  }
  0x5a   : > { %862 = vmatprep.subr.bf16.mxu0 %v1139_v0  ;;  %s1147_s28 = smov 80   ;;  %s1148_s29 = smov 8  }
  0x5b   : > { %s1149_s25 = smov 16   ;;  %s1150_s26 = smov 24  }
  0x5c   : > { %s825_s3 = sshll.u32 %s1127_s12, 6  ;;  %s212_s8 = scalar_lea.vmem [#allocation7], %s1324_s18 }
  0x5d   : > { %333 = vrot.lane.b32.xlu1 %v1350_v10, %s1142_s16  ;;  %s699_s4 = sshll.u32 %s212_s8, 4  ;;  %s1404_s7 = scalar_lea.hbm %s1455_s2, %s825_s3  ;;  %s1406_s4 = int_to_ptr.vmem [resolvable:$true] %s699_s4 }
  0x5e   : > { %s685_s21 = scalar_lea.sflag [#allocation4], %s1321_s15  ;;  %s1049_s12 = scalar_lea.vmem %s1406_s4, 64 }
  0x5f   : > { %p1050_p0 = scmp.ne.s32.totalorder %s1406_s4, %s1049_s12  ;;  %p1468_p5 = scmp.ne.s32.totalorder %s1460_s22, 0 }
  0x60   : > { %847 = vmatmul.mubr.msk.bf16.vlgmr.msra.gmra.mrb[0].mxu0 %vm216_vm1, %v214_v3  ;;  %s1151_s18 = smov [#allocation7]  }
  0x61   : > { %864 = vmatprep.mubr.msk.bf16.mxu0 %vm1140_vm0, %v1139_v0  ;;  %444 = vrot.lane.b32.xlu1 %v1350_v10, %s1143_s19  ;;  %p1051_p7 = pnand %p1050_p0, %p1468_p5 }
  0x63   : > { %p1052_p4 = pneg %p1051_p7 }
  0x65   : > { %442 = vrot.lane.b32.xlu1 %v817_v11, %s1143_s19 }
  0x69   : > { %555 = vrot.lane.b32.xlu1 %v1350_v10, %s1144_s30 }
  0x6d   : > { %553 = vrot.lane.b32.xlu1 %v817_v11, %s1144_s30 }
  0xcb   : > { %v280_v17 = vpop.permute.xlu1 %279 }
  0xcc   : > { %v286_v18 = vsel %vm284_vm2, %v280_v17, 0 }
  0xcd   : > { %851 = vmatpush3.bf16.msra.mxu1 %v286_v18 }
  0xce   : > { %856 = vmatprep.subr.bf16.mxu1 %v1139_v0 }
  0xcf   : > { %v334_v21 = vpop.permute.xlu1 %333 }
  0xd0   : > { %v339_v23 = vsel %vm216_vm1, %v334_v21, 0 }
  0xd3   : > { %v445_v25 = vpop.permute.xlu1 %444 }
  0xd4   : > { %v450_v28 = vsel %vm216_vm1, %v445_v25, 0 }
  0xd7   : > { %v443_v27 = vpop.permute.xlu1 %442 }
  0xdb   : > { %v556_v29 = vpop.permute.xlu1 %555 }
  0xdc   : > { %v561_v30 = vsel %vm216_vm1, %v556_v29, 0 }
  0xdf   : > { %v554_v31 = vpop.permute.xlu1 %553 }
 0x133   : > { %v257_v4 = vpop.f32.mrb[0].mxu0 }
 0x134   : > { %v263_v5 = vmul.f32 0.35355338, %v257_v4  ;;  %v848_v6 = vpop.f32.mrb[1].mxu0 }
 0x135   : > { %v260_v7 = vpop.f32.mrb[2].mxu0 }
 0x136   : > { %v849_v8 = vpop.f32.mrb[3].mxu0  ;;  %v264_v9 = vsel %vm216_vm1, %v263_v5, -inf }
 0x137   : > { %265 = vmax.xlane.f32.xlu0 %v264_v9 }
 0x1c4   : > { %v266_v12 = vpop.xlane.xlu0 %265 }
 0x1c5   : > { %v267_v13 = vsub.f32 %v263_v5, %v266_v12 }
 0x1c7   : > { %v268_v14 = vmul.f32 1.442695, %v267_v13 }
 0x1c9   : > { %973 = vpow2.f32 %v268_v14 }
 0x1d3   : > { %v974_v15 = vpop.eup %973 }
 0x1d4   : > { %v270_v16 = vsel %vm216_vm1, %v974_v15, 0.0 }
 0x1d5   : > { %271 = vadd.xlane.f32.xlu0 %v270_v16 }
 0x1eb   : > { %331 = vrot.lane.b32.xlu0 %v817_v11, %s1142_s16  ;;  %s1053_s16 = sshll.u32 %s1151_s18, 4  ;;  %s1054_s16 = int_to_ptr.vmem [resolvable:$false] %s1053_s16 }
 0x1ec   : > { %s1055_s19 = scalar_lea.vmem %s1054_s16, 128  ;;  %p1056_p10 = scmp.lt.s32.totalorder %s1406_s4, %s1054_s16 }
 0x1ed   : > { %p1057_p12 = scmp.lt.s32.totalorder %s1055_s19, %s1049_s12 }
 0x1ef   : > { %p1058_p1 = por %p1057_p12, %p1056_p10 }
 0x1f1   : > { %p1059_p2 = pnand %p1058_p1, %p1052_p4 }
 0x262   : > { %v272_v19 = vpop.xlane.xlu0 %271 }
 0x263   : > { %975 = vrcp.f32 %v272_v19 }
 0x266   : > { %v332_v26 = vpop.permute.xlu0 %331 }
 0x26d   : > { %v976_v20 = vpop.eup %975 }
 0x26e   : > { %v274_v22 = vmul.f32 %v976_v20, %v974_v15 }
 0x270   : > { %v275_v24 = vpack.c.bf16 %v274_v22, %v274_v22 }
 0x272   : > { %853 = vmatmul.mubr.msk.bf16.vlgmr.msra.gmra.mrb[0].mxu1 %vm216_vm1, %v275_v24 }
 0x273   : > { %857 = vmatpush3.bf16.xpose.msra.mxu1 %v339_v23  ;;  %858 = vmatprep.mubr.msk.bf16.mxu1 %vm1140_vm0, %v1139_v0 }
 0x274   : > { %868 = vmatprep.subr.bf16.mxu1 %v1139_v0 }
 0x27a   : > { %859 = vmatmul.mubr.msk.bf16.vlgmr.msra.gmra.mrb[4].mxu1 %vm216_vm1, %v332_v26 }
 0x27b   : > { %869 = vmatpush3.bf16.xpose.msra.mxu1 %v450_v28  ;;  %870 = vmatprep.mubr.msk.bf16.mxu1 %vm1140_vm0, %v1139_v0 }
 0x27c   : > { %880 = vmatprep.subr.bf16.mxu1 %v1139_v0 }
 0x282   : > { %871 = vmatmul.mubr.msk.bf16.vlgmr.msra.gmra.mrb[8].mxu1 %vm216_vm1, %v443_v27 }
 0x283   : > { %881 = vmatpush3.bf16.xpose.msra.mxu1 %v561_v30  ;;  %882 = vmatprep.mubr.msk.bf16.mxu1 %vm1140_vm0, %v1139_v0 }
 0x28a   : > { %883 = vmatmul.mubr.msk.bf16.vlgmr.msra.gmra.mrb[12].mxu1 %vm216_vm1, %v554_v31 }
 0x345   : > { %v1374_v32 = vpop.f32.mrb[0].mxu1 }
 0x346   : > { %v854_v33 = vpop.f32.mrb[1].mxu1 }
 0x347   : > { %v325_v34 = vpop.f32.mrb[2].mxu1 }
 0x348   : > { %v855_v35 = vpop.f32.mrb[3].mxu1 }
 0x34d   : > { %v375_v36 = vpop.f32.mrb[4].mxu1 }
 0x34e   : > { %v381_v37 = vmul.f32 0.35355338, %v375_v36  ;;  %v860_v38 = vpop.f32.mrb[5].mxu1 }
 0x34f   : > { %v378_v39 = vpop.f32.mrb[6].mxu1 }
 0x350   : > { %v861_v40 = vpop.f32.mrb[7].mxu1  ;;  %v382_v41 = vsel %vm216_vm1, %v381_v37, -inf }
 0x351   : > { %383 = vmax.xlane.f32.xlu1 %v382_v41 }
 0x355   : > { %v486_v42 = vpop.f32.mrb[8].mxu1 }
 0x356   : > { %v492_v43 = vmul.f32 0.35355338, %v486_v42  ;;  %v872_v44 = vpop.f32.mrb[9].mxu1 }
 0x357   : > { %v489_v45 = vpop.f32.mrb[10].mxu1 }
 0x358   : > { %v873_v46 = vpop.f32.mrb[11].mxu1  ;;  %v493_v47 = vsel %vm216_vm1, %v492_v43, -inf }
 0x359   : > { %494 = vmax.xlane.f32.xlu0 %v493_v47 }
 0x35d   : > { %v597_v48 = vpop.f32.mrb[12].mxu1 }
 0x35e   : > { %v603_v49 = vmul.f32 0.35355338, %v597_v48  ;;  %v884_v50 = vpop.f32.mrb[13].mxu1 }
 0x35f   : > { %v600_v51 = vpop.f32.mrb[14].mxu1 }
 0x360   : > { %v885_v52 = vpop.f32.mrb[15].mxu1  ;;  %v604_v53 = vsel %vm216_vm1, %v603_v49, -inf }
 0x361   : > { %605 = vmax.xlane.f32.xlu1 %v604_v53 }
 0x372   : > { %394 = vrot.lane.b32.xlu1 %v1350_v10, %s1145_s20 }
 0x3de   : > { %v384_v54 = vpop.xlane.xlu1 %383 }
 0x3df   : > { %v385_v55 = vsub.f32 %v381_v37, %v384_v54 }
 0x3e1   : > { %v386_v56 = vmul.f32 1.442695, %v385_v55 }
 0x3e3   : > { %977 = vpow2.f32 %v386_v56 }
 0x3e6   : > { %v495_v57 = vpop.xlane.xlu0 %494 }
 0x3e7   : > { %v496_v58 = vsub.f32 %v492_v43, %v495_v57 }
 0x3e9   : > { %v497_v59 = vmul.f32 1.442695, %v496_v58 }
 0x3eb   : > { %979 = vpow2.f32 %v497_v59 }
 0x3ed   : > { %v978_v60 = vpop.eup %977 }
 0x3ee   : > { %v606_v61 = vpop.xlane.xlu1 %605  ;;  %v388_v62 = vsel %vm216_vm1, %v978_v60, 0.0 }
 0x3ef   : > { %v607_v63 = vsub.f32 %v603_v49, %v606_v61  ;;  %389 = vadd.xlane.f32.xlu0 %v388_v62 }
 0x3f1   : > { %v608_v1 = vmul.f32 1.442695, %v607_v63 }
 0x3f2   : > { %v395_v2 = vpop.permute.xlu1 %394 }
 0x3f3   : > { %981 = vpow2.f32 %v608_v1  ;;  %v400_v3 = vsel %vm284_vm2, %v395_v2, 0 }
 0x3f4   : > { %863 = vmatpush3.bf16.msra.mxu0 %v400_v3 }
 0x3f5   : > { %v980_v4 = vpop.eup %979  ;;  %874 = vmatprep.subr.bf16.mxu0 %v1139_v0 }
 0x3f6   : > { %v499_v5 = vsel %vm216_vm1, %v980_v4, 0.0 }
 0x3f7   : > { %500 = vadd.xlane.f32.xlu1 %v499_v5 }
 0x3fd   : > { %v982_v6 = vpop.eup %981 }
 0x3fe   : > { %v610_v7 = vsel %vm216_vm1, %v982_v6, 0.0 }
 0x3ff   : > { %611 = vadd.xlane.f32.xlu0 %v610_v7 }
 0x408   : > { %616 = vrot.lane.b32.xlu1 %v1350_v10, %s1146_s27 }
 0x415   : > { %505 = vrot.lane.b32.xlu0 %v1350_v10, %s1147_s28 }
 0x47c   : > { %v390_v8 = vpop.xlane.xlu0 %389 }
 0x47d   : > { %983 = vrcp.f32 %v390_v8 }
 0x484   : > { %v501_v9 = vpop.xlane.xlu1 %500 }
 0x485   : > { %985 = vrcp.f32 %v501_v9 }
 0x487   : > { %v984_v11 = vpop.eup %983 }
 0x488   : > { %v392_v12 = vmul.f32 %v984_v11, %v978_v60  ;;  %v617_v18 = vpop.permute.xlu1 %616 }
 0x489   : > { %v622_v20 = vsel %vm284_vm2, %v617_v18, 0 }
 0x48a   : > { %v393_v13 = vpack.c.bf16 %v392_v12, %v392_v12 }
 0x48c   : > { %v612_v14 = vpop.xlane.xlu0 %611  ;;  %865 = vmatmul.mubr.msk.bf16.vlgmr.msra.gmra.mrb[4].mxu0 %vm216_vm1, %v393_v13 }
 0x48d   : > { %987 = vrcp.f32 %v612_v14  ;;  %876 = vmatprep.mubr.msk.bf16.mxu0 %vm1140_vm0, %v1139_v0 }
 0x48f   : > { %v986_v15 = vpop.eup %985 }
 0x490   : > { %v503_v16 = vmul.f32 %v986_v15, %v980_v4  ;;  %v506_v17 = vpop.permute.xlu0 %505 }
 0x491   : > { %v511_v10 = vsel %vm284_vm2, %v506_v17, 0 }
 0x492   : > { %875 = vmatpush3.bf16.msra.mxu0 %v511_v10  ;;  %v504_v19 = vpack.c.bf16 %v503_v16, %v503_v16 }
 0x493   : > { %886 = vmatprep.subr.bf16.mxu0 %v1139_v0 }
 0x495   : > { %877 = vmatmul.mubr.msk.bf16.vlgmr.msra.gmra.mrb[8].mxu0 %vm216_vm1, %v504_v19 }
 0x496   : > { %887 = vmatpush3.bf16.msra.mxu0 %v622_v20  ;;  %888 = vmatprep.mubr.msk.bf16.mxu0 %vm1140_vm0, %v1139_v0 }
 0x497   : > { %v988_v21 = vpop.eup %987 }
 0x498   : > { %v614_v22 = vmul.f32 %v988_v21, %v982_v6 }
 0x49a   : > { %v615_v23 = vpack.c.bf16 %v614_v22, %v614_v22 }
 0x49d   : > { %889 = vmatmul.mubr.msk.bf16.vlgmr.msra.gmra.mrb[12].mxu0 %vm216_vm1, %v615_v23 }
 0x55f   : > { %v436_v24 = vpop.f32.mrb[4].mxu0 }
 0x560   : > { %665 = vrot.lane.b32.xlu1 %v436_v24, %s1148_s29  ;;  %v866_v25 = vpop.f32.mrb[5].mxu0 }
 0x561   : > { %v439_v26 = vpop.f32.mrb[6].mxu0 }
 0x562   : > { %v867_v27 = vpop.f32.mrb[7].mxu0 }
 0x568   : > { %v547_v28 = vpop.f32.mrb[8].mxu0 }
 0x569   : > { %669 = vrot.lane.b32.xlu0 %v547_v28, %s1149_s25  ;;  %v878_v29 = vpop.f32.mrb[9].mxu0 }
 0x56a   : > { %v550_v30 = vpop.f32.mrb[10].mxu0 }
 0x56b   : > { %v879_v31 = vpop.f32.mrb[11].mxu0 }
 0x570   : > { %v658_v0 = vpop.f32.mrb[12].mxu0 }
 0x571   : > { %673 = vrot.lane.b32.xlu1 %v658_v0, %s1150_s26  ;;  %v890_v33 = vpop.f32.mrb[13].mxu0 }
 0x572   : > { %v661_v34 = vpop.f32.mrb[14].mxu0 }
 0x573   : > { %v891_v35 = vpop.f32.mrb[15].mxu0 }
 0x5d2   : > { %v666_v36 = vpop.permute.xlu1 %665 }
 0x5d3   : > { %v676_v38 = vsel %vm216_vm1, %v1374_v32, %v666_v36 }
 0x5db   : > { %v670_v37 = vpop.permute.xlu0 %669 }
 0x5dc   : > { %v678_v39 = vsel %vm677_vm3, %v676_v38, %v670_v37 }
 0x5e3   : > { %v674_v40 = vpop.permute.xlu1 %673 }
 0x5e4   : > { %v680_v41 = vsel %vm679_vm4, %v678_v39, %v674_v40 }
 0x5e5   : > { %v681_v42 = vpack.c.bf16 %v680_v41, %v680_v41 }
 0x5e7   : > { %683 = vst.msk [vmem:[%s212_s8] sm:$0xf] %vm682_vm5, %v681_v42 }
 0x5e8   : > { %1062 = shalt.err (!%p1059_p2)
}
 0x5e9   : > { %s1063_s15 = scalar_lea.hbm %s1404_s7, 64  ;;  %s1067_s27 = scalar_lea.hbm %s1455_s2, 128 }
 0x5ea   : > { %p1064_p9 = scmp.ne.s32.totalorder %s1404_s7, %s1063_s15  ;;  %p1068_p6 = scmp.lt.u32.totalorder %s1404_s7, %s1455_s2 }
 0x5eb   : > { %p1069_p13 = scmp.lt.u32.totalorder %s1067_s27, %s1063_s15  ;;  %p1071_p0 = scmp.lt.u32.totalorder %s1063_s15, %s1404_s7 }
 0x5ec   : > { %p1065_p11 = pnand %p1064_p9, %p1468_p5 }
 0x5ed   : > { %p1070_p8 = por %p1069_p13, %p1068_p6 }
 0x5ee   : > { %p1066_p3 = pneg %p1065_p11 }
 0x5ef   : > { %p1072_p7 = por %p1071_p0, %p1070_p8 }
 0x5f1   : > { %p1073_p4 = pnand %p1072_p7, %p1066_p3 }
 0x5f3   : > { %1076 = shalt.err (!%p1073_p4)
}
 0x5f4   : > { %896 = dma.vmem_to_hbm [thread:$0]  (%p1468_p5), %s1406_s4, 64, %s1404_s7, %s685_s21  }
 0x5f5 PF: > { %s711_s25 = sand.u32 1, %s1115_s9   ;;  %p1469_p10 = scmp.ne.s32.totalorder %s1461_s24, 0 }
 0x5f6   : > { %p1470_p12 = scmp.ge.s32.totalorder %s1135_s14, 2  ;;  %s712_s26 = scalar_lea.sflag [#allocation4], %s711_s25 }
 0x5f8   : > { %p906_p1 = pnand %p1470_p12, %p1469_p10 }
 0x5fa   : > { %1110 = dma.done.wait (!%p906_p1), %s712_s26, 64  }
 0x5fb   : > { %1112 = vsyncadd (!%p906_p1), %s712_s26, 4294967232  ;;  %s21_s14 = sadd.s32 1, %s1135_s14   ;;  %s1471_s9 = smov %s1119_s10 }
 0x5fc   : > { %p18_p2 = scmp.ge.s32.totalorder %s21_s14, 4   ;;  %s1472_s10 = smov %s1123_s11 }
 0x5fd   : > { %s1473_s11 = smov %s1223_s23  ;;  %s1474_s12 = smov %s1131_s13 }
 0x5fe   : > { %s1475_s13 = smov %s1477_s17  ;;  %20 = sbr.rel (!%p18_p2) target bundleno = 8 (0x8), region = 86 }
 0x605   :  { %717 = vsyncpa [#allocation3], 1 }
 0x606   :  { %719 = vsyncpa [#allocation3 + $0x1], 1 }
 0x607   :  { %720 = vsyncpa [#allocation6], 1 }
 0x608   :  { %722 = vsyncpa [#allocation6 + $0x1], 1 }
 0x609   :  { %723 = vsyncpa [#allocation4], 1 }
 0x60a   :  { %725 = vsyncpa [#allocation4 + $0x1], 1 }

// kernel: _lambda_.57
= control target key start
LH: loop header
LB: loop body
LE: loop exit
PB: predicated region body
PF: predicated region fallthrough
CT: control target
= control target key end

     0   :  { %8 = vsyncpa [#allocation4], 0  ;;  %s377_s0 = inlined_call_operand.hbm [shape: bf16[16,32], index: 0, kind: input, shape index: {}]   ;;  %s378_s1 = inlined_call_operand.hbm [shape: bf16[32,128], index: 1, kind: input, shape index: {}]   ;;  %s379_s2 = inlined_call_operand.hbm [shape: f32[1,128], index: 2, kind: input, shape index: {}]   ;;  %s380_s3 = inlined_call_operand.hbm [shape: f32[16,128], index: 3, kind: output, shape index: {}]  }
   0x1   :  { %9 = vsyncpa [#allocation7], 0 }
   0x2   :  { %10 = vsyncpa [#allocation5], 0  ;;  %s292_s12 = smov [#allocation6]   ;;  %s293_s14 = smov [#allocation3]  }
   0x3   :  { %s28_s13 = sshll.u32 %s292_s12, 4  ;;  %s16_s15 = sshll.u32 %s293_s14, 4  ;;  %s29_s13 = int_to_ptr.vmem [resolvable:$true] %s28_s13  ;;  %s322_s15 = int_to_ptr.vmem [resolvable:$true] %s16_s15 }
   0x4   :  { %s198_s18 = scalar_lea.hbm %s378_s1, 256 }
   0x5   :  { %p199_p0 = scmp.ne.s32.totalorder %s378_s1, %s198_s18  ;;  %p202_p1 = scmp.lt.u32.totalorder %s198_s18, %s378_s1 }
   0x7   :  { %p204_p2 = pnand %p202_p1, %p199_p0 }
   0x9   :  { %207 = shalt.err (!%p204_p2)
}
   0xa   :  { %s208_s23 = scalar_lea.vmem %s29_s13, 256  ;;  %p213_p4 = scmp.lt.s32.totalorder %s29_s13, %s29_s13 }
   0xb   :  { %p209_p3 = scmp.ne.s32.totalorder %s29_s13, %s208_s23  ;;  %p214_p5 = scmp.lt.s32.totalorder %s208_s23, %s208_s23 }
   0xd   :  { %p215_p6 = por %p214_p5, %p213_p4 }
   0xf   :  { %p216_p7 = pnand %p215_p6, %p209_p3 }
  0x11   :  { %219 = shalt.err (!%p216_p7)
}
  0x12   :  { %s294_s24 = smov 64   ;;  %s295_s25 = smov 4  }
  0x13   :  { %34 = dma.hbm_to_vmem [thread:$0]  %s378_s1, 256, %s29_s13, [#allocation7], %s294_s24, %s294_s24, %s295_s25  }
  0x14   :  { %s220_s30 = scalar_lea.hbm %s377_s0, 128 }
  0x15   :  { %p221_p8 = scmp.ne.s32.totalorder %s377_s0, %s220_s30  ;;  %p224_p9 = scmp.lt.u32.totalorder %s220_s30, %s377_s0 }
  0x17   :  { %p226_p10 = pnand %p224_p9, %p221_p8 }
  0x19   :  { %229 = shalt.err (!%p226_p10)
}
  0x1a   :  { %s230_s8 = scalar_lea.vmem %s322_s15, 128  ;;  %p235_p12 = scmp.lt.s32.totalorder %s322_s15, %s322_s15 }
  0x1b   :  { %p231_p11 = scmp.ne.s32.totalorder %s322_s15, %s230_s8  ;;  %p236_p13 = scmp.lt.s32.totalorder %s230_s8, %s230_s8 }
  0x1d   :  { %p237_p0 = por %p236_p13, %p235_p12 }
  0x1f   :  { %p238_p1 = pnand %p237_p0, %p231_p11 }
  0x21   :  { %241 = shalt.err (!%p238_p1)
}
  0x22   :  { %22 = dma.hbm_to_vmem [thread:$0]  %s377_s0, 128, %s322_s15, [#allocation4], %s294_s24, %s294_s24, %s295_s25  }
  0x23   :  { %s296_s10 = smov [#allocation8]   ;;  %s242_s14 = scalar_lea.hbm %s379_s2, 16 }
  0x24   :  { %s41_s11 = sshll.u32 %s296_s10, 4  ;;  %p243_p2 = scmp.ne.s32.totalorder %s379_s2, %s242_s14  ;;  %s42_s11 = int_to_ptr.vmem [resolvable:$true] %s41_s11 }
  0x25   :  { %p246_p3 = scmp.lt.u32.totalorder %s242_s14, %s379_s2 }
  0x27   :  { %p248_p4 = pnand %p246_p3, %p243_p2 }
  0x29   :  { %251 = shalt.err (!%p248_p4)
}
  0x2a   :  { %s252_s20 = scalar_lea.vmem %s42_s11, 16  ;;  %s256_s0 = scalar_lea.vmem %s42_s11, 32 }
  0x2b   :  { %p253_p5 = scmp.ne.s32.totalorder %s42_s11, %s252_s20  ;;  %p257_p6 = scmp.lt.s32.totalorder %s42_s11, %s42_s11 }
  0x2c   :  { %p258_p7 = scmp.lt.s32.totalorder %s256_s0, %s252_s20 }
  0x2e   :  { %p259_p8 = por %p258_p7, %p257_p6 }
  0x30   :  { %p260_p9 = pnand %p259_p8, %p253_p5 }
  0x32   :  { %263 = shalt.err (!%p260_p9)
}
  0x33   :  { %44 = dma.hbm_to_vmem [thread:$0]  %s379_s2, 16, %s42_s11, [#allocation7]  }
  0x34   :  { %286 = dma.done.wait [#allocation4], 128  }
  0x35   :  { %287 = vsyncadd [#allocation4], 4294967168 }
  0x36   :  { %288 = dma.done.wait [#allocation7], 272  }
  0x37   :  { %289 = vsyncadd [#allocation7], 4294967024  ;;  %v297_v0 = vmov 0.0   ;;  %vm298_vm0 = vmmov 0   ;;  %v195_v1 = vld [vmem:[#allocation6] sm:$0xff]   ;;  %v196_v2 = vld [vmem:[#allocation6 + $0x8] sm:$0xff]  }
  0x38   :  { %177 = vmatprep.subr.bf16.mxu0 %v297_v0  ;;  %181 = vmatprep.mubr.msk.bf16.mxu0 %vm298_vm0, %v297_v0  ;;  %v197_v3 = vld [vmem:[#allocation3] sm:$0xff]   ;;  %vm86_vm1 = vcmask 261120   ;;  %v173_v4 = vld [vmem:[#allocation8] ss:$0 sm:$0xff]  ;;  %s299_s22 = smov [#allocation9]  }
  0x39   :  { %178 = vmatpush3.bf16.msra.mxu0 %v195_v1  ;;  %s156_s23 = sshll.u32 %s299_s22, 4  ;;  %s157_s23 = int_to_ptr.vmem [resolvable:$true] %s156_s23 }
  0x3a   :  { %179 = vmatprep.subr.bf16.mxu0 %v297_v0  ;;  %s264_s2 = scalar_lea.vmem %s157_s23, 256  ;;  %p269_p11 = scmp.lt.s32.totalorder %s157_s23, %s157_s23 }
  0x3b   :  { %p265_p10 = scmp.ne.s32.totalorder %s157_s23, %s264_s2  ;;  %p270_p12 = scmp.lt.s32.totalorder %s264_s2, %s264_s2 }
  0x3d   :  { %180 = vmatpush3.bf16.msra.mxu0 %v196_v2  ;;  %p271_p13 = por %p270_p12, %p269_p11 }
  0x3f   :  { %p272_p0 = pnand %p271_p13, %p265_p10 }
  0x40   :  { %182 = vmatmul.mubr.msk.bf16.vlgmr.msra.gmra.mrb[0].mxu0 %vm86_vm1, %v197_v3 }
 0x113   :  { %v124_v5 = vpop.f32.mrb[0].mxu0 }
 0x114   :  { %v147_v6 = vadd.f32 %v173_v4, %v124_v5  ;;  %v183_v7 = vpop.f32.mrb[1].mxu0 }
 0x115   :  { %v127_v8 = vpop.f32.mrb[2].mxu0 }
 0x116   :  { %149 = vst [vmem:[#allocation9] sm:$0xff] %v147_v6  ;;  %v148_v9 = vadd.f32 %v173_v4, %v127_v8  ;;  %v184_v10 = vpop.f32.mrb[3].mxu0 }
 0x118   :  { %150 = vst [vmem:[#allocation9 + $0x8] sm:$0xff] %v148_v9 }
 0x119   :  { %275 = shalt.err (!%p272_p0)
}
 0x11a   :  { %s276_s26 = scalar_lea.hbm %s380_s3, 256 }
 0x11b   :  { %p277_p1 = scmp.ne.s32.totalorder %s380_s3, %s276_s26  ;;  %p280_p2 = scmp.lt.u32.totalorder %s276_s26, %s380_s3 }
 0x11d   :  { %p282_p3 = pnand %p280_p2, %p277_p1 }
 0x11f   :  { %285 = shalt.err (!%p282_p3)
}
 0x120   :  { %s300_s4 = smov 128   ;;  %s301_s5 = smov 8  }
 0x121   :  { %162 = dma.vmem_to_hbm [thread:$0]  %s157_s23, 256, %s380_s3, [#allocation5], %s300_s4, %s300_s4, %s301_s5  }
 0x122   :  { %290 = dma.done.wait [#allocation5], 256  }
 0x123   :  { %291 = vsyncadd [#allocation5], 4294967040 }
 0x124   :  { %166 = vsyncpa [#allocation4], 1 }
 0x125   :  { %167 = vsyncpa [#allocation7], 1 }
 0x126   :  { %168 = vsyncpa [#allocation5], 1 }

</bundles_post_ra>
